<compile_context>
chip_gen: v7x
topology: tpu7x:2x2x1
jax: 0.10.0
libtpu: 0.0.40
codegen_flags: <defaults>
</compile_context>

<pallas_src>
import math
from functools import partial

import jax
import jax.numpy as jnp
from jax import lax
from jax.experimental import pallas as pl
from jax.experimental.pallas import tpu as pltpu


# --------------------------------------------------------------------------
# In-kernel helpers
# --------------------------------------------------------------------------

def _bn(v, g, b, n, eps=1e-5):
    """BatchNorm1d, batch statistics (biased variance), single reduction pass."""
    inv_n = 1.0 / float(n)
    s = jnp.sum(v, axis=0, keepdims=True)
    ss = jnp.sum(v * v, axis=0, keepdims=True)
    mean = s * inv_n
    var = ss * inv_n - mean * mean
    return (v - mean) * lax.rsqrt(var + eps) * g + b


# --------------------------------------------------------------------------
# Fused GPS kernel: one grid step == one GPS layer (encoder runs at step 0,
# add-pool runs only at the last step)
# --------------------------------------------------------------------------

def _gps_kernel(
    # graph data (constant across layers)
    x_ref, pe_ref, batch_col_ref, batch_row_ref, src_col_ref, dst_row_ref, eidx_ref,
    # encoder params
    node_w_ref, node_b_ref, pe_w_ref, pe_b_ref, pe_g_ref, pe_beta_ref, edge_tbl_ref,
    # per-layer params (leading layer axis streamed by BlockSpec)
    gw1_ref, gb1_ref, gw2_ref, gb2_ref,
    wqkv_ref, bqkv_ref, wo_ref, bo_ref,
    n1g_ref, n1b_ref, n2g_ref, n2b_ref, n3g_ref, n3b_ref,
    mw1_ref, mb1_ref, mw2_ref, mb2_ref,
    # output + VMEM-resident state
    out_ref, h_sc, e_sc, g_sc, s_sc, bias_sc,
    *, N, E, B, C, heads, dh,
):
    layer = pl.program_id(0)
    last = pl.num_programs(0) - 1

    # ---- encoders + layer-invariant structural tensors: built once ---------
    @pl.when(layer == 0)
    def _encode():
        # node / PE encoders
        pe_n = _bn(pe_ref[...], pe_g_ref[...], pe_beta_ref[...], n=N)
        x_emb = jnp.dot(x_ref[...], node_w_ref[...],
                        preferred_element_type=jnp.float32) + node_b_ref[...]
        pe_emb = jnp.dot(pe_n, pe_w_ref[...],
                         preferred_element_type=jnp.float32) + pe_b_ref[...]
        h_sc[...] = jnp.concatenate([x_emb, pe_emb], axis=1)            # [N, C]

        # edge-type embedding: 4-row masked select/sum on the VPU (no K=4 matmul)
        eidx = eidx_ref[...]                                            # [E, 1] int32
        tbl = edge_tbl_ref[...]                                         # [4, C]
        eemb = jnp.zeros((E, C), jnp.float32)
        for t in range(4):
            sel = (eidx == t).astype(jnp.float32)                       # [E, 1]
            eemb = eemb + sel * tbl[t:t + 1, :]                         # [E, C]
        e_sc[...] = eemb

        # structural matrices (layer-invariant): bf16 one-hots + f32 attn bias
        g_sc[...] = (lax.broadcasted_iota(jnp.int32, (E, N), 1)
                     == src_col_ref[...]).astype(jnp.bfloat16)          # gather(src)
        s_sc[...] = (lax.broadcasted_iota(jnp.int32, (N, E), 0)
                     == dst_row_ref[...]).astype(jnp.bfloat16)          # scatter-add(dst)
        bias_sc[...] = jnp.where(batch_col_ref[...] == batch_row_ref[...],
                                 0.0, -1e9)                             # [N, N]

    h = h_sc[...]
    eemb = e_sc[...]
    G = g_sc[...]
    S = s_sc[...]
    bias = bias_sc[...]

    # ---- local branch: GINEConv (eps=0) + residual + BatchNorm1 ------------
    xj = jnp.dot(G, h.astype(jnp.bfloat16),
                 preferred_element_type=jnp.float32)                    # x[src]  [E, C]
    msg = jnp.maximum(xj + eemb, 0.0)                                   # relu(x_j + e)
    agg = jnp.dot(S, msg.astype(jnp.bfloat16),
                  preferred_element_type=jnp.float32)                   # scatter-add [N, C]
    hg = agg + h
    hg = jnp.maximum(jnp.dot(hg, gw1_ref[...],
                             preferred_element_type=jnp.float32) + gb1_ref[...], 0.0)
    hg = jnp.dot(hg, gw2_ref[...], preferred_element_type=jnp.float32) + gb2_ref[...]
    h_local = _bn(hg + h, n1g_ref[...], n1b_ref[...], n=N)

    # ---- global branch: masked multi-head self-attention over nodes --------
    # packed QKV: one [N,C]@[C,3C] matmul, heads taken as static lane slices
    qkv = jnp.dot(h, wqkv_ref[...],
                  preferred_element_type=jnp.float32) + bqkv_ref[...]   # [N, 3C]
    scale = 1.0 / math.sqrt(dh)
    ctx_parts = []
    for hd in range(heads):
        q_h = qkv[:, hd * dh:(hd + 1) * dh]
        k_h = qkv[:, C + hd * dh: C + (hd + 1) * dh]
        v_h = qkv[:, 2 * C + hd * dh: 2 * C + (hd + 1) * dh]
        s = jnp.dot(q_h, k_h.T, preferred_element_type=jnp.float32) * scale + bias
        s = s - jnp.max(s, axis=-1, keepdims=True)
        p = jnp.exp(s)
        p = p * pl.reciprocal(jnp.sum(p, axis=-1, keepdims=True), approx=False)
        ctx_parts.append(jnp.dot(p, v_h, preferred_element_type=jnp.float32))
    ctx = jnp.concatenate(ctx_parts, axis=1)                            # [N, C]
    attn = jnp.dot(ctx, wo_ref[...],
                   preferred_element_type=jnp.float32) + bo_ref[...]    # [N, C]
    h_attn = _bn(attn + h, n2g_ref[...], n2b_ref[...], n=N)

    # ---- combine + MLP + BatchNorm3 -----------------------------------------
    out = h_local + h_attn
    m = jnp.maximum(jnp.dot(out, mw1_ref[...],
                            preferred_element_type=jnp.float32) + mb1_ref[...], 0.0)
    m = jnp.dot(m, mw2_ref[...], preferred_element_type=jnp.float32) + mb2_ref[...]
    h_new = _bn(out + m, n3g_ref[...], n3b_ref[...], n=N)
    h_sc[...] = h_new

    # ---- global_add_pool: only on the last layer ----------------------------
    @pl.when(layer == last)
    def _pool():
        P = (lax.broadcasted_iota(jnp.int32, (B, N), 0)
             == batch_row_ref[...]).astype(jnp.bfloat16)                # [B, N]
        out_ref[...] = jnp.dot(P, h_new.astype(jnp.bfloat16),
                               preferred_element_type=jnp.float32)      # [B, C]


# --------------------------------------------------------------------------
# Parameters (deterministic synthetic init; shapes match the PyTorch module,
# QKV projection packed into a single [C, 3C] matrix on the host)
# --------------------------------------------------------------------------

_LAYER_KEYS = ('gw1', 'gb1', 'gw2', 'gb2',
               'wqkv', 'bqkv', 'wo', 'bo',
               'n1g', 'n1b', 'n2g', 'n2b', 'n3g', 'n3b',
               'mw1', 'mb1', 'mw2', 'mb2')


def init_params(key, channels, pe_dim, num_layers, heads):
    C, L = channels, num_layers
    keys = iter(jax.random.split(key, 32))

    def w(shape, scale=0.1):
        return scale * jax.random.normal(next(keys), shape, jnp.float32)

    p = {
        'node_w': w((9, C - pe_dim)), 'node_b': w((1, C - pe_dim)),
        'pe_w': w((20, pe_dim)),      'pe_b': w((1, pe_dim)),
        'pe_g': jnp.ones((1, 20), jnp.float32),
        'pe_beta': jnp.zeros((1, 20), jnp.float32),
        'edge_emb': w((4, C)),
        'gw1': w((L, C, C)), 'gb1': w((L, 1, C)),
        'gw2': w((L, C, C)), 'gb2': w((L, 1, C)),
        'wqkv': w((L, C, 3 * C)),      # packed [q|k|v] projection (x @ W layout)
        'bqkv': w((L, 1, 3 * C)),
        'wo': w((L, C, C)),            # un-split output projection
        'bo': w((L, 1, C)),
        'n1g': jnp.ones((L, 1, C), jnp.float32), 'n1b': jnp.zeros((L, 1, C), jnp.float32),
        'n2g': jnp.ones((L, 1, C), jnp.float32), 'n2b': jnp.zeros((L, 1, C), jnp.float32),
        'n3g': jnp.ones((L, 1, C), jnp.float32), 'n3b': jnp.zeros((L, 1, C), jnp.float32),
        'mw1': w((L, C, 2 * C)), 'mb1': w((L, 1, 2 * C)),
        'mw2': w((L, 2 * C, C)), 'mb2': w((L, 1, C)),
    }
    return p


# --------------------------------------------------------------------------
# Forward pass: one pallas_call for the whole network
# --------------------------------------------------------------------------

def gps_forward(params, x, pe, edge_index, edge_attr, batch, *, num_graphs, heads):
    N = x.shape[0]
    E = edge_index.shape[1]
    C = params['edge_emb'].shape[1]
    L = params['gw1'].shape[0]
    B = num_graphs
    dh = C // heads

    # ---- index plumbing only (tiny int arrays; done once on the host) ------
    eidx = jnp.argmax(edge_attr, axis=1).astype(jnp.int32).reshape(E, 1)
    src_col = edge_index[0].astype(jnp.int32).reshape(E, 1)
    dst_row = edge_index[1].astype(jnp.int32).reshape(1, E)
    batch_col = batch.astype(jnp.int32).reshape(N, 1)
    batch_row = batch.astype(jnp.int32).reshape(1, N)

    def full_spec(shape):
        nd = len(shape)
        return pl.BlockSpec(shape, lambda l, _nd=nd: (0,) * _nd)

    def layer_spec(trailing_shape):
        nd = len(trailing_shape)
        return pl.BlockSpec((None,) + tuple(trailing_shape),
                            lambda l, _nd=nd: (l,) + (0,) * _nd)

    graph_and_encoder = [
        x.astype(jnp.float32), pe.astype(jnp.float32),
        batch_col, batch_row, src_col, dst_row, eidx,
        params['node_w'], params['node_b'], params['pe_w'], params['pe_b'],
        params['pe_g'], params['pe_beta'], params['edge_emb'],
    ]
    layer_params = [params[k] for k in _LAYER_KEYS]

    in_specs = ([full_spec(a.shape) for a in graph_and_encoder]
                + [layer_spec(params[k].shape[1:]) for k in _LAYER_KEYS])

    # ---- explicit scoped-VMEM budget (scratch + 2x buffered layer weights
    #      + constants + generous temporary headroom), kept under 64 MiB -----
    const_bytes = sum(int(a.size) * a.dtype.itemsize for a in graph_and_encoder)
    layer_bytes = 2 * sum(int(params[k].size) // L * 4 for k in _LAYER_KEYS)
    scratch_bytes = (N * C + E * C + N * N) * 4 + 2 * (E * N) * 2
    temp_bytes = 4 * (N * 3 * C + heads * N * N + E * C + N * 2 * C) * 4
    vmem_limit = int(min(max(2 * (const_bytes + layer_bytes + scratch_bytes + temp_bytes),
                             16 << 20), 64 << 20))

    kernel = partial(_gps_kernel, N=N, E=E, B=B, C=C, heads=heads, dh=dh)

    return pl.pallas_call(
        kernel,
        out_shape=jax.ShapeDtypeStruct((B, C), jnp.float32),
        grid=(L,),
        in_specs=in_specs,
        out_specs=pl.BlockSpec((B, C), lambda l: (0, 0)),
        scratch_shapes=[
            pltpu.VMEM((N, C), jnp.float32),      # h: node features, VMEM-resident
            pltpu.VMEM((E, C), jnp.float32),      # edge embeddings
            pltpu.VMEM((E, N), jnp.bfloat16),     # gather(src) one-hot (layer-invariant)
            pltpu.VMEM((N, E), jnp.bfloat16),     # scatter-add(dst) one-hot (layer-invariant)
            pltpu.VMEM((N, N), jnp.float32),      # attention bias (layer-invariant)
        ],
        compiler_params=pltpu.CompilerParams(
            # layers are sequential (h carried across grid steps)
            dimension_semantics=("arbitrary",),
            vmem_limit_bytes=vmem_limit),
    )(*(graph_and_encoder + layer_params))


# --------------------------------------------------------------------------
# Main
# --------------------------------------------------------------------------

if __name__ == "__main__":
    channels, pe_dim, num_layers, heads = 32, 8, 2, 4
    nodes_per_graph = [5, 7]
    N = sum(nodes_per_graph)
    B = len(nodes_per_graph)
    E_per_graph = 10
    E = E_per_graph * B

    key = jax.random.PRNGKey(0)
    kx, kpe, kea, ks0, kd0, ks1, kd1, kparam = jax.random.split(key, 8)

    x = jax.random.normal(kx, (N, 9), jnp.float32)
    pe = jax.random.normal(kpe, (N, 20), jnp.float32)
    edge_attr = jax.random.normal(kea, (E, 4), jnp.float32)

    batch = jnp.array(sum(([g] * n for g, n in enumerate(nodes_per_graph)), []), jnp.int32)

    src = jnp.concatenate([jax.random.randint(ks0, (E_per_graph,), 0, 5),
                           jax.random.randint(ks1, (E_per_graph,), 5, 12)]).astype(jnp.int32)
    dst = jnp.concatenate([jax.random.randint(kd0, (E_per_graph,), 0, 5),
                           jax.random.randint(kd1, (E_per_graph,), 5, 12)]).astype(jnp.int32)
    edge_index = jnp.stack([src, dst], axis=0)

    params = init_params(kparam, channels, pe_dim, num_layers, heads)

    fwd = jax.jit(partial(gps_forward, num_graphs=B, heads=heads))
    out = jax.block_until_ready(fwd(params, x, pe, edge_index, edge_attr, batch))

    assert out.shape == (B, channels), out.shape
    assert bool(jnp.all(jnp.isfinite(out)))
    print("KERNEL_OK")
</pallas_src>

<mosaic_0001>
module attributes {stable_mosaic.version = 11 : i64} {
  func.func @_gps_kernel(%arg0: i32, %arg1: memref<12x9xf32, #tpu.memory_space<vmem>>, %arg2: memref<12x20xf32, #tpu.memory_space<vmem>>, %arg3: memref<12x1xi32, #tpu.memory_space<vmem>>, %arg4: memref<1x12xi32, #tpu.memory_space<vmem>>, %arg5: memref<20x1xi32, #tpu.memory_space<vmem>>, %arg6: memref<1x20xi32, #tpu.memory_space<vmem>>, %arg7: memref<20x1xi32, #tpu.memory_space<vmem>>, %arg8: memref<9x24xf32, #tpu.memory_space<vmem>>, %arg9: memref<1x24xf32, #tpu.memory_space<vmem>>, %arg10: memref<20x8xf32, #tpu.memory_space<vmem>>, %arg11: memref<1x8xf32, #tpu.memory_space<vmem>>, %arg12: memref<1x20xf32, #tpu.memory_space<vmem>>, %arg13: memref<1x20xf32, #tpu.memory_space<vmem>>, %arg14: memref<4x32xf32, #tpu.memory_space<vmem>>, %arg15: memref<1x32x32xf32, #tpu.memory_space<vmem>>, %arg16: memref<1x1x32xf32, #tpu.memory_space<vmem>>, %arg17: memref<1x32x32xf32, #tpu.memory_space<vmem>>, %arg18: memref<1x1x32xf32, #tpu.memory_space<vmem>>, %arg19: memref<1x32x96xf32, #tpu.memory_space<vmem>>, %arg20: memref<1x1x96xf32, #tpu.memory_space<vmem>>, %arg21: memref<1x32x32xf32, #tpu.memory_space<vmem>>, %arg22: memref<1x1x32xf32, #tpu.memory_space<vmem>>, %arg23: memref<1x1x32xf32, #tpu.memory_space<vmem>>, %arg24: memref<1x1x32xf32, #tpu.memory_space<vmem>>, %arg25: memref<1x1x32xf32, #tpu.memory_space<vmem>>, %arg26: memref<1x1x32xf32, #tpu.memory_space<vmem>>, %arg27: memref<1x1x32xf32, #tpu.memory_space<vmem>>, %arg28: memref<1x1x32xf32, #tpu.memory_space<vmem>>, %arg29: memref<1x32x64xf32, #tpu.memory_space<vmem>>, %arg30: memref<1x1x64xf32, #tpu.memory_space<vmem>>, %arg31: memref<1x64x32xf32, #tpu.memory_space<vmem>>, %arg32: memref<1x1x32xf32, #tpu.memory_space<vmem>>, %arg33: memref<2x32xf32, #tpu.memory_space<vmem>>, %arg34: memref<12x32xf32, #tpu.memory_space<vmem>>, %arg35: memref<20x32xf32, #tpu.memory_space<vmem>>, %arg36: memref<20x12xbf16, #tpu.memory_space<vmem>>, %arg37: memref<12x20xbf16, #tpu.memory_space<vmem>>, %arg38: memref<12x12xf32, #tpu.memory_space<vmem>>) attributes {dimension_semantics = [#tpu.dimension_semantics<arbitrary>], iteration_bounds = array<i64: 2>, scalar_prefetch = 0 : i64, scratch_operands = 5 : i64, tpu.core_type = #tpu.core_type<tc>, window_params = [{pipeline_mode = #tpu.pipeline_mode<synchronous>, transform_indices = @transform_0, window_bounds = array<i64: 12, 9>}, {pipeline_mode = #tpu.pipeline_mode<synchronous>, transform_indices = @transform_1, window_bounds = array<i64: 12, 20>}, {pipeline_mode = #tpu.pipeline_mode<synchronous>, transform_indices = @transform_2, window_bounds = array<i64: 12, 1>}, {pipeline_mode = #tpu.pipeline_mode<synchronous>, transform_indices = @transform_3, window_bounds = array<i64: 1, 12>}, {pipeline_mode = #tpu.pipeline_mode<synchronous>, transform_indices = @transform_4, window_bounds = array<i64: 20, 1>}, {pipeline_mode = #tpu.pipeline_mode<synchronous>, transform_indices = @transform_5, window_bounds = array<i64: 1, 20>}, {pipeline_mode = #tpu.pipeline_mode<synchronous>, transform_indices = @transform_6, window_bounds = array<i64: 20, 1>}, {pipeline_mode = #tpu.pipeline_mode<synchronous>, transform_indices = @transform_7, window_bounds = array<i64: 9, 24>}, {pipeline_mode = #tpu.pipeline_mode<synchronous>, transform_indices = @transform_8, window_bounds = array<i64: 1, 24>}, {pipeline_mode = #tpu.pipeline_mode<synchronous>, transform_indices = @transform_9, window_bounds = array<i64: 20, 8>}, {pipeline_mode = #tpu.pipeline_mode<synchronous>, transform_indices = @transform_10, window_bounds = array<i64: 1, 8>}, {pipeline_mode = #tpu.pipeline_mode<synchronous>, transform_indices = @transform_11, window_bounds = array<i64: 1, 20>}, {pipeline_mode = #tpu.pipeline_mode<synchronous>, transform_indices = @transform_12, window_bounds = array<i64: 1, 20>}, {pipeline_mode = #tpu.pipeline_mode<synchronous>, transform_indices = @transform_13, window_bounds = array<i64: 4, 32>}, {transform_indices = @transform_14, window_bounds = array<i64: 1, 32, 32>}, {transform_indices = @transform_15, window_bounds = array<i64: 1, 1, 32>}, {transform_indices = @transform_16, window_bounds = array<i64: 1, 32, 32>}, {transform_indices = @transform_17, window_bounds = array<i64: 1, 1, 32>}, {transform_indices = @transform_18, window_bounds = array<i64: 1, 32, 96>}, {transform_indices = @transform_19, window_bounds = array<i64: 1, 1, 96>}, {transform_indices = @transform_20, window_bounds = array<i64: 1, 32, 32>}, {transform_indices = @transform_21, window_bounds = array<i64: 1, 1, 32>}, {transform_indices = @transform_22, window_bounds = array<i64: 1, 1, 32>}, {transform_indices = @transform_23, window_bounds = array<i64: 1, 1, 32>}, {transform_indices = @transform_24, window_bounds = array<i64: 1, 1, 32>}, {transform_indices = @transform_25, window_bounds = array<i64: 1, 1, 32>}, {transform_indices = @transform_26, window_bounds = array<i64: 1, 1, 32>}, {transform_indices = @transform_27, window_bounds = array<i64: 1, 1, 32>}, {transform_indices = @transform_28, window_bounds = array<i64: 1, 32, 64>}, {transform_indices = @transform_29, window_bounds = array<i64: 1, 1, 64>}, {transform_indices = @transform_30, window_bounds = array<i64: 1, 64, 32>}, {transform_indices = @transform_31, window_bounds = array<i64: 1, 1, 32>}, {pipeline_mode = #tpu.pipeline_mode<synchronous>, transform_indices = @transform_32, window_bounds = array<i64: 2, 32>}]} {
    %c0_i32 = arith.constant 0 : i32
    %0 = arith.cmpi eq, %arg0, %c0_i32 : i32
    %1 = arith.extui %0 : i1 to i32
    %c0_i32_0 = arith.constant 0 : i32
    %2 = arith.cmpi ne, %1, %c0_i32_0 : i32
    scf.if %2 {
      %c0_112 = arith.constant 0 : index
      %c0_113 = arith.constant 0 : index
      %225 = vector.load %arg2[%c0_112, %c0_113] : memref<12x20xf32, #tpu.memory_space<vmem>>, vector<12x20xf32>
      %c0_114 = arith.constant 0 : index
      %c0_115 = arith.constant 0 : index
      %226 = vector.load %arg12[%c0_114, %c0_115] : memref<1x20xf32, #tpu.memory_space<vmem>>, vector<1x20xf32>
      %c0_116 = arith.constant 0 : index
      %c0_117 = arith.constant 0 : index
      %227 = vector.load %arg13[%c0_116, %c0_117] : memref<1x20xf32, #tpu.memory_space<vmem>>, vector<1x20xf32>
      %cst_118 = arith.constant dense<0.000000e+00> : vector<20xf32>
      %228 = vector.multi_reduction <add>, %225, %cst_118 [0] : vector<12x20xf32> to vector<20xf32>
      %229 = vector.shape_cast %228 : vector<20xf32> to vector<1x20xf32>
      %230 = arith.mulf %225, %225 : vector<12x20xf32>
      %cst_119 = arith.constant dense<0.000000e+00> : vector<20xf32>
      %231 = vector.multi_reduction <add>, %230, %cst_119 [0] : vector<12x20xf32> to vector<20xf32>
      %232 = vector.shape_cast %231 : vector<20xf32> to vector<1x20xf32>
      %cst_120 = arith.constant 0.0833333358 : f32
      %233 = vector.broadcast %cst_120 : f32 to vector<1x20xf32>
      %234 = arith.mulf %229, %233 : vector<1x20xf32>
      %cst_121 = arith.constant 0.0833333358 : f32
      %235 = vector.broadcast %cst_121 : f32 to vector<1x20xf32>
      %236 = arith.mulf %232, %235 : vector<1x20xf32>
      %237 = arith.mulf %234, %234 : vector<1x20xf32>
      %238 = arith.subf %236, %237 : vector<1x20xf32>
      %239 = vector.broadcast %234 : vector<1x20xf32> to vector<12x20xf32>
      %240 = arith.subf %225, %239 : vector<12x20xf32>
      %cst_122 = arith.constant 9.99999974E-6 : f32
      %241 = vector.broadcast %cst_122 : f32 to vector<1x20xf32>
      %242 = arith.addf %238, %241 : vector<1x20xf32>
      %243 = math.rsqrt %242 : vector<1x20xf32>
      %244 = vector.broadcast %243 : vector<1x20xf32> to vector<12x20xf32>
      %245 = arith.mulf %240, %244 : vector<12x20xf32>
      %246 = vector.broadcast %226 : vector<1x20xf32> to vector<12x20xf32>
      %247 = arith.mulf %245, %246 : vector<12x20xf32>
      %248 = vector.broadcast %227 : vector<1x20xf32> to vector<12x20xf32>
      %249 = arith.addf %247, %248 : vector<12x20xf32>
      %c0_123 = arith.constant 0 : index
      %c0_124 = arith.constant 0 : index
      %250 = vector.load %arg1[%c0_123, %c0_124] : memref<12x9xf32, #tpu.memory_space<vmem>>, vector<12x9xf32>
      %c0_125 = arith.constant 0 : index
      %c0_126 = arith.constant 0 : index
      %251 = vector.load %arg8[%c0_125, %c0_126] : memref<9x24xf32, #tpu.memory_space<vmem>>, vector<9x24xf32>
      %cst_127 = arith.constant dense<0.000000e+00> : vector<12x24xf32>
      %252 = tpu.matmul %250, %251, %cst_127 {dimension_numbers = #tpu.dot_dimension_numbers<[1], [0], [0], [1], [0, 0, 1, 1], [], []>} : vector<12x9xf32>, vector<9x24xf32>, vector<12x24xf32> -> vector<12x24xf32>
      %c0_128 = arith.constant 0 : index
      %c0_129 = arith.constant 0 : index
      %253 = vector.load %arg9[%c0_128, %c0_129] : memref<1x24xf32, #tpu.memory_space<vmem>>, vector<1x24xf32>
      %254 = vector.broadcast %253 : vector<1x24xf32> to vector<12x24xf32>
      %255 = arith.addf %252, %254 : vector<12x24xf32>
      %c0_130 = arith.constant 0 : index
      %c0_131 = arith.constant 0 : index
      %256 = vector.load %arg10[%c0_130, %c0_131] : memref<20x8xf32, #tpu.memory_space<vmem>>, vector<20x8xf32>
      %cst_132 = arith.constant dense<0.000000e+00> : vector<12x8xf32>
      %257 = tpu.matmul %249, %256, %cst_132 {dimension_numbers = #tpu.dot_dimension_numbers<[1], [0], [0], [1], [0, 0, 1, 1], [], []>} : vector<12x20xf32>, vector<20x8xf32>, vector<12x8xf32> -> vector<12x8xf32>
      %c0_133 = arith.constant 0 : index
      %c0_134 = arith.constant 0 : index
      %258 = vector.load %arg11[%c0_133, %c0_134] : memref<1x8xf32, #tpu.memory_space<vmem>>, vector<1x8xf32>
      %259 = vector.broadcast %258 : vector<1x8xf32> to vector<12x8xf32>
      %260 = arith.addf %257, %259 : vector<12x8xf32>
      %261 = tpu.concatenate %255, %260 in 1 : vector<12x24xf32>, vector<12x8xf32> -> vector<12x32xf32>
      %c0_135 = arith.constant 0 : index
      %c0_136 = arith.constant 0 : index
      %262 = vector.load %arg34[%c0_135, %c0_136] : memref<12x32xf32, #tpu.memory_space<vmem>>, vector<12x32xf32>
      tpu.vector_store %arg34[%c0_135, %c0_136], %261 {strides = array<i32>} : memref<12x32xf32, #tpu.memory_space<vmem>>, vector<12x32xf32>,
      %c0_137 = arith.constant 0 : index
      %c0_138 = arith.constant 0 : index
      %263 = vector.load %arg7[%c0_137, %c0_138] : memref<20x1xi32, #tpu.memory_space<vmem>>, vector<20x1xi32>
      %c0_139 = arith.constant 0 : index
      %c0_140 = arith.constant 0 : index
      %264 = vector.load %arg14[%c0_139, %c0_140] : memref<4x32xf32, #tpu.memory_space<vmem>>, vector<4x32xf32>
      %cst_141 = arith.constant 0.000000e+00 : f32
      %265 = vector.broadcast %cst_141 : f32 to vector<20x32xf32>
      %c0_i32_142 = arith.constant 0 : i32
      %266 = vector.broadcast %c0_i32_142 : i32 to vector<20x1xi32>
      %267 = arith.cmpi eq, %263, %266 : vector<20x1xi32>
      %268 = arith.extui %267 : vector<20x1xi1> to vector<20x1xi32>
      %269 = arith.sitofp %268 : vector<20x1xi32> to vector<20x1xf32>
      %270 = vector.extract_strided_slice %264 {offsets = [0, 0], sizes = [1, 32], strides = [1, 1]} : vector<4x32xf32> to vector<1x32xf32>
      %271 = vector.broadcast %269 : vector<20x1xf32> to vector<20x32xf32>
      %272 = vector.broadcast %270 : vector<1x32xf32> to vector<20x32xf32>
      %273 = arith.mulf %271, %272 : vector<20x32xf32>
      %274 = arith.addf %265, %273 : vector<20x32xf32>
      %c1_i32_143 = arith.constant 1 : i32
      %275 = vector.broadcast %c1_i32_143 : i32 to vector<20x1xi32>
      %276 = arith.cmpi eq, %263, %275 : vector<20x1xi32>
      %277 = arith.extui %276 : vector<20x1xi1> to vector<20x1xi32>
      %278 = arith.sitofp %277 : vector<20x1xi32> to vector<20x1xf32>
      %279 = vector.extract_strided_slice %264 {offsets = [1, 0], sizes = [1, 32], strides = [1, 1]} : vector<4x32xf32> to vector<1x32xf32>
      %280 = vector.broadcast %278 : vector<20x1xf32> to vector<20x32xf32>
      %281 = vector.broadcast %279 : vector<1x32xf32> to vector<20x32xf32>
      %282 = arith.mulf %280, %281 : vector<20x32xf32>
      %283 = arith.addf %274, %282 : vector<20x32xf32>
      %c2_i32 = arith.constant 2 : i32
      %284 = vector.broadcast %c2_i32 : i32 to vector<20x1xi32>
      %285 = arith.cmpi eq, %263, %284 : vector<20x1xi32>
      %286 = arith.extui %285 : vector<20x1xi1> to vector<20x1xi32>
      %287 = arith.sitofp %286 : vector<20x1xi32> to vector<20x1xf32>
      %288 = vector.extract_strided_slice %264 {offsets = [2, 0], sizes = [1, 32], strides = [1, 1]} : vector<4x32xf32> to vector<1x32xf32>
      %289 = vector.broadcast %287 : vector<20x1xf32> to vector<20x32xf32>
      %290 = vector.broadcast %288 : vector<1x32xf32> to vector<20x32xf32>
      %291 = arith.mulf %289, %290 : vector<20x32xf32>
      %292 = arith.addf %283, %291 : vector<20x32xf32>
      %c3_i32 = arith.constant 3 : i32
      %293 = vector.broadcast %c3_i32 : i32 to vector<20x1xi32>
      %294 = arith.cmpi eq, %263, %293 : vector<20x1xi32>
      %295 = arith.extui %294 : vector<20x1xi1> to vector<20x1xi32>
      %296 = arith.sitofp %295 : vector<20x1xi32> to vector<20x1xf32>
      %297 = vector.extract_strided_slice %264 {offsets = [3, 0], sizes = [1, 32], strides = [1, 1]} : vector<4x32xf32> to vector<1x32xf32>
      %298 = vector.broadcast %296 : vector<20x1xf32> to vector<20x32xf32>
      %299 = vector.broadcast %297 : vector<1x32xf32> to vector<20x32xf32>
      %300 = arith.mulf %298, %299 : vector<20x32xf32>
      %301 = arith.addf %292, %300 : vector<20x32xf32>
      %c0_144 = arith.constant 0 : index
      %c0_145 = arith.constant 0 : index
      %302 = vector.load %arg35[%c0_144, %c0_145] : memref<20x32xf32, #tpu.memory_space<vmem>>, vector<20x32xf32>
      tpu.vector_store %arg35[%c0_144, %c0_145], %301 {strides = array<i32>} : memref<20x32xf32, #tpu.memory_space<vmem>>, vector<20x32xf32>,
      %303 = tpu.iota {dimensions = array<i32: 1>} : vector<20x12xi32>
      %c0_146 = arith.constant 0 : index
      %c0_147 = arith.constant 0 : index
      %304 = vector.load %arg5[%c0_146, %c0_147] : memref<20x1xi32, #tpu.memory_space<vmem>>, vector<20x1xi32>
      %305 = vector.broadcast %304 : vector<20x1xi32> to vector<20x12xi32>
      %306 = arith.cmpi eq, %303, %305 : vector<20x12xi32>
      %307 = arith.extui %306 : vector<20x12xi1> to vector<20x12xi32>
      %308 = arith.sitofp %307 : vector<20x12xi32> to vector<20x12xf32>
      %309 = arith.truncf %308 : vector<20x12xf32> to vector<20x12xbf16>
      %c0_148 = arith.constant 0 : index
      %c0_149 = arith.constant 0 : index
      %310 = vector.load %arg36[%c0_148, %c0_149] : memref<20x12xbf16, #tpu.memory_space<vmem>>, vector<20x12xbf16>
      tpu.vector_store %arg36[%c0_148, %c0_149], %309 {strides = array<i32>} : memref<20x12xbf16, #tpu.memory_space<vmem>>, vector<20x12xbf16>,
      %311 = tpu.iota {dimensions = array<i32: 0>} : vector<12x20xi32>
      %c0_150 = arith.constant 0 : index
      %c0_151 = arith.constant 0 : index
      %312 = vector.load %arg6[%c0_150, %c0_151] : memref<1x20xi32, #tpu.memory_space<vmem>>, vector<1x20xi32>
      %313 = vector.broadcast %312 : vector<1x20xi32> to vector<12x20xi32>
      %314 = arith.cmpi eq, %311, %313 : vector<12x20xi32>
      %315 = arith.extui %314 : vector<12x20xi1> to vector<12x20xi32>
      %316 = arith.sitofp %315 : vector<12x20xi32> to vector<12x20xf32>
      %317 = arith.truncf %316 : vector<12x20xf32> to vector<12x20xbf16>
      %c0_152 = arith.constant 0 : index
      %c0_153 = arith.constant 0 : index
      %318 = vector.load %arg37[%c0_152, %c0_153] : memref<12x20xbf16, #tpu.memory_space<vmem>>, vector<12x20xbf16>
      tpu.vector_store %arg37[%c0_152, %c0_153], %317 {strides = array<i32>} : memref<12x20xbf16, #tpu.memory_space<vmem>>, vector<12x20xbf16>,
      %c0_154 = arith.constant 0 : index
      %c0_155 = arith.constant 0 : index
      %319 = vector.load %arg3[%c0_154, %c0_155] : memref<12x1xi32, #tpu.memory_space<vmem>>, vector<12x1xi32>
      %c0_156 = arith.constant 0 : index
      %c0_157 = arith.constant 0 : index
      %320 = vector.load %arg4[%c0_156, %c0_157] : memref<1x12xi32, #tpu.memory_space<vmem>>, vector<1x12xi32>
      %321 = vector.broadcast %319 : vector<12x1xi32> to vector<12x12xi32>
      %322 = vector.broadcast %320 : vector<1x12xi32> to vector<12x12xi32>
      %323 = arith.cmpi eq, %321, %322 : vector<12x12xi32>
      %cst_158 = arith.constant 0.000000e+00 : f32
      %cst_159 = arith.constant -1.000000e+09 : f32
      %324 = vector.broadcast %cst_158 : f32 to vector<12x12xf32>
      %325 = vector.broadcast %cst_159 : f32 to vector<12x12xf32>
      %326 = arith.select %323, %324, %325 : vector<12x12xi1>, vector<12x12xf32>
      %c0_160 = arith.constant 0 : index
      %c0_161 = arith.constant 0 : index
      %327 = vector.load %arg38[%c0_160, %c0_161] : memref<12x12xf32, #tpu.memory_space<vmem>>, vector<12x12xf32>
      tpu.vector_store %arg38[%c0_160, %c0_161], %326 {strides = array<i32>} : memref<12x12xf32, #tpu.memory_space<vmem>>, vector<12x12xf32>,
    } else {
    }
    %c0 = arith.constant 0 : index
    %c0_1 = arith.constant 0 : index
    %3 = vector.load %arg34[%c0, %c0_1] : memref<12x32xf32, #tpu.memory_space<vmem>>, vector<12x32xf32>
    %c0_2 = arith.constant 0 : index
    %c0_3 = arith.constant 0 : index
    %4 = vector.load %arg35[%c0_2, %c0_3] : memref<20x32xf32, #tpu.memory_space<vmem>>, vector<20x32xf32>
    %c0_4 = arith.constant 0 : index
    %c0_5 = arith.constant 0 : index
    %5 = vector.load %arg36[%c0_4, %c0_5] : memref<20x12xbf16, #tpu.memory_space<vmem>>, vector<20x12xbf16>
    %c0_6 = arith.constant 0 : index
    %c0_7 = arith.constant 0 : index
    %6 = vector.load %arg37[%c0_6, %c0_7] : memref<12x20xbf16, #tpu.memory_space<vmem>>, vector<12x20xbf16>
    %c0_8 = arith.constant 0 : index
    %c0_9 = arith.constant 0 : index
    %7 = vector.load %arg38[%c0_8, %c0_9] : memref<12x12xf32, #tpu.memory_space<vmem>>, vector<12x12xf32>
    %8 = arith.truncf %3 : vector<12x32xf32> to vector<12x32xbf16>
    %cst = arith.constant dense<0.000000e+00> : vector<20x32xf32>
    %9 = tpu.matmul %5, %8, %cst {dimension_numbers = #tpu.dot_dimension_numbers<[1], [0], [0], [1], [0, 0, 1, 1], [], []>} : vector<20x12xbf16>, vector<12x32xbf16>, vector<20x32xf32> -> vector<20x32xf32>
    %10 = arith.addf %9, %4 : vector<20x32xf32>
    %cst_10 = arith.constant 0.000000e+00 : f32
    %11 = vector.broadcast %cst_10 : f32 to vector<20x32xf32>
    %12 = arith.maximumf %10, %11 : vector<20x32xf32>
    %13 = arith.truncf %12 : vector<20x32xf32> to vector<20x32xbf16>
    %cst_11 = arith.constant dense<0.000000e+00> : vector<12x32xf32>
    %14 = tpu.matmul %6, %13, %cst_11 {dimension_numbers = #tpu.dot_dimension_numbers<[1], [0], [0], [1], [0, 0, 1, 1], [], []>} : vector<12x20xbf16>, vector<20x32xbf16>, vector<12x32xf32> -> vector<12x32xf32>
    %15 = arith.addf %14, %3 : vector<12x32xf32>
    %c0_12 = arith.constant 0 : index
    %c0_13 = arith.constant 0 : index
    %c0_14 = arith.constant 0 : index
    %16 = vector.load %arg15[%c0_12, %c0_13, %c0_14] : memref<1x32x32xf32, #tpu.memory_space<vmem>>, vector<1x32x32xf32>
    %17 = vector.shape_cast %16 : vector<1x32x32xf32> to vector<32x32xf32>
    %cst_15 = arith.constant dense<0.000000e+00> : vector<12x32xf32>
    %18 = tpu.matmul %15, %17, %cst_15 {dimension_numbers = #tpu.dot_dimension_numbers<[1], [0], [0], [1], [0, 0, 1, 1], [], []>} : vector<12x32xf32>, vector<32x32xf32>, vector<12x32xf32> -> vector<12x32xf32>
    %c0_16 = arith.constant 0 : index
    %c0_17 = arith.constant 0 : index
    %c0_18 = arith.constant 0 : index
    %19 = vector.load %arg16[%c0_16, %c0_17, %c0_18] : memref<1x1x32xf32, #tpu.memory_space<vmem>>, vector<1x1x32xf32>
    %20 = vector.shape_cast %19 : vector<1x1x32xf32> to vector<1x32xf32>
    %21 = vector.broadcast %20 : vector<1x32xf32> to vector<12x32xf32>
    %22 = arith.addf %18, %21 : vector<12x32xf32>
    %cst_19 = arith.constant 0.000000e+00 : f32
    %23 = vector.broadcast %cst_19 : f32 to vector<12x32xf32>
    %24 = arith.maximumf %22, %23 : vector<12x32xf32>
    %c0_20 = arith.constant 0 : index
    %c0_21 = arith.constant 0 : index
    %c0_22 = arith.constant 0 : index
    %25 = vector.load %arg17[%c0_20, %c0_21, %c0_22] : memref<1x32x32xf32, #tpu.memory_space<vmem>>, vector<1x32x32xf32>
    %26 = vector.shape_cast %25 : vector<1x32x32xf32> to vector<32x32xf32>
    %cst_23 = arith.constant dense<0.000000e+00> : vector<12x32xf32>
    %27 = tpu.matmul %24, %26, %cst_23 {dimension_numbers = #tpu.dot_dimension_numbers<[1], [0], [0], [1], [0, 0, 1, 1], [], []>} : vector<12x32xf32>, vector<32x32xf32>, vector<12x32xf32> -> vector<12x32xf32>
    %c0_24 = arith.constant 0 : index
    %c0_25 = arith.constant 0 : index
    %c0_26 = arith.constant 0 : index
    %28 = vector.load %arg18[%c0_24, %c0_25, %c0_26] : memref<1x1x32xf32, #tpu.memory_space<vmem>>, vector<1x1x32xf32>
    %29 = vector.shape_cast %28 : vector<1x1x32xf32> to vector<1x32xf32>
    %30 = vector.broadcast %29 : vector<1x32xf32> to vector<12x32xf32>
    %31 = arith.addf %27, %30 : vector<12x32xf32>
    %32 = arith.addf %31, %3 : vector<12x32xf32>
    %c0_27 = arith.constant 0 : index
    %c0_28 = arith.constant 0 : index
    %c0_29 = arith.constant 0 : index
    %33 = vector.load %arg23[%c0_27, %c0_28, %c0_29] : memref<1x1x32xf32, #tpu.memory_space<vmem>>, vector<1x1x32xf32>
    %34 = vector.shape_cast %33 : vector<1x1x32xf32> to vector<1x32xf32>
    %c0_30 = arith.constant 0 : index
    %c0_31 = arith.constant 0 : index
    %c0_32 = arith.constant 0 : index
    %35 = vector.load %arg24[%c0_30, %c0_31, %c0_32] : memref<1x1x32xf32, #tpu.memory_space<vmem>>, vector<1x1x32xf32>
    %36 = vector.shape_cast %35 : vector<1x1x32xf32> to vector<1x32xf32>
    %cst_33 = arith.constant dense<0.000000e+00> : vector<32xf32>
    %37 = vector.multi_reduction <add>, %32, %cst_33 [0] : vector<12x32xf32> to vector<32xf32>
    %38 = vector.shape_cast %37 : vector<32xf32> to vector<1x32xf32>
    %39 = arith.mulf %32, %32 : vector<12x32xf32>
    %cst_34 = arith.constant dense<0.000000e+00> : vector<32xf32>
    %40 = vector.multi_reduction <add>, %39, %cst_34 [0] : vector<12x32xf32> to vector<32xf32>
    %41 = vector.shape_cast %40 : vector<32xf32> to vector<1x32xf32>
    %cst_35 = arith.constant 0.0833333358 : f32
    %42 = vector.broadcast %cst_35 : f32 to vector<1x32xf32>
    %43 = arith.mulf %38, %42 : vector<1x32xf32>
    %cst_36 = arith.constant 0.0833333358 : f32
    %44 = vector.broadcast %cst_36 : f32 to vector<1x32xf32>
    %45 = arith.mulf %41, %44 : vector<1x32xf32>
    %46 = arith.mulf %43, %43 : vector<1x32xf32>
    %47 = arith.subf %45, %46 : vector<1x32xf32>
    %48 = vector.broadcast %43 : vector<1x32xf32> to vector<12x32xf32>
    %49 = arith.subf %32, %48 : vector<12x32xf32>
    %cst_37 = arith.constant 9.99999974E-6 : f32
    %50 = vector.broadcast %cst_37 : f32 to vector<1x32xf32>
    %51 = arith.addf %47, %50 : vector<1x32xf32>
    %52 = math.rsqrt %51 : vector<1x32xf32>
    %53 = vector.broadcast %52 : vector<1x32xf32> to vector<12x32xf32>
    %54 = arith.mulf %49, %53 : vector<12x32xf32>
    %55 = vector.broadcast %34 : vector<1x32xf32> to vector<12x32xf32>
    %56 = arith.mulf %54, %55 : vector<12x32xf32>
    %57 = vector.broadcast %36 : vector<1x32xf32> to vector<12x32xf32>
    %58 = arith.addf %56, %57 : vector<12x32xf32>
    %c0_38 = arith.constant 0 : index
    %c0_39 = arith.constant 0 : index
    %c0_40 = arith.constant 0 : index
    %59 = vector.load %arg19[%c0_38, %c0_39, %c0_40] : memref<1x32x96xf32, #tpu.memory_space<vmem>>, vector<1x32x96xf32>
    %60 = vector.shape_cast %59 : vector<1x32x96xf32> to vector<32x96xf32>
    %cst_41 = arith.constant dense<0.000000e+00> : vector<12x96xf32>
    %61 = tpu.matmul %3, %60, %cst_41 {dimension_numbers = #tpu.dot_dimension_numbers<[1], [0], [0], [1], [0, 0, 1, 1], [], []>} : vector<12x32xf32>, vector<32x96xf32>, vector<12x96xf32> -> vector<12x96xf32>
    %c0_42 = arith.constant 0 : index
    %c0_43 = arith.constant 0 : index
    %c0_44 = arith.constant 0 : index
    %62 = vector.load %arg20[%c0_42, %c0_43, %c0_44] : memref<1x1x96xf32, #tpu.memory_space<vmem>>, vector<1x1x96xf32>
    %63 = vector.shape_cast %62 : vector<1x1x96xf32> to vector<1x96xf32>
    %64 = vector.broadcast %63 : vector<1x96xf32> to vector<12x96xf32>
    %65 = arith.addf %61, %64 : vector<12x96xf32>
    %66 = vector.extract_strided_slice %65 {offsets = [0, 0], sizes = [12, 8], strides = [1, 1]} : vector<12x96xf32> to vector<12x8xf32>
    %67 = vector.extract_strided_slice %65 {offsets = [0, 32], sizes = [12, 8], strides = [1, 1]} : vector<12x96xf32> to vector<12x8xf32>
    %68 = vector.extract_strided_slice %65 {offsets = [0, 64], sizes = [12, 8], strides = [1, 1]} : vector<12x96xf32> to vector<12x8xf32>
    %69 = tpu.transpose %67, [1, 0] : vector<12x8xf32> -> vector<8x12xf32>
    %cst_45 = arith.constant dense<0.000000e+00> : vector<12x12xf32>
    %70 = tpu.matmul %66, %69, %cst_45 {dimension_numbers = #tpu.dot_dimension_numbers<[1], [0], [0], [1], [0, 0, 1, 1], [], []>} : vector<12x8xf32>, vector<8x12xf32>, vector<12x12xf32> -> vector<12x12xf32>
    %cst_46 = arith.constant 0.353553385 : f32
    %71 = vector.broadcast %cst_46 : f32 to vector<12x12xf32>
    %72 = arith.mulf %70, %71 : vector<12x12xf32>
    %73 = arith.addf %72, %7 : vector<12x12xf32>
    %cst_47 = arith.constant dense<0xFF800000> : vector<12xf32>
    %74 = vector.multi_reduction <maximumf>, %73, %cst_47 [1] : vector<12x12xf32> to vector<12xf32>
    %75 = vector.shape_cast %74 : vector<12xf32> to vector<12x1xf32>
    %76 = vector.broadcast %75 : vector<12x1xf32> to vector<12x12xf32>
    %77 = arith.subf %73, %76 : vector<12x12xf32>
    %78 = math.exp %77 : vector<12x12xf32>
    %cst_48 = arith.constant dense<0.000000e+00> : vector<12xf32>
    %79 = vector.multi_reduction <add>, %78, %cst_48 [1] : vector<12x12xf32> to vector<12xf32>
    %80 = vector.shape_cast %79 : vector<12xf32> to vector<12x1xf32>
    %81 = tpu.reciprocal %80 : vector<12x1xf32> -> vector<12x1xf32>
    %82 = vector.broadcast %81 : vector<12x1xf32> to vector<12x12xf32>
    %83 = arith.mulf %78, %82 : vector<12x12xf32>
    %cst_49 = arith.constant dense<0.000000e+00> : vector<12x8xf32>
    %84 = tpu.matmul %83, %68, %cst_49 {dimension_numbers = #tpu.dot_dimension_numbers<[1], [0], [0], [1], [0, 0, 1, 1], [], []>} : vector<12x12xf32>, vector<12x8xf32>, vector<12x8xf32> -> vector<12x8xf32>
    %85 = vector.extract_strided_slice %65 {offsets = [0, 8], sizes = [12, 8], strides = [1, 1]} : vector<12x96xf32> to vector<12x8xf32>
    %86 = vector.extract_strided_slice %65 {offsets = [0, 40], sizes = [12, 8], strides = [1, 1]} : vector<12x96xf32> to vector<12x8xf32>
    %87 = vector.extract_strided_slice %65 {offsets = [0, 72], sizes = [12, 8], strides = [1, 1]} : vector<12x96xf32> to vector<12x8xf32>
    %88 = tpu.transpose %86, [1, 0] : vector<12x8xf32> -> vector<8x12xf32>
    %cst_50 = arith.constant dense<0.000000e+00> : vector<12x12xf32>
    %89 = tpu.matmul %85, %88, %cst_50 {dimension_numbers = #tpu.dot_dimension_numbers<[1], [0], [0], [1], [0, 0, 1, 1], [], []>} : vector<12x8xf32>, vector<8x12xf32>, vector<12x12xf32> -> vector<12x12xf32>
    %cst_51 = arith.constant 0.353553385 : f32
    %90 = vector.broadcast %cst_51 : f32 to vector<12x12xf32>
    %91 = arith.mulf %89, %90 : vector<12x12xf32>
    %92 = arith.addf %91, %7 : vector<12x12xf32>
    %cst_52 = arith.constant dense<0xFF800000> : vector<12xf32>
    %93 = vector.multi_reduction <maximumf>, %92, %cst_52 [1] : vector<12x12xf32> to vector<12xf32>
    %94 = vector.shape_cast %93 : vector<12xf32> to vector<12x1xf32>
    %95 = vector.broadcast %94 : vector<12x1xf32> to vector<12x12xf32>
    %96 = arith.subf %92, %95 : vector<12x12xf32>
    %97 = math.exp %96 : vector<12x12xf32>
    %cst_53 = arith.constant dense<0.000000e+00> : vector<12xf32>
    %98 = vector.multi_reduction <add>, %97, %cst_53 [1] : vector<12x12xf32> to vector<12xf32>
    %99 = vector.shape_cast %98 : vector<12xf32> to vector<12x1xf32>
    %100 = tpu.reciprocal %99 : vector<12x1xf32> -> vector<12x1xf32>
    %101 = vector.broadcast %100 : vector<12x1xf32> to vector<12x12xf32>
    %102 = arith.mulf %97, %101 : vector<12x12xf32>
    %cst_54 = arith.constant dense<0.000000e+00> : vector<12x8xf32>
    %103 = tpu.matmul %102, %87, %cst_54 {dimension_numbers = #tpu.dot_dimension_numbers<[1], [0], [0], [1], [0, 0, 1, 1], [], []>} : vector<12x12xf32>, vector<12x8xf32>, vector<12x8xf32> -> vector<12x8xf32>
    %104 = vector.extract_strided_slice %65 {offsets = [0, 16], sizes = [12, 8], strides = [1, 1]} : vector<12x96xf32> to vector<12x8xf32>
    %105 = vector.extract_strided_slice %65 {offsets = [0, 48], sizes = [12, 8], strides = [1, 1]} : vector<12x96xf32> to vector<12x8xf32>
    %106 = vector.extract_strided_slice %65 {offsets = [0, 80], sizes = [12, 8], strides = [1, 1]} : vector<12x96xf32> to vector<12x8xf32>
    %107 = tpu.transpose %105, [1, 0] : vector<12x8xf32> -> vector<8x12xf32>
    %cst_55 = arith.constant dense<0.000000e+00> : vector<12x12xf32>
    %108 = tpu.matmul %104, %107, %cst_55 {dimension_numbers = #tpu.dot_dimension_numbers<[1], [0], [0], [1], [0, 0, 1, 1], [], []>} : vector<12x8xf32>, vector<8x12xf32>, vector<12x12xf32> -> vector<12x12xf32>
    %cst_56 = arith.constant 0.353553385 : f32
    %109 = vector.broadcast %cst_56 : f32 to vector<12x12xf32>
    %110 = arith.mulf %108, %109 : vector<12x12xf32>
    %111 = arith.addf %110, %7 : vector<12x12xf32>
    %cst_57 = arith.constant dense<0xFF800000> : vector<12xf32>
    %112 = vector.multi_reduction <maximumf>, %111, %cst_57 [1] : vector<12x12xf32> to vector<12xf32>
    %113 = vector.shape_cast %112 : vector<12xf32> to vector<12x1xf32>
    %114 = vector.broadcast %113 : vector<12x1xf32> to vector<12x12xf32>
    %115 = arith.subf %111, %114 : vector<12x12xf32>
    %116 = math.exp %115 : vector<12x12xf32>
    %cst_58 = arith.constant dense<0.000000e+00> : vector<12xf32>
    %117 = vector.multi_reduction <add>, %116, %cst_58 [1] : vector<12x12xf32> to vector<12xf32>
    %118 = vector.shape_cast %117 : vector<12xf32> to vector<12x1xf32>
    %119 = tpu.reciprocal %118 : vector<12x1xf32> -> vector<12x1xf32>
    %120 = vector.broadcast %119 : vector<12x1xf32> to vector<12x12xf32>
    %121 = arith.mulf %116, %120 : vector<12x12xf32>
    %cst_59 = arith.constant dense<0.000000e+00> : vector<12x8xf32>
    %122 = tpu.matmul %121, %106, %cst_59 {dimension_numbers = #tpu.dot_dimension_numbers<[1], [0], [0], [1], [0, 0, 1, 1], [], []>} : vector<12x12xf32>, vector<12x8xf32>, vector<12x8xf32> -> vector<12x8xf32>
    %123 = vector.extract_strided_slice %65 {offsets = [0, 24], sizes = [12, 8], strides = [1, 1]} : vector<12x96xf32> to vector<12x8xf32>
    %124 = vector.extract_strided_slice %65 {offsets = [0, 56], sizes = [12, 8], strides = [1, 1]} : vector<12x96xf32> to vector<12x8xf32>
    %125 = vector.extract_strided_slice %65 {offsets = [0, 88], sizes = [12, 8], strides = [1, 1]} : vector<12x96xf32> to vector<12x8xf32>
    %126 = tpu.transpose %124, [1, 0] : vector<12x8xf32> -> vector<8x12xf32>
    %cst_60 = arith.constant dense<0.000000e+00> : vector<12x12xf32>
    %127 = tpu.matmul %123, %126, %cst_60 {dimension_numbers = #tpu.dot_dimension_numbers<[1], [0], [0], [1], [0, 0, 1, 1], [], []>} : vector<12x8xf32>, vector<8x12xf32>, vector<12x12xf32> -> vector<12x12xf32>
    %cst_61 = arith.constant 0.353553385 : f32
    %128 = vector.broadcast %cst_61 : f32 to vector<12x12xf32>
    %129 = arith.mulf %127, %128 : vector<12x12xf32>
    %130 = arith.addf %129, %7 : vector<12x12xf32>
    %cst_62 = arith.constant dense<0xFF800000> : vector<12xf32>
    %131 = vector.multi_reduction <maximumf>, %130, %cst_62 [1] : vector<12x12xf32> to vector<12xf32>
    %132 = vector.shape_cast %131 : vector<12xf32> to vector<12x1xf32>
    %133 = vector.broadcast %132 : vector<12x1xf32> to vector<12x12xf32>
    %134 = arith.subf %130, %133 : vector<12x12xf32>
    %135 = math.exp %134 : vector<12x12xf32>
    %cst_63 = arith.constant dense<0.000000e+00> : vector<12xf32>
    %136 = vector.multi_reduction <add>, %135, %cst_63 [1] : vector<12x12xf32> to vector<12xf32>
    %137 = vector.shape_cast %136 : vector<12xf32> to vector<12x1xf32>
    %138 = tpu.reciprocal %137 : vector<12x1xf32> -> vector<12x1xf32>
    %139 = vector.broadcast %138 : vector<12x1xf32> to vector<12x12xf32>
    %140 = arith.mulf %135, %139 : vector<12x12xf32>
    %cst_64 = arith.constant dense<0.000000e+00> : vector<12x8xf32>
    %141 = tpu.matmul %140, %125, %cst_64 {dimension_numbers = #tpu.dot_dimension_numbers<[1], [0], [0], [1], [0, 0, 1, 1], [], []>} : vector<12x12xf32>, vector<12x8xf32>, vector<12x8xf32> -> vector<12x8xf32>
    %142 = tpu.concatenate %84, %103, %122, %141 in 1 : vector<12x8xf32>, vector<12x8xf32>, vector<12x8xf32>, vector<12x8xf32> -> vector<12x32xf32>
    %c0_65 = arith.constant 0 : index
    %c0_66 = arith.constant 0 : index
    %c0_67 = arith.constant 0 : index
    %143 = vector.load %arg21[%c0_65, %c0_66, %c0_67] : memref<1x32x32xf32, #tpu.memory_space<vmem>>, vector<1x32x32xf32>
    %144 = vector.shape_cast %143 : vector<1x32x32xf32> to vector<32x32xf32>
    %cst_68 = arith.constant dense<0.000000e+00> : vector<12x32xf32>
    %145 = tpu.matmul %142, %144, %cst_68 {dimension_numbers = #tpu.dot_dimension_numbers<[1], [0], [0], [1], [0, 0, 1, 1], [], []>} : vector<12x32xf32>, vector<32x32xf32>, vector<12x32xf32> -> vector<12x32xf32>
    %c0_69 = arith.constant 0 : index
    %c0_70 = arith.constant 0 : index
    %c0_71 = arith.constant 0 : index
    %146 = vector.load %arg22[%c0_69, %c0_70, %c0_71] : memref<1x1x32xf32, #tpu.memory_space<vmem>>, vector<1x1x32xf32>
    %147 = vector.shape_cast %146 : vector<1x1x32xf32> to vector<1x32xf32>
    %148 = vector.broadcast %147 : vector<1x32xf32> to vector<12x32xf32>
    %149 = arith.addf %145, %148 : vector<12x32xf32>
    %150 = arith.addf %149, %3 : vector<12x32xf32>
    %c0_72 = arith.constant 0 : index
    %c0_73 = arith.constant 0 : index
    %c0_74 = arith.constant 0 : index
    %151 = vector.load %arg25[%c0_72, %c0_73, %c0_74] : memref<1x1x32xf32, #tpu.memory_space<vmem>>, vector<1x1x32xf32>
    %152 = vector.shape_cast %151 : vector<1x1x32xf32> to vector<1x32xf32>
    %c0_75 = arith.constant 0 : index
    %c0_76 = arith.constant 0 : index
    %c0_77 = arith.constant 0 : index
    %153 = vector.load %arg26[%c0_75, %c0_76, %c0_77] : memref<1x1x32xf32, #tpu.memory_space<vmem>>, vector<1x1x32xf32>
    %154 = vector.shape_cast %153 : vector<1x1x32xf32> to vector<1x32xf32>
    %cst_78 = arith.constant dense<0.000000e+00> : vector<32xf32>
    %155 = vector.multi_reduction <add>, %150, %cst_78 [0] : vector<12x32xf32> to vector<32xf32>
    %156 = vector.shape_cast %155 : vector<32xf32> to vector<1x32xf32>
    %157 = arith.mulf %150, %150 : vector<12x32xf32>
    %cst_79 = arith.constant dense<0.000000e+00> : vector<32xf32>
    %158 = vector.multi_reduction <add>, %157, %cst_79 [0] : vector<12x32xf32> to vector<32xf32>
    %159 = vector.shape_cast %158 : vector<32xf32> to vector<1x32xf32>
    %cst_80 = arith.constant 0.0833333358 : f32
    %160 = vector.broadcast %cst_80 : f32 to vector<1x32xf32>
    %161 = arith.mulf %156, %160 : vector<1x32xf32>
    %cst_81 = arith.constant 0.0833333358 : f32
    %162 = vector.broadcast %cst_81 : f32 to vector<1x32xf32>
    %163 = arith.mulf %159, %162 : vector<1x32xf32>
    %164 = arith.mulf %161, %161 : vector<1x32xf32>
    %165 = arith.subf %163, %164 : vector<1x32xf32>
    %166 = vector.broadcast %161 : vector<1x32xf32> to vector<12x32xf32>
    %167 = arith.subf %150, %166 : vector<12x32xf32>
    %cst_82 = arith.constant 9.99999974E-6 : f32
    %168 = vector.broadcast %cst_82 : f32 to vector<1x32xf32>
    %169 = arith.addf %165, %168 : vector<1x32xf32>
    %170 = math.rsqrt %169 : vector<1x32xf32>
    %171 = vector.broadcast %170 : vector<1x32xf32> to vector<12x32xf32>
    %172 = arith.mulf %167, %171 : vector<12x32xf32>
    %173 = vector.broadcast %152 : vector<1x32xf32> to vector<12x32xf32>
    %174 = arith.mulf %172, %173 : vector<12x32xf32>
    %175 = vector.broadcast %154 : vector<1x32xf32> to vector<12x32xf32>
    %176 = arith.addf %174, %175 : vector<12x32xf32>
    %177 = arith.addf %58, %176 : vector<12x32xf32>
    %c0_83 = arith.constant 0 : index
    %c0_84 = arith.constant 0 : index
    %c0_85 = arith.constant 0 : index
    %178 = vector.load %arg29[%c0_83, %c0_84, %c0_85] : memref<1x32x64xf32, #tpu.memory_space<vmem>>, vector<1x32x64xf32>
    %179 = vector.shape_cast %178 : vector<1x32x64xf32> to vector<32x64xf32>
    %cst_86 = arith.constant dense<0.000000e+00> : vector<12x64xf32>
    %180 = tpu.matmul %177, %179, %cst_86 {dimension_numbers = #tpu.dot_dimension_numbers<[1], [0], [0], [1], [0, 0, 1, 1], [], []>} : vector<12x32xf32>, vector<32x64xf32>, vector<12x64xf32> -> vector<12x64xf32>
    %c0_87 = arith.constant 0 : index
    %c0_88 = arith.constant 0 : index
    %c0_89 = arith.constant 0 : index
    %181 = vector.load %arg30[%c0_87, %c0_88, %c0_89] : memref<1x1x64xf32, #tpu.memory_space<vmem>>, vector<1x1x64xf32>
    %182 = vector.shape_cast %181 : vector<1x1x64xf32> to vector<1x64xf32>
    %183 = vector.broadcast %182 : vector<1x64xf32> to vector<12x64xf32>
    %184 = arith.addf %180, %183 : vector<12x64xf32>
    %cst_90 = arith.constant 0.000000e+00 : f32
    %185 = vector.broadcast %cst_90 : f32 to vector<12x64xf32>
    %186 = arith.maximumf %184, %185 : vector<12x64xf32>
    %c0_91 = arith.constant 0 : index
    %c0_92 = arith.constant 0 : index
    %c0_93 = arith.constant 0 : index
    %187 = vector.load %arg31[%c0_91, %c0_92, %c0_93] : memref<1x64x32xf32, #tpu.memory_space<vmem>>, vector<1x64x32xf32>
    %188 = vector.shape_cast %187 : vector<1x64x32xf32> to vector<64x32xf32>
    %cst_94 = arith.constant dense<0.000000e+00> : vector<12x32xf32>
    %189 = tpu.matmul %186, %188, %cst_94 {dimension_numbers = #tpu.dot_dimension_numbers<[1], [0], [0], [1], [0, 0, 1, 1], [], []>} : vector<12x64xf32>, vector<64x32xf32>, vector<12x32xf32> -> vector<12x32xf32>
    %c0_95 = arith.constant 0 : index
    %c0_96 = arith.constant 0 : index
    %c0_97 = arith.constant 0 : index
    %190 = vector.load %arg32[%c0_95, %c0_96, %c0_97] : memref<1x1x32xf32, #tpu.memory_space<vmem>>, vector<1x1x32xf32>
    %191 = vector.shape_cast %190 : vector<1x1x32xf32> to vector<1x32xf32>
    %192 = vector.broadcast %191 : vector<1x32xf32> to vector<12x32xf32>
    %193 = arith.addf %189, %192 : vector<12x32xf32>
    %194 = arith.addf %177, %193 : vector<12x32xf32>
    %c0_98 = arith.constant 0 : index
    %c0_99 = arith.constant 0 : index
    %c0_100 = arith.constant 0 : index
    %195 = vector.load %arg27[%c0_98, %c0_99, %c0_100] : memref<1x1x32xf32, #tpu.memory_space<vmem>>, vector<1x1x32xf32>
    %196 = vector.shape_cast %195 : vector<1x1x32xf32> to vector<1x32xf32>
    %c0_101 = arith.constant 0 : index
    %c0_102 = arith.constant 0 : index
    %c0_103 = arith.constant 0 : index
    %197 = vector.load %arg28[%c0_101, %c0_102, %c0_103] : memref<1x1x32xf32, #tpu.memory_space<vmem>>, vector<1x1x32xf32>
    %198 = vector.shape_cast %197 : vector<1x1x32xf32> to vector<1x32xf32>
    %cst_104 = arith.constant dense<0.000000e+00> : vector<32xf32>
    %199 = vector.multi_reduction <add>, %194, %cst_104 [0] : vector<12x32xf32> to vector<32xf32>
    %200 = vector.shape_cast %199 : vector<32xf32> to vector<1x32xf32>
    %201 = arith.mulf %194, %194 : vector<12x32xf32>
    %cst_105 = arith.constant dense<0.000000e+00> : vector<32xf32>
    %202 = vector.multi_reduction <add>, %201, %cst_105 [0] : vector<12x32xf32> to vector<32xf32>
    %203 = vector.shape_cast %202 : vector<32xf32> to vector<1x32xf32>
    %cst_106 = arith.constant 0.0833333358 : f32
    %204 = vector.broadcast %cst_106 : f32 to vector<1x32xf32>
    %205 = arith.mulf %200, %204 : vector<1x32xf32>
    %cst_107 = arith.constant 0.0833333358 : f32
    %206 = vector.broadcast %cst_107 : f32 to vector<1x32xf32>
    %207 = arith.mulf %203, %206 : vector<1x32xf32>
    %208 = arith.mulf %205, %205 : vector<1x32xf32>
    %209 = arith.subf %207, %208 : vector<1x32xf32>
    %210 = vector.broadcast %205 : vector<1x32xf32> to vector<12x32xf32>
    %211 = arith.subf %194, %210 : vector<12x32xf32>
    %cst_108 = arith.constant 9.99999974E-6 : f32
    %212 = vector.broadcast %cst_108 : f32 to vector<1x32xf32>
    %213 = arith.addf %209, %212 : vector<1x32xf32>
    %214 = math.rsqrt %213 : vector<1x32xf32>
    %215 = vector.broadcast %214 : vector<1x32xf32> to vector<12x32xf32>
    %216 = arith.mulf %211, %215 : vector<12x32xf32>
    %217 = vector.broadcast %196 : vector<1x32xf32> to vector<12x32xf32>
    %218 = arith.mulf %216, %217 : vector<12x32xf32>
    %219 = vector.broadcast %198 : vector<1x32xf32> to vector<12x32xf32>
    %220 = arith.addf %218, %219 : vector<12x32xf32>
    %c0_109 = arith.constant 0 : index
    %c0_110 = arith.constant 0 : index
    %221 = vector.load %arg34[%c0_109, %c0_110] : memref<12x32xf32, #tpu.memory_space<vmem>>, vector<12x32xf32>
    tpu.vector_store %arg34[%c0_109, %c0_110], %220 {strides = array<i32>} : memref<12x32xf32, #tpu.memory_space<vmem>>, vector<12x32xf32>,
    %c1_i32 = arith.constant 1 : i32
    %222 = arith.cmpi eq, %arg0, %c1_i32 : i32
    %223 = arith.extui %222 : i1 to i32
    %c0_i32_111 = arith.constant 0 : i32
    %224 = arith.cmpi ne, %223, %c0_i32_111 : i32
    scf.if %224 {
      %225 = tpu.iota {dimensions = array<i32: 0>} : vector<2x12xi32>
      %c0_112 = arith.constant 0 : index
      %c0_113 = arith.constant 0 : index
      %226 = vector.load %arg4[%c0_112, %c0_113] : memref<1x12xi32, #tpu.memory_space<vmem>>, vector<1x12xi32>
      %227 = vector.broadcast %226 : vector<1x12xi32> to vector<2x12xi32>
      %228 = arith.cmpi eq, %225, %227 : vector<2x12xi32>
      %229 = arith.extui %228 : vector<2x12xi1> to vector<2x12xi32>
      %230 = arith.sitofp %229 : vector<2x12xi32> to vector<2x12xf32>
      %231 = arith.truncf %230 : vector<2x12xf32> to vector<2x12xbf16>
      %232 = arith.truncf %220 : vector<12x32xf32> to vector<12x32xbf16>
      %cst_114 = arith.constant dense<0.000000e+00> : vector<2x32xf32>
      %233 = tpu.matmul %231, %232, %cst_114 {dimension_numbers = #tpu.dot_dimension_numbers<[1], [0], [0], [1], [0, 0, 1, 1], [], []>} : vector<2x12xbf16>, vector<12x32xbf16>, vector<2x32xf32> -> vector<2x32xf32>
      %c0_115 = arith.constant 0 : index
      %c0_116 = arith.constant 0 : index
      %234 = vector.load %arg33[%c0_115, %c0_116] : memref<2x32xf32, #tpu.memory_space<vmem>>, vector<2x32xf32>
      tpu.vector_store %arg33[%c0_115, %c0_116], %233 {strides = array<i32>} : memref<2x32xf32, #tpu.memory_space<vmem>>, vector<2x32xf32>,
    } else {
    }
    return
  }
  func.func @transform_0(%arg0: i32) -> (i32, i32) {
    %c0_i32 = arith.constant 0 : i32
    %c0_i32_0 = arith.constant 0 : i32
    %c0_i32_1 = arith.constant 0 : i32
    return %c0_i32, %c0_i32_0 : i32, i32
  }
  func.func @transform_1(%arg0: i32) -> (i32, i32) {
    %c0_i32 = arith.constant 0 : i32
    %c0_i32_0 = arith.constant 0 : i32
    %c0_i32_1 = arith.constant 0 : i32
    return %c0_i32, %c0_i32_0 : i32, i32
  }
  func.func @transform_2(%arg0: i32) -> (i32, i32) {
    %c0_i32 = arith.constant 0 : i32
    %c0_i32_0 = arith.constant 0 : i32
    %c0_i32_1 = arith.constant 0 : i32
    return %c0_i32, %c0_i32_0 : i32, i32
  }
  func.func @transform_3(%arg0: i32) -> (i32, i32) {
    %c0_i32 = arith.constant 0 : i32
    %c0_i32_0 = arith.constant 0 : i32
    %c0_i32_1 = arith.constant 0 : i32
    return %c0_i32, %c0_i32_0 : i32, i32
  }
  func.func @transform_4(%arg0: i32) -> (i32, i32) {
    %c0_i32 = arith.constant 0 : i32
    %c0_i32_0 = arith.constant 0 : i32
    %c0_i32_1 = arith.constant 0 : i32
    return %c0_i32, %c0_i32_0 : i32, i32
  }
  func.func @transform_5(%arg0: i32) -> (i32, i32) {
    %c0_i32 = arith.constant 0 : i32
    %c0_i32_0 = arith.constant 0 : i32
    %c0_i32_1 = arith.constant 0 : i32
    return %c0_i32, %c0_i32_0 : i32, i32
  }
  func.func @transform_6(%arg0: i32) -> (i32, i32) {
    %c0_i32 = arith.constant 0 : i32
    %c0_i32_0 = arith.constant 0 : i32
    %c0_i32_1 = arith.constant 0 : i32
    return %c0_i32, %c0_i32_0 : i32, i32
  }
  func.func @transform_7(%arg0: i32) -> (i32, i32) {
    %c0_i32 = arith.constant 0 : i32
    %c0_i32_0 = arith.constant 0 : i32
    %c0_i32_1 = arith.constant 0 : i32
    return %c0_i32, %c0_i32_0 : i32, i32
  }
  func.func @transform_8(%arg0: i32) -> (i32, i32) {
    %c0_i32 = arith.constant 0 : i32
    %c0_i32_0 = arith.constant 0 : i32
    %c0_i32_1 = arith.constant 0 : i32
    return %c0_i32, %c0_i32_0 : i32, i32
  }
  func.func @transform_9(%arg0: i32) -> (i32, i32) {
    %c0_i32 = arith.constant 0 : i32
    %c0_i32_0 = arith.constant 0 : i32
    %c0_i32_1 = arith.constant 0 : i32
    return %c0_i32, %c0_i32_0 : i32, i32
  }
  func.func @transform_10(%arg0: i32) -> (i32, i32) {
    %c0_i32 = arith.constant 0 : i32
    %c0_i32_0 = arith.constant 0 : i32
    %c0_i32_1 = arith.constant 0 : i32
    return %c0_i32, %c0_i32_0 : i32, i32
  }
  func.func @transform_11(%arg0: i32) -> (i32, i32) {
    %c0_i32 = arith.constant 0 : i32
    %c0_i32_0 = arith.constant 0 : i32
    %c0_i32_1 = arith.constant 0 : i32
    return %c0_i32, %c0_i32_0 : i32, i32
  }
  func.func @transform_12(%arg0: i32) -> (i32, i32) {
    %c0_i32 = arith.constant 0 : i32
    %c0_i32_0 = arith.constant 0 : i32
    %c0_i32_1 = arith.constant 0 : i32
    return %c0_i32, %c0_i32_0 : i32, i32
  }
  func.func @transform_13(%arg0: i32) -> (i32, i32) {
    %c0_i32 = arith.constant 0 : i32
    %c0_i32_0 = arith.constant 0 : i32
    %c0_i32_1 = arith.constant 0 : i32
    return %c0_i32, %c0_i32_0 : i32, i32
  }
  func.func @transform_14(%arg0: i32) -> (i32, i32, i32) {
    %c0_i32 = arith.constant 0 : i32
    %c0_i32_0 = arith.constant 0 : i32
    %c0_i32_1 = arith.constant 0 : i32
    return %arg0, %c0_i32, %c0_i32_0 : i32, i32, i32
  }
  func.func @transform_15(%arg0: i32) -> (i32, i32, i32) {
    %c0_i32 = arith.constant 0 : i32
    %c0_i32_0 = arith.constant 0 : i32
    %c0_i32_1 = arith.constant 0 : i32
    return %arg0, %c0_i32, %c0_i32_0 : i32, i32, i32
  }
  func.func @transform_16(%arg0: i32) -> (i32, i32, i32) {
    %c0_i32 = arith.constant 0 : i32
    %c0_i32_0 = arith.constant 0 : i32
    %c0_i32_1 = arith.constant 0 : i32
    return %arg0, %c0_i32, %c0_i32_0 : i32, i32, i32
  }
  func.func @transform_17(%arg0: i32) -> (i32, i32, i32) {
    %c0_i32 = arith.constant 0 : i32
    %c0_i32_0 = arith.constant 0 : i32
    %c0_i32_1 = arith.constant 0 : i32
    return %arg0, %c0_i32, %c0_i32_0 : i32, i32, i32
  }
  func.func @transform_18(%arg0: i32) -> (i32, i32, i32) {
    %c0_i32 = arith.constant 0 : i32
    %c0_i32_0 = arith.constant 0 : i32
    %c0_i32_1 = arith.constant 0 : i32
    return %arg0, %c0_i32, %c0_i32_0 : i32, i32, i32
  }
  func.func @transform_19(%arg0: i32) -> (i32, i32, i32) {
    %c0_i32 = arith.constant 0 : i32
    %c0_i32_0 = arith.constant 0 : i32
    %c0_i32_1 = arith.constant 0 : i32
    return %arg0, %c0_i32, %c0_i32_0 : i32, i32, i32
  }
  func.func @transform_20(%arg0: i32) -> (i32, i32, i32) {
    %c0_i32 = arith.constant 0 : i32
    %c0_i32_0 = arith.constant 0 : i32
    %c0_i32_1 = arith.constant 0 : i32
    return %arg0, %c0_i32, %c0_i32_0 : i32, i32, i32
  }
  func.func @transform_21(%arg0: i32) -> (i32, i32, i32) {
    %c0_i32 = arith.constant 0 : i32
    %c0_i32_0 = arith.constant 0 : i32
    %c0_i32_1 = arith.constant 0 : i32
    return %arg0, %c0_i32, %c0_i32_0 : i32, i32, i32
  }
  func.func @transform_22(%arg0: i32) -> (i32, i32, i32) {
    %c0_i32 = arith.constant 0 : i32
    %c0_i32_0 = arith.constant 0 : i32
    %c0_i32_1 = arith.constant 0 : i32
    return %arg0, %c0_i32, %c0_i32_0 : i32, i32, i32
  }
  func.func @transform_23(%arg0: i32) -> (i32, i32, i32) {
    %c0_i32 = arith.constant 0 : i32
    %c0_i32_0 = arith.constant 0 : i32
    %c0_i32_1 = arith.constant 0 : i32
    return %arg0, %c0_i32, %c0_i32_0 : i32, i32, i32
  }
  func.func @transform_24(%arg0: i32) -> (i32, i32, i32) {
    %c0_i32 = arith.constant 0 : i32
    %c0_i32_0 = arith.constant 0 : i32
    %c0_i32_1 = arith.constant 0 : i32
    return %arg0, %c0_i32, %c0_i32_0 : i32, i32, i32
  }
  func.func @transform_25(%arg0: i32) -> (i32, i32, i32) {
    %c0_i32 = arith.constant 0 : i32
    %c0_i32_0 = arith.constant 0 : i32
    %c0_i32_1 = arith.constant 0 : i32
    return %arg0, %c0_i32, %c0_i32_0 : i32, i32, i32
  }
  func.func @transform_26(%arg0: i32) -> (i32, i32, i32) {
    %c0_i32 = arith.constant 0 : i32
    %c0_i32_0 = arith.constant 0 : i32
    %c0_i32_1 = arith.constant 0 : i32
    return %arg0, %c0_i32, %c0_i32_0 : i32, i32, i32
  }
  func.func @transform_27(%arg0: i32) -> (i32, i32, i32) {
    %c0_i32 = arith.constant 0 : i32
    %c0_i32_0 = arith.constant 0 : i32
    %c0_i32_1 = arith.constant 0 : i32
    return %arg0, %c0_i32, %c0_i32_0 : i32, i32, i32
  }
  func.func @transform_28(%arg0: i32) -> (i32, i32, i32) {
    %c0_i32 = arith.constant 0 : i32
    %c0_i32_0 = arith.constant 0 : i32
    %c0_i32_1 = arith.constant 0 : i32
    return %arg0, %c0_i32, %c0_i32_0 : i32, i32, i32
  }
  func.func @transform_29(%arg0: i32) -> (i32, i32, i32) {
    %c0_i32 = arith.constant 0 : i32
    %c0_i32_0 = arith.constant 0 : i32
    %c0_i32_1 = arith.constant 0 : i32
    return %arg0, %c0_i32, %c0_i32_0 : i32, i32, i32
  }
  func.func @transform_30(%arg0: i32) -> (i32, i32, i32) {
    %c0_i32 = arith.constant 0 : i32
    %c0_i32_0 = arith.constant 0 : i32
    %c0_i32_1 = arith.constant 0 : i32
    return %arg0, %c0_i32, %c0_i32_0 : i32, i32, i32
  }
  func.func @transform_31(%arg0: i32) -> (i32, i32, i32) {
    %c0_i32 = arith.constant 0 : i32
    %c0_i32_0 = arith.constant 0 : i32
    %c0_i32_1 = arith.constant 0 : i32
    return %arg0, %c0_i32, %c0_i32_0 : i32, i32, i32
  }
  func.func @transform_32(%arg0: i32) -> (i32, i32) {
    %c0_i32 = arith.constant 0 : i32
    %c0_i32_0 = arith.constant 0 : i32
    %c0_i32_1 = arith.constant 0 : i32
    return %c0_i32, %c0_i32_0 : i32, i32
  }
}

</mosaic_0001>

<bundles_post_ra>
// kernel: gps_forward.1
= control target key start
LH: loop header
LB: loop body
LE: loop exit
PB: predicated region body
PF: predicated region fallthrough
CT: control target
= control target key end

     0   :  { %s5390_s6 = smov 1   ;;  %s5391_s10 = smov 2   ;;  %s6404_s0 = inlined_call_operand.smem [shape: u32[33], index: -1, kind: input, shape index: {}] }
   0x1   :  { %s5470_s5 = sld [smem:[%s6404_s0]]   ;;  %s5392_s14 = smov 3  }
   0x2   :  { %s5475_s9 = sld [smem:[%s6404_s0 + %s5390_s6]]   ;;  %s5393_s18 = smov 4  }
   0x3   :  { %s5480_s13 = sld [smem:[%s6404_s0 + %s5391_s10]]   ;;  %s5394_s22 = smov 5  }
   0x4   :  { %s5485_s17 = sld [smem:[%s6404_s0 + %s5392_s14]]   ;;  %s5395_s26 = smov 6  }
   0x5   :  { %s5490_s21 = sld [smem:[%s6404_s0 + %s5393_s18]]   ;;  %s5396_s30 = smov 7  }
   0x6   :  { %s5495_s25 = sld [smem:[%s6404_s0 + %s5394_s22]]   ;;  %s5397_s4 = smov 8  }
   0x7   :  { %6434 = sst [smem:[#allocation37_spill]] %s5470_s5  ;;  %s5398_s10 = smov 9  }
   0x8   :  { %6435 = sst [smem:[#allocation38_spill]] %s5475_s9  ;;  %s5399_s15 = smov 10  }
   0x9   :  { %6436 = sst [smem:[#allocation39_spill]] %s5480_s13  ;;  %s5400_s20 = smov 11  }
   0xa   :  { %6437 = sst [smem:[#allocation40_spill]] %s5485_s17  ;;  %s5402_s1 = smov 13  }
   0xb   :  { %6438 = sst [smem:[#allocation41_spill]] %s5490_s21  ;;  %s5403_s7 = smov 14  }
   0xc   :  { %6439 = sst [smem:[#allocation42_spill]] %s5495_s25  ;;  %s5405_s22 = smov 16  }
   0xd   :  { %s5500_s29 = sld [smem:[%s6404_s0 + %s5395_s26]]   ;;  %s5401_s26 = smov 12  }
   0xe   :  { %s5505_s3 = sld [smem:[%s6404_s0 + %s5396_s30]]   ;;  %s5406_s28 = smov 17  }
   0xf   :  { %s5510_s8 = sld [smem:[%s6404_s0 + %s5397_s4]]  }
  0x10   :  { %s5515_s14 = sld [smem:[%s6404_s0 + %s5398_s10]]  }
  0x11   :  { %s5520_s19 = sld [smem:[%s6404_s0 + %s5399_s15]]   ;;  %s5404_s15 = smov 15  }
  0x12   :  { %s5525_s24 = sld [smem:[%s6404_s0 + %s5400_s20]]  }
  0x13   :  { %6440 = sst [smem:[#allocation43_spill]] %s5500_s29 }
  0x14   :  { %6441 = sst [smem:[#allocation44_spill]] %s5505_s3 }
  0x15   :  { %6442 = sst [smem:[#allocation45_spill]] %s5510_s8 }
  0x16   :  { %6443 = sst [smem:[#allocation46_spill]] %s5515_s14 }
  0x17   :  { %6444 = sst [smem:[#allocation47_spill]] %s5520_s19 }
  0x18   :  { %6445 = sst [smem:[#allocation48_spill]] %s5525_s24 }
  0x19   :  { %s5530_s30 = sld [smem:[%s6404_s0 + %s5401_s26]]  }
  0x1a   :  { %s5535_s6 = sld [smem:[%s6404_s0 + %s5402_s1]]  }
  0x1b   :  { %s5540_s12 = sld [smem:[%s6404_s0 + %s5403_s7]]   ;;  %s5407_s7 = smov 18  }
  0x1c   :  { %s5545_s20 = sld [smem:[%s6404_s0 + %s5404_s15]]   ;;  %s5408_s15 = smov 19  }
  0x1d   :  { %s5550_s27 = sld [smem:[%s6404_s0 + %s5405_s22]]   ;;  %s5409_s22 = smov 20  }
  0x1e   :  { %s5555_s4 = sld [smem:[%s6404_s0 + %s5406_s28]]   ;;  %s5410_s28 = smov 21  }
  0x1f   :  { %6446 = sst [smem:[#allocation49_spill]] %s5530_s30 }
  0x20   :  { %s5560_s8 = sld [smem:[%s6404_s0 + %s5407_s7]]   ;;  %s5411_s7 = smov 22  }
  0x21   :  { %6447 = sst [smem:[#allocation50_spill]] %s5540_s12 }
  0x22   :  { %6448 = sst [smem:[#allocation51_spill]] %s5545_s20 }
  0x23   :  { %6449 = sst [smem:[#allocation52_spill]] %s5550_s27 }
  0x24   :  { %s5565_s19 = sld [smem:[%s6404_s0 + %s5408_s15]]   ;;  %s5412_s15 = smov 23  }
  0x25   :  { %s5570_s17 = sld [smem:[%s6404_s0 + %s5409_s22]]   ;;  %s5413_s22 = smov 24  }
  0x26   :  { %6450 = sst [smem:[#allocation53_spill]] %s5560_s8 }
  0x27   :  { %s5575_s25 = sld [smem:[%s6404_s0 + %s5410_s28]]   ;;  %s5414_s28 = smov 25  }
  0x28   :  { %s5580_s30 = sld [smem:[%s6404_s0 + %s5411_s7]]   ;;  %s5415_s7 = smov 26  }
  0x29   :  { %s5585_s24 = sld [smem:[%s6404_s0 + %s5412_s15]]   ;;  %s5416_s15 = smov 27  }
  0x2a   :  { %s5590_s13 = sld [smem:[%s6404_s0 + %s5413_s22]]   ;;  %s5417_s22 = smov 28  }
  0x2b   :  { %6451 = sst [smem:[#allocation54_spill]] %s5570_s17 }
  0x2c   :  { %s5595_s21 = sld [smem:[%s6404_s0 + %s5414_s28]]   ;;  %s5418_s28 = smov 29  }
  0x2d   :  { %s5600_s29 = sld [smem:[%s6404_s0 + %s5415_s7]]   ;;  %s5419_s7 = smov 30  }
  0x2e   :  { %s5605_s5 = sld [smem:[%s6404_s0 + %s5416_s15]]   ;;  %s5420_s15 = smov 31  }
  0x2f   :  { %s5610_s3 = sld [smem:[%s6404_s0 + %s5417_s22]]   ;;  %s5421_s22 = smov 32  }
  0x30   :  { %s5615_s9 = sld [smem:[%s6404_s0 + %s5418_s28]]  }
  0x31   :  { %s5620_s14 = sld [smem:[%s6404_s0 + %s5419_s7]]  }
  0x32   :  { %s5625_s17 = sld [smem:[%s6404_s0 + %s5420_s15]]  }
  0x33   :  { %s5630_s8 = sld [smem:[%s6404_s0 + %s5421_s22]]  }
  0x34   :  { %6452 = sst [smem:[#allocation55_spill]] %s5605_s5 }
  0x35   :  { %6453 = sst [smem:[#allocation56_spill]] %s5610_s3 }
  0x36   :  { %6454 = sst [smem:[#allocation57_spill]] %s5615_s9 }
  0x37   :  { %6455 = sst [smem:[#allocation58_spill]] %s5620_s14 }
  0x39   :  { %6456 = sst [smem:[#allocation59_spill]] %s5630_s8 }
  0x3a   :  { %70 = vsyncpa [#allocation8], 0 }
  0x3b   :  { %71 = vsyncpa [#allocation11], 0 }
  0x3c   :  { %73 = vsyncpa [#allocation11 + $0x1], 0 }
  0x3d   :  { %74 = vsyncpa [#allocation14], 0 }
  0x3e   :  { %76 = vsyncpa [#allocation14 + $0x1], 0 }
  0x3f   :  { %77 = vsyncpa [#allocation17], 0 }
  0x40   :  { %79 = vsyncpa [#allocation17 + $0x1], 0 }
  0x41   :  { %80 = vsyncpa [#allocation20], 0 }
  0x42   :  { %82 = vsyncpa [#allocation20 + $0x1], 0 }
  0x43   :  { %83 = vsyncpa [#allocation23], 0 }
  0x44   :  { %85 = vsyncpa [#allocation23 + $0x1], 0 }
  0x45   :  { %86 = vsyncpa [#allocation26], 0 }
  0x46   :  { %88 = vsyncpa [#allocation26 + $0x1], 0 }
  0x47   :  { %89 = vsyncpa [#allocation9], 0  ;;  %s5632_s28 = smov 0   ;;  %s5634_s1 = smov 0  }
  0x48   :  { %s5636_s0 = smov 0   ;;  %s5638_s2 = smov 0  }
  0x49 LB: > { %s6457_s3 = sld [smem:[#allocation56_spill]]  ;;  %s6458_s9 = sld [smem:[#allocation57_spill]]  ;;  %s5388_s2 = sphi %s5638_s2, %s6531_s2   ;;  %s5384_s0 = sphi %s5636_s0, %s6533_s0   ;;  %s5380_s1 = sphi %s5634_s1, %s6535_s1   ;;  %s5376_s28 = sphi %s5632_s28, %s6534_s28  }
  0x4a   : > { %s6459_s5 = sld [smem:[#allocation55_spill]]  ;;  %s6460_s20 = sld [smem:[#allocation51_spill]] }
  0x4b   : > { %6461 = sst [smem:[#allocation60_spill]] %s5384_s0  ;;  %s5653_s7 = sadd.s32 1, %s5388_s2  }
  0x4c   : > { %6462 = sst [smem:[#allocation61_spill]] %s5653_s7  ;;  %s422_s10 = sadd.s32 1, %s5384_s0 }
  0x4d   : > { %s419_s11 = ssub.s32 %s5388_s2, %s5653_s7  ;;  %p429_p0 = scmp.ne.s32.totalorder %s5384_s0, %s5380_s1 }
  0x4e   : > { %p420_p1 = scmp.eq.s32.totalorder %s419_s11, 0  ;;  %p430_p2 = scmp.eq.s32.totalorder %s5388_s2, 0 }
  0x4f   : > { %p4701_p3 = scmp.lt.s32.totalorder %s5388_s2, 2  ;;  %s5666_s16 = sand.u32 1, %s5388_s2  }
  0x50   : > { %s5663_s15 = scalar_select %p420_p1, %s5384_s0, %s422_s10  }
  0x51   : > { %p431_p4 = por %p430_p2, %p429_p0  ;;  %s5669_s18 = sand.u32 1, %s5384_s0  }
  0x52   : > { %6463 = sst [smem:[#allocation62_spill]] %s5663_s15  ;;  %s5672_s22 = sshll.u32 %s5388_s2, 4 }
  0x53   : > { %s5676_s23 = scalar_lea.hbm %s6460_s20, %s5672_s22  ;;  %s957_s26 = scalar_lea.vmem [#allocation10], %s5669_s18 }
  0x54   : > { %s964_s10 = sshll.u32 %s957_s26, 4  ;;  %p5681_p5 = pnand %p4701_p3, %p431_p4  ;;  %s5679_s10 = int_to_ptr.vmem [resolvable:$true] %s964_s10 }
  0x55   : > { %s5687_s15 = scalar_lea.hbm %s5565_s19, %s5672_s22  ;;  %s4912_s7 = scalar_lea.hbm %s5676_s23, 16 }
  0x56   : > { %s6464_s11 = scalar_select %p5681_p5, 1, 0 }
  0x57   : > { %p4913_p6 = scmp.ne.s32.totalorder %s5676_s23, %s4912_s7  ;;  %p5694_p7 = pneg %p5681_p5 }
  0x58   : > { %s4917_s26 = scalar_lea.hbm %s6460_s20, 32  ;;  %p4918_p10 = scmp.lt.u32.totalorder %s5676_s23, %s6460_s20 }
  0x59   : > { %s6465_s8 = scalar_select %p5694_p7, 1, 0 }
  0x5a   : > { %p4915_p8 = pnand %p5694_p7, %p4913_p6  ;;  %p4919_p11 = scmp.lt.u32.totalorder %s4917_s26, %s4912_s7 }
  0x5b   : > { %p4921_p13 = scmp.lt.u32.totalorder %s4912_s7, %s5676_s23 }
  0x5c   : > { %p4916_p9 = pneg %p4915_p8  ;;  %p4920_p12 = por %p4919_p11, %p4918_p10 }
  0x5e   : > { %p4922_p0 = por %p4921_p13, %p4920_p12 }
  0x60   : > { %p4923_p1 = pnand %p4922_p0, %p4916_p9 }
  0x62   : > { %4926 = shalt.err (!%p4923_p1)
}
  0x63   : > { %s4927_s0 = scalar_lea.vmem %s5679_s10, 16  ;;  %s5422_s14 = smov [#allocation10]  }
  0x64   : > { %p4928_p2 = scmp.ne.s32.totalorder %s5679_s10, %s4927_s0  ;;  %s4932_s27 = sshll.u32 %s5422_s14, 4  ;;  %s4933_s27 = int_to_ptr.vmem [resolvable:$false] %s4932_s27 }
  0x65   : > { %s4934_s12 = scalar_lea.vmem %s4933_s27, 32  ;;  %p4935_p6 = scmp.lt.s32.totalorder %s5679_s10, %s4933_s27 }
  0x66   : > { %p4930_p3 = pnand %p4928_p2, %p5694_p7  ;;  %p4936_p8 = scmp.lt.s32.totalorder %s4934_s12, %s4927_s0 }
  0x68   : > { %p4931_p4 = pneg %p4930_p3  ;;  %p4937_p10 = por %p4936_p8, %p4935_p6 }
  0x6a   : > { %p4938_p11 = pnand %p4937_p10, %p4931_p4 }
  0x6c   : > { %4941 = shalt.err (!%p4938_p11)
}
  0x6d   : > { %s6466_s7 = scalar_lea.sflag [#allocation11], %s5666_s16  ;;  %s1007_s14 = scalar_lea.vmem [#allocation13], %s5669_s18 }
  0x6e   : > { %4666 = dma.hbm_to_vmem [thread:$0]  (!%p5681_p5), %s5676_s23, 16, %s5679_s10, %s6466_s7  }
  0x6f   : > { %s1014_s12 = sshll.u32 %s1007_s14, 4  ;;  %s6427_s27 = scalar_lea.sflag [#allocation14], %s5666_s16  ;;  %s1015_s12 = int_to_ptr.vmem [resolvable:$true] %s1014_s12 }
  0x70   : > { %s4942_s0 = scalar_lea.hbm %s5687_s15, 16  ;;  %s4947_s26 = scalar_lea.hbm %s5565_s19, 32 }
  0x71   : > { %p4943_p9 = scmp.ne.s32.totalorder %s5687_s15, %s4942_s0  ;;  %p4948_p0 = scmp.lt.u32.totalorder %s5687_s15, %s5565_s19 }
  0x72   : > { %p4949_p1 = scmp.lt.u32.totalorder %s4947_s26, %s4942_s0  ;;  %p4951_p3 = scmp.lt.u32.totalorder %s4942_s0, %s5687_s15 }
  0x73   : > { %p4945_p12 = pnand %p4943_p9, %p5694_p7 }
  0x74   : > { %p4950_p2 = por %p4949_p1, %p4948_p0 }
  0x75   : > { %p4946_p13 = pneg %p4945_p12 }
  0x76   : > { %p4952_p4 = por %p4951_p3, %p4950_p2 }
  0x78   : > { %p4953_p6 = pnand %p4952_p4, %p4946_p13 }
  0x7a   : > { %4956 = shalt.err (!%p4953_p6)
}
  0x7b   : > { %s4957_s20 = scalar_lea.vmem %s1015_s12, 16  ;;  %s5423_s23 = smov [#allocation13]  }
  0x7c   : > { %p4958_p8 = scmp.ne.s32.totalorder %s1015_s12, %s4957_s20  ;;  %s4962_s10 = sshll.u32 %s5423_s23, 4  ;;  %s4963_s10 = int_to_ptr.vmem [resolvable:$false] %s4962_s10 }
  0x7d   : > { %s4964_s7 = scalar_lea.vmem %s4963_s10, 32  ;;  %p4965_p9 = scmp.lt.s32.totalorder %s1015_s12, %s4963_s10 }
  0x7e   : > { %p4960_p10 = pnand %p4958_p8, %p5694_p7  ;;  %p4966_p12 = scmp.lt.s32.totalorder %s4964_s7, %s4957_s20 }
  0x80   : > { %p4961_p11 = pneg %p4960_p10  ;;  %p4967_p5 = por %p4966_p12, %p4965_p9 }
  0x82   : > { %p4968_p0 = pnand %p4967_p5, %p4961_p11 }
  0x84   : > { %4971 = shalt.err (!%p4968_p0)
}
  0x85   : > { %p6467_p1 = scmp.ne.s32.totalorder %s6464_s11, 0  ;;  %s5734_s14 = scalar_lea.hbm %s5580_s30, %s5672_s22 }
  0x86   : > { %s1049_s20 = scalar_lea.vmem [#allocation16], %s5669_s18  ;;  %s6419_s26 = scalar_lea.sflag [#allocation17], %s5666_s16 }
  0x87   : > { %4672 = dma.hbm_to_vmem [thread:$0]  (!%p6467_p1), %s5687_s15, 16, %s1015_s12, %s6427_s27  }
  0x88   : > { %s1056_s0 = sshll.u32 %s1049_s20, 4  ;;  %s4972_s23 = scalar_lea.hbm %s5734_s14, 16  ;;  %s1057_s0 = int_to_ptr.vmem [resolvable:$true] %s1056_s0 }
  0x89   : > { %p4973_p5 = scmp.ne.s32.totalorder %s5734_s14, %s4972_s23  ;;  %s4977_s10 = scalar_lea.hbm %s5580_s30, 32 }
  0x8a   : > { %p4978_p3 = scmp.lt.u32.totalorder %s5734_s14, %s5580_s30  ;;  %p4979_p4 = scmp.lt.u32.totalorder %s4977_s10, %s4972_s23 }
  0x8b   : > { %p4975_p13 = pnand %p4973_p5, %p5694_p7  ;;  %p4981_p8 = scmp.lt.u32.totalorder %s4972_s23, %s5734_s14 }
  0x8c   : > { %p4980_p6 = por %p4979_p4, %p4978_p3 }
  0x8d   : > { %p4976_p2 = pneg %p4975_p13 }
  0x8e   : > { %p4982_p10 = por %p4981_p8, %p4980_p6 }
  0x90   : > { %p4983_p11 = pnand %p4982_p10, %p4976_p2 }
  0x92   : > { %4986 = shalt.err (!%p4983_p11)
}
  0x93   : > { %s4987_s15 = scalar_lea.vmem %s1057_s0, 16  ;;  %s5424_s12 = smov [#allocation16]  }
  0x94   : > { %p4988_p9 = scmp.ne.s32.totalorder %s1057_s0, %s4987_s15  ;;  %s4992_s7 = sshll.u32 %s5424_s12, 4  ;;  %s4993_s7 = int_to_ptr.vmem [resolvable:$false] %s4992_s7 }
  0x95   : > { %s4994_s20 = scalar_lea.vmem %s4993_s7, 32  ;;  %p4995_p5 = scmp.lt.s32.totalorder %s1057_s0, %s4993_s7 }
  0x96   : > { %p4990_p12 = pnand %p4988_p9, %p5694_p7  ;;  %p4996_p13 = scmp.lt.s32.totalorder %s4994_s20, %s4987_s15 }
  0x98   : > { %p4991_p0 = pneg %p4990_p12  ;;  %p4997_p1 = por %p4996_p13, %p4995_p5 }
  0x9a   : > { %p4998_p3 = pnand %p4997_p1, %p4991_p0 }
  0x9c   : > { %5001 = shalt.err (!%p4998_p3)
}
  0x9d   : > { %p6468_p4 = scmp.ne.s32.totalorder %s6464_s11, 0  ;;  %s5755_s23 = scalar_lea.hbm %s5590_s13, %s5672_s22 }
  0x9e   : > { %s1083_s10 = scalar_lea.vmem [#allocation19], %s5669_s18  ;;  %s6420_s12 = scalar_lea.sflag [#allocation20], %s5666_s16 }
  0x9f   : > { %4678 = dma.hbm_to_vmem [thread:$0]  (!%p6468_p4), %s5734_s14, 16, %s1057_s0, %s6419_s26  }
  0xa0   : > { %s1090_s15 = sshll.u32 %s1083_s10, 4  ;;  %s5002_s7 = scalar_lea.hbm %s5755_s23, 16  ;;  %s1091_s15 = int_to_ptr.vmem [resolvable:$true] %s1090_s15 }
  0xa1   : > { %p5003_p1 = scmp.ne.s32.totalorder %s5755_s23, %s5002_s7  ;;  %s5007_s20 = scalar_lea.hbm %s5590_s13, 32 }
  0xa2   : > { %p5008_p8 = scmp.lt.u32.totalorder %s5755_s23, %s5590_s13  ;;  %p5009_p10 = scmp.lt.u32.totalorder %s5007_s20, %s5002_s7 }
  0xa3   : > { %p5005_p2 = pnand %p5003_p1, %p5694_p7  ;;  %p5011_p9 = scmp.lt.u32.totalorder %s5002_s7, %s5755_s23 }
  0xa4   : > { %p5010_p11 = por %p5009_p10, %p5008_p8 }
  0xa5   : > { %p5006_p6 = pneg %p5005_p2 }
  0xa6   : > { %p5012_p12 = por %p5011_p9, %p5010_p11 }
  0xa8   : > { %p5013_p0 = pnand %p5012_p12, %p5006_p6 }
  0xaa   : > { %5016 = shalt.err (!%p5013_p0)
}
  0xab   : > { %s5017_s14 = scalar_lea.vmem %s1091_s15, 16  ;;  %s5425_s0 = smov [#allocation19]  }
  0xac   : > { %p5018_p5 = scmp.ne.s32.totalorder %s1091_s15, %s5017_s14  ;;  %s5022_s10 = sshll.u32 %s5425_s0, 4  ;;  %s5023_s10 = int_to_ptr.vmem [resolvable:$false] %s5022_s10 }
  0xad   : > { %s5024_s26 = scalar_lea.vmem %s5023_s10, 32  ;;  %p5025_p1 = scmp.lt.s32.totalorder %s1091_s15, %s5023_s10 }
  0xae   : > { %p5020_p13 = pnand %p5018_p5, %p5694_p7  ;;  %p5026_p2 = scmp.lt.s32.totalorder %s5024_s26, %s5017_s14 }
  0xb0   : > { %p5021_p3 = pneg %p5020_p13  ;;  %p5027_p4 = por %p5026_p2, %p5025_p1 }
  0xb2   : > { %p5028_p8 = pnand %p5027_p4, %p5021_p3 }
  0xb4   : > { %5031 = shalt.err (!%p5028_p8)
}
  0xb5   : > { %p6469_p10 = scmp.ne.s32.totalorder %s6464_s11, 0  ;;  %s5776_s7 = scalar_lea.hbm %s6459_s5, %s5672_s22 }
  0xb6   : > { %s1123_s26 = scalar_lea.vmem [#allocation22], %s5669_s18  ;;  %s6421_s14 = scalar_lea.sflag [#allocation23], %s5666_s16 }
  0xb7   : > { %4684 = dma.hbm_to_vmem [thread:$0]  (!%p6469_p10), %s5755_s23, 16, %s1091_s15, %s6420_s12  }
  0xb8   : > { %s1130_s20 = sshll.u32 %s1123_s26, 4  ;;  %s5032_s0 = scalar_lea.hbm %s5776_s7, 16  ;;  %s1131_s20 = int_to_ptr.vmem [resolvable:$true] %s1130_s20 }
  0xb9   : > { %p5033_p4 = scmp.ne.s32.totalorder %s5776_s7, %s5032_s0  ;;  %s5037_s10 = scalar_lea.hbm %s6459_s5, 32 }
  0xba   : > { %p5038_p9 = scmp.lt.u32.totalorder %s5776_s7, %s6459_s5  ;;  %p5039_p12 = scmp.lt.u32.totalorder %s5037_s10, %s5032_s0 }
  0xbb   : > { %p5035_p6 = pnand %p5033_p4, %p5694_p7  ;;  %p5041_p5 = scmp.lt.u32.totalorder %s5032_s0, %s5776_s7 }
  0xbc   : > { %p5040_p0 = por %p5039_p12, %p5038_p9 }
  0xbd   : > { %p5036_p11 = pneg %p5035_p6 }
  0xbe   : > { %p5042_p13 = por %p5041_p5, %p5040_p0 }
  0xc0   : > { %p5043_p3 = pnand %p5042_p13, %p5036_p11 }
  0xc2   : > { %5046 = shalt.err (!%p5043_p3)
}
  0xc3   : > { %s5047_s23 = scalar_lea.vmem %s1131_s20, 16  ;;  %s5426_s15 = smov [#allocation22]  }
  0xc4   : > { %p5048_p1 = scmp.ne.s32.totalorder %s1131_s20, %s5047_s23  ;;  %s5052_s26 = sshll.u32 %s5426_s15, 4  ;;  %s5053_s26 = int_to_ptr.vmem [resolvable:$false] %s5052_s26 }
  0xc5   : > { %s5054_s12 = scalar_lea.vmem %s5053_s26, 32  ;;  %p5055_p4 = scmp.lt.s32.totalorder %s1131_s20, %s5053_s26 }
  0xc6   : > { %p5050_p2 = pnand %p5048_p1, %p5694_p7  ;;  %p5056_p6 = scmp.lt.s32.totalorder %s5054_s12, %s5047_s23 }
  0xc8   : > { %p5051_p8 = pneg %p5050_p2  ;;  %p5057_p10 = por %p5056_p6, %p5055_p4 }
  0xca   : > { %p5058_p9 = pnand %p5057_p10, %p5051_p8 }
  0xcc   : > { %5061 = shalt.err (!%p5058_p9)
}
  0xcd   : > { %p6470_p12 = scmp.ne.s32.totalorder %s6464_s11, 0  ;;  %s5797_s0 = scalar_lea.hbm %s6458_s9, %s5672_s22 }
  0xce   : > { %s1161_s12 = scalar_lea.vmem [#allocation25], %s5669_s18  ;;  %s6422_s23 = scalar_lea.sflag [#allocation26], %s5666_s16 }
  0xcf   : > { %4690 = dma.hbm_to_vmem [thread:$0]  (!%p6470_p12), %s5776_s7, 16, %s1131_s20, %s6421_s14  }
  0xd0   : > { %s1168_s10 = sshll.u32 %s1161_s12, 4  ;;  %s5062_s15 = scalar_lea.hbm %s5797_s0, 16  ;;  %s1169_s10 = int_to_ptr.vmem [resolvable:$true] %s1168_s10 }
  0xd1   : > { %p5063_p10 = scmp.ne.s32.totalorder %s5797_s0, %s5062_s15  ;;  %s5067_s26 = scalar_lea.hbm %s6458_s9, 32 }
  0xd2   : > { %p5068_p5 = scmp.lt.u32.totalorder %s5797_s0, %s6458_s9  ;;  %p5069_p13 = scmp.lt.u32.totalorder %s5067_s26, %s5062_s15 }
  0xd3   : > { %p5065_p11 = pnand %p5063_p10, %p5694_p7  ;;  %p5071_p1 = scmp.lt.u32.totalorder %s5062_s15, %s5797_s0 }
  0xd4   : > { %p5070_p3 = por %p5069_p13, %p5068_p5 }
  0xd5   : > { %p5066_p0 = pneg %p5065_p11 }
  0xd6   : > { %p5072_p2 = por %p5071_p1, %p5070_p3 }
  0xd8   : > { %p5073_p8 = pnand %p5072_p2, %p5066_p0 }
  0xda   : > { %5076 = shalt.err (!%p5073_p8)
}
  0xdb   : > { %s5077_s7 = scalar_lea.vmem %s1169_s10, 16  ;;  %s5427_s20 = smov [#allocation25]  }
  0xdc   : > { %p5078_p4 = scmp.ne.s32.totalorder %s1169_s10, %s5077_s7  ;;  %s5082_s12 = sshll.u32 %s5427_s20, 4  ;;  %s5083_s12 = int_to_ptr.vmem [resolvable:$false] %s5082_s12 }
  0xdd   : > { %s5084_s14 = scalar_lea.vmem %s5083_s12, 32  ;;  %p5085_p10 = scmp.lt.s32.totalorder %s1169_s10, %s5083_s12 }
  0xde   : > { %p5080_p6 = pnand %p5078_p4, %p5694_p7  ;;  %p5086_p11 = scmp.lt.s32.totalorder %s5084_s14, %s5077_s7 }
  0xe0   : > { %p5081_p9 = pneg %p5080_p6  ;;  %p5087_p12 = por %p5086_p11, %p5085_p10 }
  0xe2   : > { %p5088_p5 = pnand %p5087_p12, %p5081_p9 }
  0xe4   : > { %5091 = shalt.err (!%p5088_p5)
}
  0xe5   : > { %p6471_p13 = scmp.ne.s32.totalorder %s6464_s11, 0  ;;  %s5817_s15 = sadd.s32 4294967295, %s5388_s2  }
  0xe6   : > { %p435_p12 = scmp.ne.s32.totalorder %s5380_s1, %s5376_s28  ;;  %p6425_p0 = scmp.eq.s32.totalorder %s5817_s15, 0 }
  0xe7   : > { %4696 = dma.hbm_to_vmem [thread:$0]  (!%p6471_p13), %s5797_s0, 16, %s1169_s10, %s6422_s23  }
  0xe8   : > { %p4115_p3 = scmp.ge.s32.totalorder %s5388_s2, 1  ;;  %p883_p1 = scmp.lt.s32.totalorder %s5388_s2, 3 }
  0xe9   : > { %p5827_p8 = por %p6425_p0, %p435_p12  ;;  %s5428_s10 = smov [#allocation7]  }
  0xea   : > { %p5831_p4 = pnand %p4115_p3, %p883_p1  ;;  %s935_s26 = sshll.u32 %s5428_s10, 4  ;;  %s5835_s26 = int_to_ptr.vmem [resolvable:$true] %s935_s26 }
  0xeb   : > { %s6472_s14 = scalar_select %p5827_p8, 1, 0 }
  0xec   : > { %s6473_s0 = scalar_select %p5831_p4, 1, 0 }
  0xed   : > { %p4659_p6 = pneg %p5831_p4  ;;  %s5841_s28 = scalar_lea.hbm %s5555_s4, %s5672_s22 }
  0xee   : > { %s982_s7 = scalar_lea.vmem [#allocation12], %s5669_s18  ;;  %s5092_s23 = scalar_lea.hbm %s5841_s28, 16 }
  0xef   : > { %s989_s20 = sshll.u32 %s982_s7, 4  ;;  %p5846_p9 = pnand %p4659_p6, %p6425_p0  ;;  %s990_s20 = int_to_ptr.vmem [resolvable:$true] %s989_s20 }
  0xf0   : > { %p5093_p10 = scmp.ne.s32.totalorder %s5841_s28, %s5092_s23  ;;  %s5097_s10 = scalar_lea.hbm %s5555_s4, 32 }
  0xf1   : > { %s6474_s12 = scalar_select %p5846_p9, 1, 0 }
  0xf2   : > { %p5095_p11 = pnand %p5093_p10, %p5694_p7  ;;  %p5098_p12 = scmp.lt.u32.totalorder %s5841_s28, %s5555_s4 }
  0xf3   : > { %p5099_p3 = scmp.lt.u32.totalorder %s5097_s10, %s5092_s23  ;;  %p5101_p2 = scmp.lt.u32.totalorder %s5092_s23, %s5841_s28 }
  0xf4   : > { %p5096_p5 = pneg %p5095_p11 }
  0xf5   : > { %p5100_p1 = por %p5099_p3, %p5098_p12 }
  0xf7   : > { %p5102_p8 = por %p5101_p2, %p5100_p1 }
  0xf9   : > { %p5103_p4 = pnand %p5102_p8, %p5096_p5 }
  0xfb   : > { %5106 = shalt.err (!%p5103_p4)
}
  0xfc   : > { %s5107_s7 = scalar_lea.vmem %s990_s20, 16  ;;  %s5429_s27 = smov [#allocation12]  }
  0xfd   : > { %p5108_p6 = scmp.ne.s32.totalorder %s990_s20, %s5107_s7  ;;  %s5112_s5 = sshll.u32 %s5429_s27, 4  ;;  %s5113_s5 = int_to_ptr.vmem [resolvable:$false] %s5112_s5 }
  0xfe   : > { %s5114_s9 = scalar_lea.vmem %s5113_s5, 32  ;;  %p5115_p10 = scmp.lt.s32.totalorder %s990_s20, %s5113_s5 }
  0xff   : > { %p5110_p0 = pnand %p5108_p6, %p5694_p7  ;;  %p5116_p11 = scmp.lt.s32.totalorder %s5114_s9, %s5107_s7 }
 0x101   : > { %p5111_p9 = pneg %p5110_p0  ;;  %p5117_p13 = por %p5116_p11, %p5115_p10 }
 0x103   : > { %p5118_p3 = pnand %p5117_p13, %p5111_p9 }
 0x105   : > { %5121 = shalt.err (!%p5118_p3)
}
 0x106   : > { %p6475_p12 = scmp.ne.s32.totalorder %s6464_s11, 0  ;;  %s6476_s23 = scalar_lea.sflag [#allocation11], %s5666_s16 }
 0x107   : > { %s5867_s27 = scalar_lea.hbm %s5575_s25, %s5672_s22  ;;  %s5122_s10 = scalar_lea.hbm %s5535_s6, 64 }
 0x108   : > { %4669 = dma.hbm_to_vmem [thread:$0]  (!%p6475_p12), %s5841_s28, 16, %s990_s20, %s6476_s23  }
 0x109   : > { %p5123_p0 = scmp.ne.s32.totalorder %s5535_s6, %s5122_s10  ;;  %p6477_p2 = scmp.ne.s32.totalorder %s6474_s12, 0 }
 0x10a   : > { %p5129_p9 = scmp.lt.u32.totalorder %s5122_s10, %s5535_s6 }
 0x10b   : > { %p5124_p8 = pneg %p6477_p2 }
 0x10d   : > { %p5125_p13 = pnand %p5124_p8, %p5123_p0 }
 0x10f   : > { %p5126_p4 = pneg %p5125_p13 }
 0x111   : > { %p5131_p5 = pnand %p5129_p9, %p5126_p4 }
 0x113   : > { %5134 = shalt.err (!%p5131_p5)
}
 0x114   : > { %s5135_s5 = scalar_lea.vmem %s5835_s26, 64  ;;  %p5143_p11 = scmp.lt.s32.totalorder %s5835_s26, %s5835_s26 }
 0x115   : > { %p5136_p1 = scmp.ne.s32.totalorder %s5835_s26, %s5135_s5  ;;  %p5144_p3 = scmp.lt.s32.totalorder %s5135_s5, %s5135_s5 }
 0x117   : > { %p5138_p6 = pnand %p5136_p1, %p5124_p8  ;;  %p5145_p12 = por %p5144_p3, %p5143_p11 }
 0x119   : > { %p5139_p10 = pneg %p5138_p6 }
 0x11b   : > { %p5146_p7 = pnand %p5145_p12, %p5139_p10 }
 0x11d   : > { %5149 = shalt.err (!%p5146_p7)
}
 0x11e   : > { %4662 = dma.hbm_to_vmem [thread:$0]  (!%p6477_p2), %s5535_s6, 64, %s5835_s26, [#allocation8]  }
 0x11f   : > { %s1032_s9 = scalar_lea.vmem [#allocation15], %s5669_s18  ;;  %s5885_s20 = scalar_lea.hbm %s5585_s24, %s5672_s22 }
 0x120   : > { %s1039_s28 = sshll.u32 %s1032_s9, 4  ;;  %s5150_s7 = scalar_lea.hbm %s5867_s27, 16  ;;  %s1040_s28 = int_to_ptr.vmem [resolvable:$true] %s1039_s28 }
 0x121   : > { %p5151_p7 = scmp.ne.s32.totalorder %s5867_s27, %s5150_s7  ;;  %p6478_p12 = scmp.ne.s32.totalorder %s6465_s8, 0 }
 0x122   : > { %s5155_s12 = scalar_lea.hbm %s5575_s25, 32  ;;  %p5156_p13 = scmp.lt.u32.totalorder %s5867_s27, %s5575_s25 }
 0x123   : > { %p5153_p0 = pnand %p5151_p7, %p6478_p12  ;;  %p5157_p4 = scmp.lt.u32.totalorder %s5155_s12, %s5150_s7 }
 0x124   : > { %p5159_p5 = scmp.lt.u32.totalorder %s5150_s7, %s5867_s27 }
 0x125   : > { %p5154_p8 = pneg %p5153_p0  ;;  %p5158_p9 = por %p5157_p4, %p5156_p13 }
 0x127   : > { %p5160_p1 = por %p5159_p5, %p5158_p9 }
 0x129   : > { %p5161_p6 = pnand %p5160_p1, %p5154_p8 }
 0x12b   : > { %5164 = shalt.err (!%p5161_p6)
}
 0x12c   : > { %s5165_s23 = scalar_lea.vmem %s1040_s28, 16  ;;  %s5430_s26 = smov [#allocation15]  }
 0x12d   : > { %p5166_p2 = scmp.ne.s32.totalorder %s1040_s28, %s5165_s23  ;;  %s5170_s10 = sshll.u32 %s5430_s26, 4  ;;  %s5171_s10 = int_to_ptr.vmem [resolvable:$false] %s5170_s10 }
 0x12e   : > { %s5172_s5 = scalar_lea.vmem %s5171_s10, 32  ;;  %p5173_p3 = scmp.lt.s32.totalorder %s1040_s28, %s5171_s10 }
 0x12f   : > { %p5168_p10 = pnand %p5166_p2, %p6478_p12  ;;  %p5174_p7 = scmp.lt.s32.totalorder %s5172_s5, %s5165_s23 }
 0x131   : > { %p5169_p11 = pneg %p5168_p10  ;;  %p5175_p0 = por %p5174_p7, %p5173_p3 }
 0x133   : > { %p5176_p4 = pnand %p5175_p0, %p5169_p11 }
 0x135   : > { %5179 = shalt.err (!%p5176_p4)
}
 0x136   : > { %p6479_p13 = scmp.ne.s32.totalorder %s6464_s11, 0  ;;  %s6480_s9 = scalar_lea.sflag [#allocation14], %s5666_s16 }
 0x137   : > { %s1066_s7 = scalar_lea.vmem [#allocation18], %s5669_s18  ;;  %s5905_s23 = scalar_lea.hbm %s5595_s21, %s5672_s22 }
 0x138   : > { %4675 = dma.hbm_to_vmem [thread:$0]  (!%p6479_p13), %s5867_s27, 16, %s1040_s28, %s6480_s9  }
 0x139   : > { %s1073_s12 = sshll.u32 %s1066_s7, 4  ;;  %s5180_s26 = scalar_lea.hbm %s5885_s20, 16  ;;  %s1074_s12 = int_to_ptr.vmem [resolvable:$true] %s1073_s12 }
 0x13a   : > { %p5181_p8 = scmp.ne.s32.totalorder %s5885_s20, %s5180_s26  ;;  %s5185_s10 = scalar_lea.hbm %s5585_s24, 32 }
 0x13b   : > { %p5186_p1 = scmp.lt.u32.totalorder %s5885_s20, %s5585_s24  ;;  %p5187_p6 = scmp.lt.u32.totalorder %s5185_s10, %s5180_s26 }
 0x13c   : > { %p5183_p9 = pnand %p5181_p8, %p6478_p12  ;;  %p5189_p10 = scmp.lt.u32.totalorder %s5180_s26, %s5885_s20 }
 0x13d   : > { %p5188_p2 = por %p5187_p6, %p5186_p1 }
 0x13e   : > { %p5184_p5 = pneg %p5183_p9 }
 0x13f   : > { %p5190_p11 = por %p5189_p10, %p5188_p2 }
 0x141   : > { %p5191_p3 = pnand %p5190_p11, %p5184_p5 }
 0x143   : > { %5194 = shalt.err (!%p5191_p3)
}
 0x144   : > { %s5195_s5 = scalar_lea.vmem %s1074_s12, 16  ;;  %s5431_s27 = smov [#allocation18]  }
 0x145   : > { %p5196_p7 = scmp.ne.s32.totalorder %s1074_s12, %s5195_s5  ;;  %s5200_s28 = sshll.u32 %s5431_s27, 4  ;;  %s5201_s28 = int_to_ptr.vmem [resolvable:$false] %s5200_s28 }
 0x146   : > { %s5202_s9 = scalar_lea.vmem %s5201_s28, 32  ;;  %p5203_p8 = scmp.lt.s32.totalorder %s1074_s12, %s5201_s28 }
 0x147   : > { %p5198_p0 = pnand %p5196_p7, %p6478_p12  ;;  %p5204_p9 = scmp.lt.s32.totalorder %s5202_s9, %s5195_s5 }
 0x149   : > { %p5199_p4 = pneg %p5198_p0  ;;  %p5205_p13 = por %p5204_p9, %p5203_p8 }
 0x14b   : > { %p5206_p1 = pnand %p5205_p13, %p5199_p4 }
 0x14d   : > { %5209 = shalt.err (!%p5206_p1)
}
 0x14e   : > { %p6481_p6 = scmp.ne.s32.totalorder %s6464_s11, 0  ;;  %s6482_s7 = scalar_lea.sflag [#allocation17], %s5666_s16 }
 0x14f   : > { %s1100_s26 = scalar_lea.vmem [#allocation21], %s5669_s18  ;;  %s4127_s5 = sshll.u32 %s5669_s18, 5 }
 0x150   : > { %4681 = dma.hbm_to_vmem [thread:$0]  (!%p6481_p6), %s5885_s20, 16, %s1074_s12, %s6482_s7  }
 0x151   : > { %s1107_s10 = sshll.u32 %s1100_s26, 4  ;;  %s5210_s27 = scalar_lea.hbm %s5905_s23, 16  ;;  %s1108_s10 = int_to_ptr.vmem [resolvable:$true] %s1107_s10 }
 0x152   : > { %p5211_p13 = scmp.ne.s32.totalorder %s5905_s23, %s5210_s27  ;;  %s5215_s28 = scalar_lea.hbm %s5595_s21, 32 }
 0x153   : > { %p5216_p10 = scmp.lt.u32.totalorder %s5905_s23, %s5595_s21  ;;  %p5217_p11 = scmp.lt.u32.totalorder %s5215_s28, %s5210_s27 }
 0x154   : > { %p5213_p5 = pnand %p5211_p13, %p6478_p12  ;;  %p5219_p7 = scmp.lt.u32.totalorder %s5210_s27, %s5905_s23 }
 0x155   : > { %p5218_p3 = por %p5217_p11, %p5216_p10 }
 0x156   : > { %p5214_p2 = pneg %p5213_p5 }
 0x157   : > { %p5220_p0 = por %p5219_p7, %p5218_p3 }
 0x159   : > { %p5221_p4 = pnand %p5220_p0, %p5214_p2 }
 0x15b   : > { %5224 = shalt.err (!%p5221_p4)
}
 0x15c   : > { %s5225_s9 = scalar_lea.vmem %s1108_s10, 16  ;;  %s5432_s20 = smov [#allocation21]  }
 0x15d   : > { %p5226_p8 = scmp.ne.s32.totalorder %s1108_s10, %s5225_s9  ;;  %s5230_s12 = sshll.u32 %s5432_s20, 4  ;;  %s5231_s12 = int_to_ptr.vmem [resolvable:$false] %s5230_s12 }
 0x15e   : > { %s5232_s7 = scalar_lea.vmem %s5231_s12, 32  ;;  %p5233_p13 = scmp.lt.s32.totalorder %s1108_s10, %s5231_s12 }
 0x15f   : > { %p5228_p9 = pnand %p5226_p8, %p6478_p12  ;;  %p5234_p5 = scmp.lt.s32.totalorder %s5232_s7, %s5225_s9 }
 0x161   : > { %p5229_p1 = pneg %p5228_p9  ;;  %p5235_p6 = por %p5234_p5, %p5233_p13 }
 0x163   : > { %p5236_p10 = pnand %p5235_p6, %p5229_p1 }
 0x165   : > { %5239 = shalt.err (!%p5236_p10)
}
 0x166   : > { %p6483_p11 = scmp.ne.s32.totalorder %s6464_s11, 0  ;;  %s6484_s26 = scalar_lea.sflag [#allocation20], %s5666_s16 }
 0x167   : > { %s4246_s27 = sshll.u32 %s5388_s2, 9  ;;  %s1141_s28 = scalar_lea.vmem [#allocation24], %s4127_s5 }
 0x168   : > { %4687 = dma.hbm_to_vmem [thread:$0]  (!%p6483_p11), %s5905_s23, 16, %s1108_s10, %s6484_s26  }
 0x169   : > { %s1148_s20 = sshll.u32 %s1141_s28, 4  ;;  %s5943_s9 = scalar_lea.hbm %s6457_s3, %s4246_s27  ;;  %s5945_s20 = int_to_ptr.vmem [resolvable:$true] %s1148_s20 }
 0x16a   : > { %s5240_s12 = scalar_lea.hbm %s5943_s9, 512  ;;  %s5245_s7 = scalar_lea.hbm %s6457_s3, 1024 }
 0x16b   : > { %p5241_p6 = scmp.ne.s32.totalorder %s5943_s9, %s5240_s12  ;;  %p5246_p7 = scmp.lt.u32.totalorder %s5943_s9, %s6457_s3 }
 0x16c   : > { %p5247_p0 = scmp.lt.u32.totalorder %s5245_s7, %s5240_s12  ;;  %p5249_p8 = scmp.lt.u32.totalorder %s5240_s12, %s5943_s9 }
 0x16d   : > { %p5243_p2 = pnand %p5241_p6, %p6478_p12 }
 0x16e   : > { %p5248_p4 = por %p5247_p0, %p5246_p7 }
 0x16f   : > { %p5244_p3 = pneg %p5243_p2 }
 0x170   : > { %p5250_p9 = por %p5249_p8, %p5248_p4 }
 0x172   : > { %p5251_p1 = pnand %p5250_p9, %p5244_p3 }
 0x174   : > { %5254 = shalt.err (!%p5251_p1)
}
 0x175   : > { %s5255_s2 = scalar_lea.vmem %s5945_s20, 512  ;;  %s5433_s23 = smov [#allocation24]  }
 0x176   : > { %p5256_p13 = scmp.ne.s32.totalorder %s5945_s20, %s5255_s2  ;;  %s5260_s10 = sshll.u32 %s5433_s23, 4  ;;  %s5261_s10 = int_to_ptr.vmem [resolvable:$false] %s5260_s10 }
 0x177   : > { %s5262_s5 = scalar_lea.vmem %s5261_s10, 1024  ;;  %p5263_p6 = scmp.lt.s32.totalorder %s5945_s20, %s5261_s10 }
 0x178   : > { %p5258_p5 = pnand %p5256_p13, %p6478_p12  ;;  %p5264_p2 = scmp.lt.s32.totalorder %s5262_s5, %s5255_s2 }
 0x17a   : > { %p5259_p10 = pneg %p5258_p5  ;;  %p5265_p7 = por %p5264_p2, %p5263_p6 }
 0x17c   : > { %p5266_p0 = pnand %p5265_p7, %p5259_p10 }
 0x17e   : > { %5269 = shalt.err (!%p5266_p0)
}
 0x17f   : > { %s5434_s26 = smov 128   ;;  %s5435_s27 = smov 8  }
 0x180   : > { %s6485_s28 = scalar_lea.sflag [#allocation23], %s5666_s16  ;;  %s5968_s12 = scalar_lea.hbm %s5625_s17, %s5672_s22 }
 0x181   : > { %4693 = dma.hbm_to_vmem [thread:$0]  (!%p6483_p11), %s5943_s9, 512, %s5945_s20, %s6485_s28, %s5434_s26, %s5434_s26, %s5435_s27  }
 0x182   : > { %s1186_s7 = scalar_lea.vmem [#allocation27], %s5669_s18  ;;  %s5270_s23 = scalar_lea.hbm %s5968_s12, 16 }
 0x183   : > { %s1193_s2 = sshll.u32 %s1186_s7, 4  ;;  %p5271_p3 = scmp.ne.s32.totalorder %s5968_s12, %s5270_s23  ;;  %s1194_s2 = int_to_ptr.vmem [resolvable:$true] %s1193_s2 }
 0x184   : > { %s5275_s10 = scalar_lea.hbm %s5625_s17, 32  ;;  %p5276_p9 = scmp.lt.u32.totalorder %s5968_s12, %s5625_s17 }
 0x185   : > { %p5273_p4 = pnand %p5271_p3, %p6478_p12  ;;  %p5277_p1 = scmp.lt.u32.totalorder %s5275_s10, %s5270_s23 }
 0x186   : > { %p5279_p5 = scmp.lt.u32.totalorder %s5270_s23, %s5968_s12 }
 0x187   : > { %p5274_p8 = pneg %p5273_p4  ;;  %p5278_p13 = por %p5277_p1, %p5276_p9 }
 0x189   : > { %p5280_p10 = por %p5279_p5, %p5278_p13 }
 0x18b   : > { %p5281_p6 = pnand %p5280_p10, %p5274_p8 }
 0x18d   : > { %5284 = shalt.err (!%p5281_p6)
}
 0x18e   : > { %s5285_s22 = scalar_lea.vmem %s1194_s2, 16  ;;  %s5436_s18 = smov [#allocation27]  }
 0x18f   : > { %p5286_p2 = scmp.ne.s32.totalorder %s1194_s2, %s5285_s22  ;;  %s5290_s20 = sshll.u32 %s5436_s18, 4  ;;  %s5291_s20 = int_to_ptr.vmem [resolvable:$false] %s5290_s20 }
 0x190   : > { %s5292_s9 = scalar_lea.vmem %s5291_s20, 32  ;;  %p5293_p3 = scmp.lt.s32.totalorder %s1194_s2, %s5291_s20 }
 0x191   : > { %p5288_p7 = pnand %p5286_p2, %p6478_p12  ;;  %p5294_p4 = scmp.lt.s32.totalorder %s5292_s9, %s5285_s22 }
 0x193   : > { %p5289_p0 = pneg %p5288_p7  ;;  %p5295_p11 = por %p5294_p4, %p5293_p3 }
 0x195   : > { %p5296_p1 = pnand %p5295_p11, %p5289_p0 }
 0x197   : > { %5299 = shalt.err (!%p5296_p1)
}
 0x198   : > { %p6486_p9 = scmp.ne.s32.totalorder %s6464_s11, 0  ;;  %s6487_s5 = scalar_lea.sflag [#allocation26], %s5666_s16 }
 0x199   : > { %p6488_p8 = scmp.ne.s32.totalorder %s6473_s0, 0 }
 0x19a   : > { %4699 = dma.hbm_to_vmem [thread:$0]  (!%p6486_p9), %s5968_s12, 16, %s1194_s2, %s6487_s5  }
 0x19b   : > { %1202 = sbr.rel (%p6488_p8) target bundleno = 5110 (0x13f6), region = 148  ;;  %p6489_p12 = scmp.eq.s32.totalorder (!%p6488_p8), %s5817_s15, 0 }
 0x1a2   : > { %5343 = dma.done.wait (%p6489_p12), [#allocation8], 64   ;;  %p6490_p13 = pmov %p6489_p12 }
 0x1a3   : > { %s5993_s8 = sand.u32 1, %s5817_s15   ;;  %s5996_s11 = sand.u32 1, %s5380_s1  }
 0x1a4   : > { %5345 = vsyncadd (%p6490_p13), [#allocation8], 4294967232  ;;  %s1209_s16 = scalar_lea.sflag [#allocation11], %s5993_s8  ;;  %p6491_p11 = scmp.ne.s32.totalorder %s6472_s14, 0 }
 0x1a6   : > { %5347 = dma.done.wait (%p6491_p11), %s1209_s16, 32  }
 0x1a7   : > { %5349 = vsyncadd (%p6491_p11), %s1209_s16, 4294967264  ;;  %s1225_s27 = scalar_lea.sflag [#allocation14], %s5993_s8 }
 0x1a8   : > { %5351 = dma.done.wait (%p6491_p11), %s1225_s27, 32  }
 0x1a9   : > { %5353 = vsyncadd (%p6491_p11), %s1225_s27, 4294967264  ;;  %s1241_s7 = scalar_lea.sflag [#allocation17], %s5993_s8 }
 0x1aa   : > { %5355 = dma.done.wait (%p6491_p11), %s1241_s7, 32  }
 0x1ab   : > { %5357 = vsyncadd (%p6491_p11), %s1241_s7, 4294967264  ;;  %s1257_s10 = scalar_lea.sflag [#allocation20], %s5993_s8 }
 0x1ac   : > { %5359 = dma.done.wait (%p6491_p11), %s1257_s10, 32  }
 0x1ad   : > { %5361 = vsyncadd (%p6491_p11), %s1257_s10, 4294967264  ;;  %s1273_s20 = scalar_lea.sflag [#allocation23], %s5993_s8 }
 0x1ae   : > { %5363 = dma.done.wait (%p6491_p11), %s1273_s20, 528  }
 0x1af   : > { %5365 = vsyncadd (%p6491_p11), %s1273_s20, 4294966768  ;;  %s4134_s5 = sshll.u32 %s5996_s11, 5  ;;  %s1290_s27 = scalar_lea.sflag [#allocation26], %s5993_s8 }
 0x1b0   : > { %s6033_s16 = scalar_lea.vmem [#allocation24], %s4134_s5 }
 0x1b1   : > { %5367 = dma.done.wait (%p6491_p11), %s1290_s27, 32  }
 0x1b2   : > { %5369 = vsyncadd (%p6491_p11), %s1290_s27, 4294967264  ;;  %s6492_s10 = sld [smem:[#allocation50_spill]]  ;;  %s6493_s9 = sld [smem:[#allocation52_spill]] }
 0x1b3   : > { %s6494_s20 = sld [smem:[#allocation53_spill]]  ;;  %s6495_s18 = sld [smem:[#allocation54_spill]] }
 0x1b4   : > { %s6496_s23 = sld [smem:[#allocation58_spill]]  ;;  %p1448_p5 = scmp.lt.s32.totalorder %s5817_s15, 1 }
 0x1b5   : > { %s1300_s28 = scalar_lea.vmem [#allocation27], %s5996_s11  ;;  %p6497_p10 = scmp.ne.s32.totalorder %s5817_s15, 0 }
 0x1b6   : > { %s6043_s22 = scalar_select %p1448_p5, %s5817_s15, 1 }
 0x1b7   : > { %1480 = sbr.rel (%p6497_p10) target bundleno = 823 (0x337), region = 204  ;;  %s6498_s26 = sld [smem:[#allocation46_spill]] (!%p6497_p10)  ;;  %vm1485_vm0 = vcmask (!%p6497_p10), 162816   ;;  %vm1646_vm1 = vcmask (!%p6497_p10), 1043456   ;;  %vm1487_vm2 = vcmask (!%p6497_p10), 158720   ;;  %vm1551_vm3 = vcmask (!%p6497_p10), 1040384  }
 0x1b8   : > { %s4247_s8 = sshll.u32 %s6043_s22, 5  ;;  %s4251_s12 = sshll.u32 %s6043_s22, 6  ;;  %vm1544_vm4 = vcmask (!%p6497_p10), 72704   ;;  %vm5437_vm5 = vmmov (!%p6497_p10), 1   ;;  %v5438_v22 = vmov (!%p6497_p10), 0   ;;  %v5439_v27 = vmov (!%p6497_p10), 0.0  }
 0x1b9   : > { %s6049_s7 = scalar_lea.vmem %s6492_s10, %s4247_s8  ;;  %s6052_s14 = scalar_lea.vmem %s6493_s9, %s4247_s8  ;;  %vm6090_vm6 = vmpackc.low (!%p6497_p10), %vm1551_vm3, %vm5437_vm5  ;;  %4797 = vset.pattern.permute.xlu0 (!%p6497_p10), %v5438_v22  ;;  %4808 = vset.pattern.permute.xlu1 (!%p6497_p10), %v5438_v22 }
 0x1ba   : > { %s6055_s27 = scalar_lea.vmem %s6494_s20, %s4247_s8  ;;  %s6058_s2 = scalar_lea.vmem %s6495_s18, %s4247_s8 }
 0x1bb   : > { %s6062_s0 = scalar_lea.vmem %s6496_s23, %s4251_s12  ;;  %s6499_s3 = sld [smem:[#allocation38_spill]] (!%p6497_p10) }
 0x1bc   : > { %s6500_s10 = sld [smem:[#allocation44_spill]] (!%p6497_p10)  ;;  %s6501_s5 = sld [smem:[#allocation37_spill]] (!%p6497_p10) }
 0x1bd   : > { %v1630_v0 = vld [vmem:[%s6498_s26] sm:$0xff] (!%p6497_p10)  ;;  %v1631_v1 = vld [vmem:[%s6498_s26 + $0x8] sm:$0xff] (!%p6497_p10)  ;;  %s6502_s18 = sld [smem:[#allocation43_spill]] (!%p6497_p10)  ;;  %v1632_v5 = vld [vmem:[%s6498_s26 + $0x10] sm:$0xf] (!%p6497_p10)  ;;  %s6505_s12 = sld [smem:[#allocation41_spill]] (!%p6497_p10) }
 0x1be   : > { %v4518_v2 = vpack.c.bf16 %v1631_v1, %v1630_v0  ;;  %s6506_s23 = sld [smem:[#allocation39_spill]]  ;;  %s6507_s9 = sld [smem:[#allocation48_spill]] }
 0x1bf   : > { %s6508_s20 = sld [smem:[#allocation49_spill]]  ;;  %s6509_s8 = sld [smem:[#allocation42_spill]] }
 0x1c0   : > { %4519 = vmatprep.subr.bf16.mxu1 %v4518_v2 }
 0x1c1   : > { %v6070_v3 = vld [vmem:[%s6499_s3] sm:$0xff]  ;;  %v6073_v4 = vld [vmem:[%s6499_s3 + $0x8] sm:$0xf]  ;;  %4521 = vmatpush3.bf16.msra.mxu1 %v4518_v2 }
 0x1c2   : > { %v1486_v6 = vsel %vm1485_vm0, %v6070_v3, 0.0  ;;  %v1488_v7 = vsel %vm1487_vm2, %v6073_v4, 0.0  ;;  %v1496_v8 = vmul.f32 %v6070_v3, %v6070_v3  ;;  %v1497_v9 = vmul.f32 %v6073_v4, %v6073_v4  ;;  %v1535_v10 = vld [vmem:[%s6500_s10] sm:$0xff]  ;;  %v1536_v13 = vld [vmem:[%s6500_s10 + $0x8] sm:$0x1]  ;;  %4357 = vmatprep.subr.msk.mxu1 %vm1646_vm1, %v1632_v5 }
 0x1c3   : > { %v1533_v11 = vld [vmem:[%s6501_s5] sm:$0xff]  ;;  %v1489_v12 = vadd.f32 %v1488_v7, %v1486_v6  ;;  %v4512_v17 = vpack.c.bf16 %v1536_v13, %v1535_v10  ;;  %v1741_v19 = vld [vmem:[%s6502_s18 + $0x8] sm:$0xff]  ;;  %v1742_v23 = vld [vmem:[%s6502_s18 + $0x10] sm:$0xf] }
 0x1c4   : > { %v1740_v14 = vld [vmem:[%s6502_s18] sm:$0xff]  ;;  %v1498_v15 = vsel %vm1485_vm0, %v1496_v8, 0.0  ;;  %v1499_v16 = vsel %vm1487_vm2, %v1497_v9, 0.0  ;;  %4350 = vmatprep.mubr.msk.f32.mxu0 %vm1544_vm4, %v1533_v11  ;;  %vm1745_vm8 = vcmp.eq.s32.totalorder %v1741_v19, 0  ;;  %vm1746_vm9 = vcmp.eq.s32.totalorder %v1742_v23, 0  ;;  %v1886_v60 = vld [vmem:[%s6505_s12 + $0x8] sm:$0xff] }
 0x1c5   : > { %v1490_v20 = vrot.slane %v1489_v12, 4  ;;  %v1500_v21 = vadd.f32 %v1499_v16, %v1498_v15  ;;  %vm1744_vm7 = vcmp.eq.s32.totalorder %v1740_v14, 0  ;;  %4514 = vmatprep.subr.msk.bf16.mxu0 %vm6090_vm6, %v4512_v17  ;;  %vm1778_vm10 = vcmp.eq.s32.totalorder %v1740_v14, 1  ;;  %v1534_v26 = vld [vmem:[%s6501_s5 + $0x8] sm:$0xf]  ;;  %4358 = vmatpush3.msk.msra.mxu1 %vm1646_vm1, %v1632_v5  ;;  %v1885_v58 = vld [vmem:[%s6505_s12] sm:$0xff] }
 0x1c6   : > { %vm1779_vm11 = vcmp.eq.s32.totalorder %v1741_v19, 1  ;;  %4517 = vmatpush3.bf16.msk.msra.mxu0 %vm6090_vm6, %v4512_v17  ;;  %v4156_v28 = vsel %vm1744_vm7, 1.0, %v5439_v27  ;;  %v4157_v29 = vsel %vm1745_vm8, 1.0, %v5439_v27  ;;  %v4158_v31 = vsel %vm1746_vm9, 1.0, %v5439_v27  ;;  %v1887_v62 = vld [vmem:[%s6505_s12 + $0x10] sm:$0xf] }
 0x1c7   : > { %v1491_v24 = vadd.f32 %v1490_v20, %v1489_v12  ;;  %v1501_v25 = vrot.slane %v1500_v21, 4  ;;  %v4798_v30 = vpack.i.bf16 %v4157_v29, %v4156_v28  ;;  %v4159_v32 = vsel %vm1778_vm10, 1.0, %v5439_v27  ;;  %v1949_v63 = vld [vmem:[%s6506_s23] sm:$0xff]  ;;  %v1950_v0 = vld [vmem:[%s6506_s23 + $0x8] sm:$0xf] }
 0x1c8   : > { %vm1780_vm12 = vcmp.eq.s32.totalorder %v1742_v23, 1  ;;  %v4803_v35 = vpack.i.bf16 %v4159_v32, %v4158_v31  ;;  %v4160_v36 = vsel %vm1779_vm11, 1.0, %v5439_v27  ;;  %vm1814_vm13 = vcmp.eq.s32.totalorder %v1742_v23, 2  ;;  %v4146_v6 = vld [vmem:[%s6507_s9] ss:$0 sm:$0xff]  ;;  %s6510_s9 = sld [smem:[#allocation40_spill]] }
 0x1c9   : > { %v1492_v33 = vrot.slane %v1491_v24, 2  ;;  %v1502_v34 = vadd.f32 %v1501_v25, %v1500_v21  ;;  %4351 = vmatmul.mubr.msk.f32.vlgmr.msra.gmra.mrb[0].mxu0 %vm1544_vm4, %v1534_v26  ;;  %4799 = vperm.xlu0 %4797, %v4798_v30   ;;  %v4161_v37 = vsel %vm1780_vm12, 1.0, %v5439_v27  ;;  %vm1846_vm14 = vcmp.eq.s32.totalorder %v1740_v14, 3  ;;  %v4147_v9 = vld [vmem:[%s6508_s20] ss:$0 sm:$0xff]  ;;  %s6511_s20 = sld [smem:[#allocation47_spill]] }
 0x1ca   : > { %vm1812_vm15 = vcmp.eq.s32.totalorder %v1740_v14, 2  ;;  %v4809_v40 = vpack.i.bf16 %v4161_v37, %v4160_v36  ;;  %v4164_v41 = vsel %vm1814_vm13, 1.0, %v5439_v27  ;;  %v4165_v42 = vsel %vm1846_vm14, 1.0, %v5439_v27  ;;  %v4174_v15 = vld [vmem:[%s6509_s8] ss:$0 sm:$0xff]  ;;  %s6512_s8 = sld [smem:[#allocation45_spill]] }
 0x1cb   : > { %v1493_v38 = vadd.f32 %v1492_v33, %v1491_v24  ;;  %v1503_v39 = vrot.slane %v1502_v34, 2  ;;  %vm1813_vm1 = vcmp.eq.s32.totalorder %v1741_v19, 2  ;;  %v4162_v43 = vsel %vm1812_vm15, 1.0, %v5439_v27  ;;  %v1743_v17 = vld [vmem:[#allocation7] sm:$0xf] }
 0x1cc   : > { %vm1847_vm3 = vcmp.eq.s32.totalorder %v1741_v19, 3  ;;  %4810 = vperm.xlu1 %4808, %v4809_v40   ;;  %v4163_v46 = vsel %vm1813_vm1, 1.0, %v5439_v27  ;;  %v4819_v47 = vpack.i.bf16 %v4165_v42, %v4164_v41  ;;  %vm1848_vm4 = vcmp.eq.s32.totalorder %v1742_v23, 3 }
 0x1cd   : > { %v1494_v44 = vrot.slane %v1493_v38, 1  ;;  %v1504_v45 = vadd.f32 %v1503_v39, %v1502_v34  ;;  %4804 = vperm.xlu0 %4797, %v4803_v35   ;;  %v4814_v48 = vpack.i.bf16 %v4163_v46, %v4162_v43  ;;  %v4166_v49 = vsel %vm1847_vm3, 1.0, %v5439_v27 }
 0x1ce   : > { %v4167_v52 = vsel %vm1848_vm4, 1.0, %v5439_v27  ;;  %v1768_v14 = vlaneseq  ;;  %vm1947_vm7 = vcmask 156672   ;;  %vm1919_vm8 = vcmask 93184  }
 0x1cf   : > { %v1495_v50 = vadd.f32 %v1494_v44, %v1493_v38  ;;  %v1505_v51 = vrot.slane %v1504_v45, 1  ;;  %v4824_v55 = vpack.i.bf16 %v4167_v52, %v4166_v49  ;;  %vm1922_vm11 = vcmask 91136  }
 0x1d0   : > { %4815 = vperm.xlu1 %4808, %v4814_v48   ;;  %v1769_v16 = vshrl.u32 %v1768_v14, 7  ;;  %vm1966_vm12 = vcmask 97280   ;;  %vm1736_vm15 = vcmask 261120   ;;  %vm1733_vm1 = vcmask 195584  }
 0x1d1   : > { %v1506_v53 = vadd.f32 %v1505_v51, %v1504_v45  ;;  %v1507_v54 = vmul.f32 0.083333336, %v1495_v50  ;;  %4820 = vperm.xlu0 %4797, %v4819_v47   ;;  %v1884_v50 = vand.u32 127, %v1768_v14 }
 0x1d2   : > { %v1926_v18 = vadd.s32 8, %v1769_v16  ;;  %vm1932_vm5 = vcmp.eq.s32.totalorder %v1769_v16, %v4174_v15  ;;  %v1804_v21 = vsub.s32 1, %v1769_v16  ;;  %v1838_v28 = vsub.s32 2, %v1769_v16 }
 0x1d3   : > { %v1508_v56 = vmul.f32 0.083333336, %v1506_v53  ;;  %v1509_v57 = vmul.f32 %v1507_v54, %v1507_v54  ;;  %v1511_v1 = vsub.f32 %v6070_v3, %v1507_v54  ;;  %v1512_v2 = vsub.f32 %v6073_v4, %v1507_v54 }
 0x1d4   : > { %4825 = vperm.xlu1 %4808, %v4824_v55   ;;  %v1770_v3 = vsub.s32 0, %v1769_v16  ;;  %v4175_v4 = vsel %vm1932_vm5, 1.0, %v5439_v27  ;;  %vm1933_vm6 = vcmp.eq.s32.totalorder %v1926_v18, %v4174_v15  ;;  %v1805_v31 = vrot.slane %v1743_v17, %v1804_v21 }
 0x1d5   : > { %v1510_v59 = vsub.f32 %v1508_v56, %v1509_v57  ;;  %1889 = vperm.xlu0 %4797, %v1885_v58   ;;  %v4255_v20 = vpack.c.bf16 %v4175_v4, %v4175_v4  ;;  %v4176_v22 = vsel %vm1933_vm6, 1.0, %v5439_v27  ;;  %v1872_v33 = vsub.s32 3, %v1769_v16  ;;  %v4179_v16 = vld [vmem:[%s6510_s9] ss:$0 sm:$0xff]  ;;  %s5441_s9 = smov 24  }
 0x1d6   : > { %v1771_v19 = vrot.slane %v1743_v17, %v1770_v3  ;;  %v4256_v24 = vpack.c.bf16 %v4176_v22, %v4176_v22  ;;  %v1839_v41 = vrot.slane %v1743_v17, %v1838_v28  ;;  %v5440_v4 = vmov -1e+09   ;;  %v4152_v22 = vld [vmem:[%s6511_s20] ss:$0 sm:$0xff] }
 0x1d7   : > { %v1513_v61 = vadd.f32 1e-05, %v1510_v59  ;;  %1946 = vst.msk [vmem:[#allocation5] sm:$0xf] %vm1487_vm2, %v4255_v20  ;;  %v1873_v44 = vrot.slane %v1743_v17, %v1872_v33  ;;  %vm1738_vm2 = vcmask 257024  }
 0x1d8   : > { %1892 = vperm.xlu1 %4808, %v1886_v60   ;;  %1948 = vst.msk [vmem:[#allocation5 + $0x4] sm:$0x3] %vm1947_vm7, %v4256_v24  ;;  %v4148_v28 = vld [vmem:[%s6512_s8] ss:$0 sm:$0xff] }
 0x1d9   : > { %4829 = vrsqrt.f32 %v1513_v61  ;;  %1895 = vperm.xlu0 %4797, %v1887_v62  }
 0x1dc   : > { %1953 = vperm.xlu1 %4808, %v1949_v63  }
 0x1dd   : > { %1956 = vperm.xlu0 %4797, %v1950_v0  }
 0x1e3   : > { %v4830_v5 = vpop.eup %4829 }
 0x1e4   : > { %v1515_v7 = vmul.f32 %v4830_v5, %v1511_v1  ;;  %v1516_v8 = vmul.f32 %v4830_v5, %v1512_v2 }
 0x1e6   : > { %v1523_v10 = vmul.f32 %v4146_v6, %v1515_v7  ;;  %v1524_v11 = vmul.f32 %v4146_v6, %v1516_v8 }
 0x1e8   : > { %v1531_v12 = vadd.f32 %v4147_v9, %v1523_v10  ;;  %v1532_v13 = vadd.f32 %v4147_v9, %v1524_v11 }
 0x1ea   : > { %4359 = vmatprep.mubr.msk.f32.mxu1 %vm1485_vm0, %v1531_v12 }
 0x1eb   : > { %4360 = vmatmul.mubr.msk.f32.vlgmr.msra.gmra.mrb[0].mxu1 %vm1485_vm0, %v1532_v13 }
 0x248   : > { %v4800_v23 = vpop.permute.xlu0 %4799 }
 0x249   : > { %v4802_v25 = vunpack.i.h.bf16 %v4800_v23  ;;  %v4801_v26 = vunpack.i.l.bf16 %v4800_v23 }
 0x24b   : > { %v1773_v29 = vmul.f32 %v4802_v25, %v1771_v19  ;;  %v1772_v30 = vmul.f32 %v4801_v26, %v1771_v19  ;;  %v4811_v32 = vpop.permute.xlu1 %4810 }
 0x24c   : > { %v4805_v34 = vpop.permute.xlu0 %4804  ;;  %v4813_v35 = vunpack.i.h.bf16 %v4811_v32  ;;  %v4812_v36 = vunpack.i.l.bf16 %v4811_v32 }
 0x24d   : > { %v4807_v37 = vunpack.i.h.bf16 %v4805_v34  ;;  %v4806_v38 = vunpack.i.l.bf16 %v4805_v34 }
 0x24e   : > { %v1808_v39 = vmul.f32 %v4813_v35, %v1805_v31  ;;  %v1807_v40 = vmul.f32 %v4812_v36, %v1805_v31 }
 0x24f   : > { %v1806_v42 = vmul.f32 %v4807_v37, %v1805_v31  ;;  %v1774_v43 = vmul.f32 %v4806_v38, %v1771_v19  ;;  %v4816_v45 = vpop.permute.xlu1 %4815 }
 0x250   : > { %v1810_v46 = vadd.f32 %v1807_v40, %v1773_v29  ;;  %v4821_v47 = vpop.permute.xlu0 %4820  ;;  %v4818_v48 = vunpack.i.h.bf16 %v4816_v45  ;;  %v4817_v49 = vunpack.i.l.bf16 %v4816_v45 }
 0x251   : > { %v1809_v51 = vadd.f32 %v1806_v42, %v1772_v30  ;;  %v1811_v52 = vadd.f32 %v1808_v39, %v1774_v43  ;;  %v4823_v53 = vunpack.i.h.bf16 %v4821_v47  ;;  %v4822_v54 = vunpack.i.l.bf16 %v4821_v47 }
 0x252   : > { %v1841_v55 = vmul.f32 %v4818_v48, %v1839_v41  ;;  %v1840_v56 = vmul.f32 %v4817_v49, %v1839_v41 }
 0x253   : > { %v1874_v57 = vmul.f32 %v4823_v53, %v1873_v44  ;;  %v1842_v58 = vmul.f32 %v4822_v54, %v1839_v41  ;;  %v4826_v59 = vpop.permute.xlu1 %4825 }
 0x254   : > { %v1843_v60 = vadd.f32 %v1840_v56, %v1809_v51  ;;  %v1844_v61 = vadd.f32 %v1841_v55, %v1810_v46  ;;  %v1890_v62 = vpop.permute.xlu0 %1889  ;;  %v4828_v63 = vunpack.i.h.bf16 %v4826_v59  ;;  %v4827_v0 = vunpack.i.l.bf16 %v4826_v59 }
 0x255   : > { %v1845_v1 = vadd.f32 %v1842_v58, %v1811_v52  ;;  %vm1897_vm0 = vcmp.eq.s32.totalorder %v1884_v50, %v1890_v62 }
 0x256   : > { %v1877_v2 = vadd.f32 %v1874_v57, %v1843_v60  ;;  %v4168_v5 = vsel %vm1897_vm0, 1.0, %v5439_v27  ;;  %v1876_v6 = vmul.f32 %v4828_v63, %v1873_v44  ;;  %v1875_v7 = vmul.f32 %v4827_v0, %v1873_v44 }
 0x257   : > { %v4252_v8 = vpack.c.bf16 %v4168_v5, %v4168_v5  ;;  %v1893_v9 = vpop.permute.xlu1 %1892 }
 0x258   : > { %v1878_v10 = vadd.f32 %v1875_v7, %v1844_v61  ;;  %v1879_v11 = vadd.f32 %v1876_v6, %v1845_v1  ;;  %v1896_v12 = vpop.permute.xlu0 %1895  ;;  %vm1898_vm9 = vcmp.eq.s32.totalorder %v1884_v50, %v1893_v9  ;;  %1880 = vst.msk [vmem:[#allocation3] sm:$0xff] %vm1736_vm15, %v1877_v2 }
 0x259   : > { %1920 = vst.msk [vmem:[#allocation4] sm:$0xf] %vm1919_vm8, %v4252_v8  ;;  %vm1899_vm10 = vcmp.eq.s32.totalorder %v1884_v50, %v1896_v12  ;;  %v4169_v13 = vsel %vm1898_vm9, 1.0, %v5439_v27 }
 0x25a   : > { %v4170_v14 = vsel %vm1899_vm10, 1.0, %v5439_v27  ;;  %v4253_v15 = vpack.c.bf16 %v4169_v13, %v4169_v13  ;;  %1882 = vst.msk [vmem:[#allocation3 + $0x10] sm:$0xf] %vm1738_vm2, %v1879_v11 }
 0x25b   : > { %v4254_v17 = vpack.c.bf16 %v4170_v14, %v4170_v14  ;;  %v1954_v3 = vpop.permute.xlu1 %1953  ;;  %1881 = vst.msk [vmem:[#allocation3 + $0x8] sm:$0xff] %vm1736_vm15, %v1878_v10 }
 0x25c   : > { %1921 = vst.msk [vmem:[#allocation4 + $0x4] sm:$0xf] %vm1919_vm8, %v4253_v15  ;;  %v1957_v18 = vpop.permute.xlu0 %1956  ;;  %vm1962_vm13 = vcmp.eq.s32.totalorder %v1954_v3, %v4179_v16 }
 0x25d   : > { %1923 = vst.msk [vmem:[#allocation4 + $0x8] sm:$0x3] %vm1922_vm11, %v4254_v17  ;;  %vm1963_vm14 = vcmp.eq.s32.totalorder %v1957_v18, %v4179_v16  ;;  %v1964_v19 = vsel %vm1962_vm13, 0.0, %v5440_v4 }
 0x25e   : > { %v1965_v20 = vsel %vm1963_vm14, 0.0, %v5440_v4  ;;  %1967 = vst.msk [vmem:[#allocation6] sm:$0xff] %vm1966_vm12, %v1964_v19 }
 0x25f   : > { %1968 = vst.msk [vmem:[#allocation6 + $0x8] sm:$0xf] %vm1919_vm8, %v1965_v20 }
 0x29c   : > { %v4352_v27 = vpop.f32.mrb[0].mxu0 }
 0x29d   : > { %v1621_v21 = vpop.f32.mrb[1].mxu0  ;;  %v1627_v29 = vadd.f32 %v4352_v27, %v4148_v28 }
 0x29e   : > { %v1622_v30 = vadd.f32 %v4148_v28, %v1621_v21 }
 0x2be   : > { %v4361_v23 = vpop.f32.mrb[0].mxu1 }
 0x2bf   : > { %v1722_v24 = vadd.f32 %v4361_v23, %v4152_v22  ;;  %v1716_v25 = vpop.f32.mrb[1].mxu1 }
 0x2c0   : > { %v1717_v26 = vadd.f32 %v4152_v22, %v1716_v25 }
 0x2c1   : > { %1729 = vrot.lane.b32.xlu0 %v1722_v24, %s5441_s9 }
 0x2c2   : > { %1727 = vrot.lane.b32.xlu1 %v1717_v26, %s5441_s9 }
 0x333   : > { %v1730_v31 = vpop.permute.xlu0 %1729 }
 0x334   : > { %v1735_v32 = vsel %vm1733_vm1, %v1627_v29, %v1730_v31  ;;  %v1728_v33 = vpop.permute.xlu1 %1727 }
 0x335   : > { %1739 = vst.msk [vmem:[#allocation2 + $0x8] sm:$0xf] %vm1738_vm2, %v1735_v32  ;;  %v1734_v34 = vsel %vm1733_vm1, %v1622_v30, %v1728_v33 }
 0x336   : > { %1737 = vst.msk [vmem:[#allocation2] sm:$0xff] %vm1736_vm15, %v1734_v34 }
 0x337 PF: > { %vm1997_vm3 = vcmask 1045504   ;;  %v4871_v38 = vld [vmem:[#allocation4] sm:$0xff]   ;;  %vm1990_vm4 = vcmask 97280   ;;  %v4872_v39 = vld [vmem:[#allocation4 + $0x8] ss:$0 sps:$4 sm:$0x33]  }
 0x338   : > { %4364 = vmatprep.mubr.msk.bf16.mxu0 %vm1990_vm4, %v4871_v38  ;;  %v5442_v41 = vmov 0.0   ;;  %vm5443_vm5 = vmmov 0   ;;  %v1973_v42 = vld [vmem:[#allocation3 + $0x10] sm:$0xf]  ;;  %v1971_v43 = vld [vmem:[#allocation3] sm:$0xff]  ;;  %v1972_v47 = vld [vmem:[#allocation3 + $0x8] sm:$0xff] }
 0x339   : > { %v2108_v56 = vld [vmem:[%s6049_s7] sm:$0xff]  ;;  %v2109_v57 = vld [vmem:[%s6049_s7 + $0x8] sm:$0xff]  ;;  %vm2063_vm6 = vcmask 1041408   ;;  %v4873_v61 = vld [vmem:[#allocation5] sm:$0x3f]   ;;  %vm2059_vm7 = vcmask 162816  }
 0x33a   : > { %v4522_v59 = vpack.c.bf16 %v2109_v57, %v2108_v56  ;;  %v2110_v62 = vld [vmem:[%s6049_s7 + $0x10] sm:$0xff]  ;;  %v2111_v63 = vld [vmem:[%s6049_s7 + $0x18] sm:$0xff]  ;;  %v2346_v1 = vld [vmem:[%s6055_s27] sm:$0xff]  ;;  %vm2119_vm0 = vcmask 261120   ;;  %s6513_s7 = scalar_lea.vmem [#allocation10], %s5996_s11  ;;  %vm2444_vm2 = vcmask 64512  }
 0x33b   : > { %v4526_v0 = vpack.c.bf16 %v2111_v63, %v2110_v62  ;;  %v2347_v2 = vld [vmem:[%s6055_s27 + $0x8] sm:$0xff]  ;;  %v2203_v6 = vld [vmem:[%s6052_s14] sm:$0xff]  ;;  %v2348_v10 = vld [vmem:[%s6055_s27 + $0x10] sm:$0xff]  ;;  %s6517_s20 = scalar_lea.vmem [#allocation12], %s5996_s11  ;;  %vm2300_vm9 = vcmask 257024   ;;  %vm2535_vm10 = vcmask 93184  }
 0x33c   : > { %v6149_v36 = vld [vmem:[#allocation2 + $0x8] sm:$0xf]  ;;  %v4538_v5 = vpack.c.bf16 %v2347_v2, %v2346_v1  ;;  %v2349_v11 = vld [vmem:[%s6055_s27 + $0x18] sm:$0xff]  ;;  %v2205_v3 = vld [vmem:[%s6052_s14 + $0x10] sm:$0xff]  ;;  %s6514_s27 = scalar_lea.vmem [#allocation13], %s5996_s11  ;;  %s5445_s8 = smov 64  }
 0x33d   : > { %v6147_v35 = vld [vmem:[#allocation2] sm:$0xff]  ;;  %v2204_v7 = vld [vmem:[%s6052_s14 + $0x8] sm:$0xff]  ;;  %v4542_v17 = vpack.c.bf16 %v2349_v11, %v2348_v10  ;;  %v2206_v18 = vld [vmem:[%s6052_s14 + $0x18] sm:$0xff]  ;;  %s5444_s14 = smov 96   ;;  %s5446_s9 = smov 88   ;;  %vm2566_vm11 = vcmask 1043456  }
 0x33e   : > { %v1981_v37 = vpack.c.bf16 %v6149_v36, %v6147_v35  ;;  %v4530_v8 = vpack.c.bf16 %v2204_v7, %v2203_v6  ;;  %v4534_v4 = vpack.c.bf16 %v2206_v18, %v2205_v3  ;;  %v4186_v19 = vld [vmem:[%s6513_s7] ss:$0 sm:$0xff]  ;;  %vm6196_vm8 = vmpackc.low %vm2444_vm2, %vm2444_vm2  ;;  %s5447_s7 = smov 120   ;;  %vm5448_vm12 = vmmov 1   ;;  %p4238_p6 = scmp.ne.s32.totalorder %s5817_s15, 1 }
 0x33f   : > { %v4194_v25 = vld [vmem:[%s6514_s27] ss:$0 sm:$0xff]  ;;  %vm6229_vm13 = vmpackc.low %vm2566_vm11, %vm5448_vm12  ;;  %s5449_s27 = smov 56   ;;  %vm3285_vm14 = vcmask 130048   ;;  %vm3288_vm15 = vcmask 195584   ;;  %vm3544_vm1 = vcmask 523264  }
 0x340   : > { %4626 = vmatprep.subr.msk.bf16.mxu0 %vm1997_vm3, %v1981_v37  ;;  %v1999_v40 = vsel %vm1997_vm3, %v1981_v37, 0  ;;  %4531 = vmatprep.subr.bf16.mxu1 %v4530_v8  ;;  %v6220_v3 = vld [vmem:[#allocation6] sm:$0xff] }
 0x341   : > { %4363 = vmatpush3.bf16.msra.mxu0 %v1999_v40  ;;  %4533 = vmatpush3.bf16.msra.mxu1 %v4530_v8 }
 0x342   : > { %4368 = vmatprep.subr.bf16.mxu0 %v5442_v41  ;;  %4535 = vmatprep.subr.bf16.mxu1 %v4534_v4 }
 0x344   : > { %4365 = vmatmul.mubr.msk.bf16.vlgmr.msra.gmra.mrb[0].mxu0 %vm1990_vm4, %v4872_v39  ;;  %v4189_v39 = vld [vmem:[%s6517_s20] ss:$0 sm:$0xff]  ;;  %s5451_s20 = smov 112  }
 0x345   : > { %4372 = vmatprep.mubr.msk.bf16.mxu0 %vm5443_vm5, %v5442_v41  ;;  %4537 = vmatpush3.bf16.msra.mxu1 %v4534_v4  ;;  %vm5460_vm5 = vmmov (!%p4238_p6), 0  }
 0x417   : > { %v4366_v44 = vpop.f32.mrb[0].mxu0 }
 0x418   : > { %v2044_v45 = vadd.f32 %v4366_v44, %v1973_v42  ;;  %v2035_v46 = vpop.f32.mrb[1].mxu0 }
 0x419   : > { %v2036_v48 = vadd.f32 %v2035_v46, %v1971_v43  ;;  %v4367_v49 = vpop.f32.mrb[2].mxu0 }
 0x41a   : > { %v2038_v50 = vpop.f32.mrb[3].mxu0  ;;  %v2051_v52 = vmax.f32 %v2044_v45, 0.0 }
 0x41b   : > { %v2039_v51 = vadd.f32 %v2038_v50, %v1972_v47  ;;  %v2049_v53 = vmax.f32 %v2036_v48, 0.0 }
 0x41c   : > { %v2053_v58 = vpack.c.bf16 %v2051_v52, %v2051_v52 }
 0x41d   : > { %v2050_v54 = vmax.f32 %v2039_v51, 0.0 }
 0x41e   : > { %v2065_v60 = vsel %vm2063_vm6, %v2053_v58, 0 }
 0x41f   : > { %v2052_v55 = vpack.c.bf16 %v2050_v54, %v2049_v53 }
 0x421   : > { %4369 = vmatpush3.bf16.msra.mxu0 %v2052_v55 }
 0x422   : > { %4370 = vmatprep.subr.bf16.mxu0 %v5442_v41 }
 0x425   : > { %4371 = vmatpush3.bf16.msra.mxu0 %v2065_v60 }
 0x426   : > { %4523 = vmatprep.subr.bf16.mxu0 %v4522_v59 }
 0x428   : > { %4373 = vmatmul.mubr.msk.bf16.vlgmr.msra.gmra.mrb[4].mxu0 %vm2059_vm7, %v4873_v61  ;;  %vm3740_vm7 = vcmask (!%p4238_p6), 254976  }
 0x429   : > { %4525 = vmatpush3.bf16.msra.mxu0 %v4522_v59 }
 0x42a   : > { %4527 = vmatprep.subr.bf16.mxu0 %v4526_v0 }
 0x42d   : > { %4529 = vmatpush3.bf16.msra.mxu0 %v4526_v0 }
 0x42e   : > { %4539 = vmatprep.subr.bf16.mxu0 %v4538_v5 }
 0x4fb   : > { %v2101_v9 = vpop.f32.mrb[4].mxu0 }
 0x4fc   : > { %v2102_v12 = vadd.f32 %v2101_v9, %v6147_v35  ;;  %v4374_v13 = vpop.f32.mrb[5].mxu0 }
 0x4fd   : > { %v2104_v14 = vpop.f32.mrb[6].mxu0 }
 0x4fe   : > { %v2105_v15 = vadd.f32 %v2104_v14, %v6149_v36  ;;  %v4375_v16 = vpop.f32.mrb[7].mxu0  ;;  %4384 = vmatprep.mubr.msk.f32.mxu0 %vm2119_vm0, %v2102_v12 }
 0x500   : > { %4385 = vmatmul.mubr.msk.f32.vlgmr.msra.gmra.mrb[8].mxu0 %vm2119_vm0, %v2105_v15  ;;  %v6218_v15 = vld [vmem:[#allocation6 + $0x8] sm:$0xf] }
 0x501   : > { %4541 = vmatpush3.bf16.msra.mxu0 %v4538_v5  ;;  %4406 = vmatprep.mubr.msk.f32.mxu0 %vm2119_vm0, %v6147_v35 }
 0x502   : > { %4543 = vmatprep.subr.bf16.mxu0 %v4542_v17 }
 0x505   : > { %4545 = vmatpush3.bf16.msra.mxu0 %v4542_v17 }
 0x508   : > { %4407 = vmatmul.mubr.msk.f32.vlgmr.msra.gmra.mrb[10].mxu0 %vm2119_vm0, %v6149_v36 }
 0x5d3   : > { %v4386_v20 = vpop.f32.mrb[8].mxu0 }
 0x5d4   : > { %v2198_v27 = vadd.f32 %v4386_v20, %v4186_v19  ;;  %v2192_v21 = vpop.f32.mrb[9].mxu0 }
 0x5d5   : > { %v2193_v22 = vadd.f32 %v4186_v19, %v2192_v21 }
 0x5d6   : > { %v2202_v24 = vmax.f32 %v2198_v27, 0.0 }
 0x5d7   : > { %v2201_v23 = vmax.f32 %v2193_v22, 0.0 }
 0x5d9   : > { %4395 = vmatprep.mubr.msk.f32.mxu1 %vm2119_vm0, %v2201_v23 }
 0x5da   : > { %4396 = vmatmul.mubr.msk.f32.vlgmr.msra.gmra.mrb[0].mxu1 %vm2119_vm0, %v2202_v24 }
 0x5db   : > { %v4408_v26 = vpop.f32.mrb[10].mxu0 }
 0x5dc   : > { %v6183_v28 = vadd.f32 %v4408_v26, %v4194_v25  ;;  %v2429_v29 = vpop.f32.mrb[11].mxu0 }
 0x5dd   : > { %v6185_v30 = vadd.f32 %v4194_v25, %v2429_v29 }
 0x5df   : > { %4413 = vmatprep.mubr.msk.f32.mxu1 %vm2444_vm2, %v6185_v30  ;;  %v6191_v31 = vpack.i.bf16 %v6183_v28, %v6185_v30 }
 0x5e1   : > { %4832 = vrot.lane.b32.xlu0 %v6191_v31, %s5444_s14  ;;  %s5450_s14 = smov 80  }
 0x653   : > { %v4833_v32 = vpop.permute.xlu0 %4832 }
 0x654   : > { %v4835_v33 = vunpack.i.h.bf16 %v4833_v32  ;;  %v4834_v34 = vunpack.i.l.bf16 %v4833_v32 }
 0x656   : > { %v4546_v38 = vpack.c.bf16 %v4835_v33, %v4834_v34 }
 0x658   : > { %4548 = vmatprep.subr.msk.bf16.mxu1 %vm6196_vm8, %v4546_v38 }
 0x659   : > { %4551 = vmatpush3.bf16.xpose.msk.msra.mxu1 %vm6196_vm8, %v4546_v38 }
 0x660   : > { %4414 = vmatmul.mubr.msk.f32.vlgmr.msra.gmra.mrb[2].mxu1 %vm2444_vm2, %v6183_v28 }
 0x6ad   : > { %v4397_v40 = vpop.f32.mrb[0].mxu1 }
 0x6ae   : > { %v2292_v41 = vadd.f32 %v4397_v40, %v4189_v39  ;;  %v2286_v42 = vpop.f32.mrb[1].mxu1 }
 0x6af   : > { %v2287_v43 = vadd.f32 %v4189_v39, %v2286_v42 }
 0x6b0   : > { %v2296_v44 = vadd.f32 %v2292_v41, %v6149_v36 }
 0x6b1   : > { %v2295_v45 = vadd.f32 %v2287_v43, %v6147_v35 }
 0x6b2   : > { %v2301_v46 = vsel %vm2300_vm9, %v2296_v44, 0.0  ;;  %v2310_v47 = vmul.f32 %v2296_v44, %v2296_v44 }
 0x6b3   : > { %v2299_v48 = vsel %vm2119_vm0, %v2295_v45, 0.0  ;;  %v2309_v49 = vmul.f32 %v2295_v45, %v2295_v45 }
 0x6b4   : > { %v2312_v50 = vsel %vm2300_vm9, %v2310_v47, 0.0  ;;  %v2302_v51 = vadd.f32 %v2301_v46, %v2299_v48 }
 0x6b5   : > { %v2311_v52 = vsel %vm2119_vm0, %v2309_v49, 0.0 }
 0x6b6   : > { %v2303_v53 = vrot.slane %v2302_v51, 4  ;;  %v2313_v54 = vadd.f32 %v2312_v50, %v2311_v52 }
 0x6b8   : > { %v2304_v55 = vadd.f32 %v2303_v53, %v2302_v51  ;;  %v2314_v56 = vrot.slane %v2313_v54, 4 }
 0x6ba   : > { %v2305_v57 = vrot.slane %v2304_v55, 2  ;;  %v2315_v58 = vadd.f32 %v2314_v56, %v2313_v54 }
 0x6bc   : > { %v2306_v59 = vadd.f32 %v2305_v57, %v2304_v55  ;;  %v2316_v60 = vrot.slane %v2315_v58, 2 }
 0x6be   : > { %v2307_v61 = vrot.slane %v2306_v59, 1  ;;  %v2317_v62 = vadd.f32 %v2316_v60, %v2315_v58 }
 0x6c0   : > { %v2308_v63 = vadd.f32 %v2307_v61, %v2306_v59  ;;  %v2318_v0 = vrot.slane %v2317_v62, 1 }
 0x6c2   : > { %v2319_v1 = vadd.f32 %v2318_v0, %v2317_v62  ;;  %v2320_v2 = vmul.f32 0.083333336, %v2308_v63 }
 0x6c4   : > { %v2321_v5 = vmul.f32 0.083333336, %v2319_v1  ;;  %v2322_v6 = vmul.f32 %v2320_v2, %v2320_v2  ;;  %v2324_v7 = vsub.f32 %v2295_v45, %v2320_v2  ;;  %v2325_v8 = vsub.f32 %v2296_v44, %v2320_v2 }
 0x6c6   : > { %v2323_v9 = vsub.f32 %v2321_v5, %v2322_v6 }
 0x6c8   : > { %v2326_v10 = vadd.f32 1e-05, %v2323_v9 }
 0x6ca   : > { %4874 = vrsqrt.f32 %v2326_v10 }
 0x6d4   : > { %v4875_v11 = vpop.eup %4874 }
 0x6d5   : > { %v6214_v12 = vmul.f32 %v4875_v11, %v2324_v7  ;;  %v6216_v13 = vmul.f32 %v4875_v11, %v2325_v8 }
 0x733   : > { %v4415_v14 = vpop.f32.mrb[2].mxu1 }
 0x734   : > { %v2529_v16 = vmul.f32 0.35355338, %v4415_v14  ;;  %v2519_v17 = vpop.f32.mrb[3].mxu1 }
 0x735   : > { %v2528_v18 = vmul.f32 0.35355338, %v2519_v17 }
 0x736   : > { %v2531_v4 = vadd.f32 %v2529_v16, %v6218_v15 }
 0x737   : > { %v2530_v19 = vadd.f32 %v2528_v18, %v6220_v3 }
 0x738   : > { %v2536_v20 = vsel %vm2535_vm10, %v2531_v4, -inf }
 0x739   : > { %2537 = vmax.xlane.f32.xlu1 %v2536_v20  ;;  %v2532_v27 = vsel %vm1990_vm4, %v2530_v19, -inf }
 0x73a   : > { %2533 = vmax.xlane.f32.xlu0 %v2532_v27 }
 0x74a   : > { %4837 = vrot.lane.b32.xlu1 %v6191_v31, %s5445_s8  ;;  %s5452_s8 = smov 72  }
 0x74e   : > { %4842 = vrot.lane.b32.xlu1 %v6191_v31, %s5446_s9  ;;  %s5453_s9 = smov 104  }
 0x750   : > { %2646 = vrot.lane.b32.xlu0 %v6183_v28, %s5447_s7 }
 0x7c6   : > { %v2538_v21 = vpop.xlane.xlu1 %2537 }
 0x7c7   : > { %v2540_v22 = vsub.f32 %v2531_v4, %v2538_v21  ;;  %v2534_v23 = vpop.xlane.xlu0 %2533 }
 0x7c8   : > { %v2539_v24 = vsub.f32 %v2530_v19, %v2534_v23 }
 0x7c9   : > { %v2543_v25 = vmul.f32 1.442695, %v2540_v22 }
 0x7ca   : > { %v2541_v26 = vmul.f32 1.442695, %v2539_v24  ;;  %v4838_v29 = vpop.permute.xlu1 %4837 }
 0x7cb   : > { %4876 = vpow2.f32 %v2543_v25  ;;  %v4840_v32 = vunpack.i.h.bf16 %v4838_v29  ;;  %v4839_v33 = vunpack.i.l.bf16 %v4838_v29  ;;  %v2647_v54 = vpop.permute.xlu0 %2646 }
 0x7cc   : > { %4878 = vpow2.f32 %v2541_v26 }
 0x7cd   : > { %v4552_v38 = vpack.c.bf16 %v4840_v32, %v4839_v33 }
 0x7ce   : > { %v4843_v39 = vpop.permute.xlu1 %4842 }
 0x7cf   : > { %v4845_v40 = vunpack.i.h.bf16 %v4843_v39  ;;  %v4844_v41 = vunpack.i.l.bf16 %v4843_v39  ;;  %4554 = vmatprep.subr.msk.bf16.mxu0 %vm6229_vm13, %v4552_v38 }
 0x7d0   : > { %4557 = vmatpush3.bf16.msk.msra.mxu0 %vm6229_vm13, %v4552_v38 }
 0x7d1   : > { %v4558_v42 = vpack.c.bf16 %v4845_v40, %v4844_v41 }
 0x7d3   : > { %4560 = vmatprep.subr.msk.bf16.mxu0 %vm6196_vm8, %v4558_v42 }
 0x7d5   : > { %v4877_v43 = vpop.eup %4876 }
 0x7d6   : > { %v2548_v44 = vsel %vm2535_vm10, %v4877_v43, 0.0  ;;  %v4879_v45 = vpop.eup %4878 }
 0x7d7   : > { %2549 = vadd.xlane.f32.xlu1 %v2548_v44  ;;  %v2545_v46 = vsel %vm1990_vm4, %v4879_v45, 0.0 }
 0x7db   : > { %2546 = vadd.xlane.f32.xlu1 %v2545_v46 }
 0x7ec   : > { %2644 = vrot.lane.b32.xlu1 %v6185_v30, %s5447_s7  ;;  %s5454_s7 = smov 48  }
 0x864   : > { %v2550_v47 = vpop.xlane.xlu1 %2549 }
 0x865   : > { %4880 = vrcp.f32 %v2550_v47 }
 0x868   : > { %v2547_v48 = vpop.xlane.xlu1 %2546 }
 0x869   : > { %4882 = vrcp.f32 %v2547_v48 }
 0x86c   : > { %v2645_v53 = vpop.permute.xlu1 %2644 }
 0x86f   : > { %v4881_v49 = vpop.eup %4880 }
 0x870   : > { %v2554_v52 = vmul.f32 %v4881_v49, %v4877_v43 }
 0x873   : > { %v4883_v50 = vpop.eup %4882 }
 0x874   : > { %v2553_v51 = vmul.f32 %v4883_v50, %v4879_v45 }
 0x876   : > { %4420 = vmatprep.mubr.msk.f32.mxu0 %vm1990_vm4, %v2553_v51 }
 0x877   : > { %4421 = vmatmul.mubr.msk.f32.vlgmr.msra.gmra.mrb[12].mxu0 %vm1990_vm4, %v2554_v52 }
 0x878   : > { %4563 = vmatpush3.bf16.xpose.msk.msra.mxu0 %vm6196_vm8, %v4558_v42  ;;  %4427 = vmatprep.mubr.msk.f32.mxu0 %vm2444_vm2, %v2645_v53 }
 0x87f   : > { %4428 = vmatmul.mubr.msk.f32.vlgmr.msra.gmra.mrb[14].mxu0 %vm2444_vm2, %v2647_v54 }
 0x94a   : > { %v6248_v55 = vpop.f32.mrb[12].mxu0 }
 0x94b   : > { %v6250_v56 = vpop.f32.mrb[13].mxu0 }
 0x952   : > { %v4429_v57 = vpop.f32.mrb[14].mxu0 }
 0x953   : > { %v2736_v58 = vmul.f32 0.35355338, %v4429_v57  ;;  %v2726_v59 = vpop.f32.mrb[15].mxu0 }
 0x954   : > { %v2735_v60 = vmul.f32 0.35355338, %v2726_v59 }
 0x955   : > { %v2738_v61 = vadd.f32 %v2736_v58, %v6218_v15 }
 0x956   : > { %v2737_v62 = vadd.f32 %v2735_v60, %v6220_v3 }
 0x957   : > { %v2742_v63 = vsel %vm2535_vm10, %v2738_v61, -inf }
 0x958   : > { %2743 = vmax.xlane.f32.xlu0 %v2742_v63  ;;  %v2739_v0 = vsel %vm1990_vm4, %v2737_v62, -inf }
 0x959   : > { %2740 = vmax.xlane.f32.xlu1 %v2739_v0 }
 0x96a   : > { %4847 = vrot.lane.b32.xlu1 %v6191_v31, %s5449_s27  ;;  %s5455_s27 = smov 8  }
 0x96e   : > { %4852 = vrot.lane.b32.xlu0 %v6191_v31, %s5450_s14  ;;  %2849 = vrot.lane.b32.xlu1 %v6185_v30, %s5451_s20  ;;  %s5456_s14 = smov 40  }
 0x9e5   : > { %v2744_v1 = vpop.xlane.xlu0 %2743 }
 0x9e6   : > { %v2746_v2 = vsub.f32 %v2738_v61, %v2744_v1  ;;  %v2741_v5 = vpop.xlane.xlu1 %2740 }
 0x9e7   : > { %v2745_v6 = vsub.f32 %v2737_v62, %v2741_v5 }
 0x9e8   : > { %v2749_v7 = vmul.f32 1.442695, %v2746_v2 }
 0x9e9   : > { %v2747_v8 = vmul.f32 1.442695, %v2745_v6  ;;  %v4853_v9 = vpop.permute.xlu0 %4852 }
 0x9ea   : > { %4884 = vpow2.f32 %v2749_v7  ;;  %v4848_v10 = vpop.permute.xlu1 %4847  ;;  %v4855_v11 = vunpack.i.h.bf16 %v4853_v9  ;;  %v4854_v14 = vunpack.i.l.bf16 %v4853_v9 }
 0x9eb   : > { %v4850_v16 = vunpack.i.h.bf16 %v4848_v10  ;;  %v4849_v17 = vunpack.i.l.bf16 %v4848_v10  ;;  %4886 = vpow2.f32 %v2747_v8 }
 0x9ec   : > { %v4570_v4 = vpack.c.bf16 %v4855_v11, %v4854_v14 }
 0x9ed   : > { %v4564_v18 = vpack.c.bf16 %v4850_v16, %v4849_v17 }
 0x9ee   : > { %v2850_v22 = vpop.permute.xlu1 %2849 }
 0x9ef   : > { %4566 = vmatprep.subr.msk.bf16.mxu1 %vm6229_vm13, %v4564_v18 }
 0x9f0   : > { %4569 = vmatpush3.bf16.msk.msra.mxu1 %vm6229_vm13, %v4564_v18 }
 0x9f1   : > { %4572 = vmatprep.subr.msk.bf16.mxu1 %vm6196_vm8, %v4570_v4 }
 0x9f4   : > { %v4885_v19 = vpop.eup %4884 }
 0x9f5   : > { %v2754_v20 = vsel %vm2535_vm10, %v4885_v19, 0.0  ;;  %v4887_v27 = vpop.eup %4886 }
 0x9f6   : > { %2755 = vadd.xlane.f32.xlu1 %v2754_v20  ;;  %v2751_v21 = vsel %vm1990_vm4, %v4887_v27, 0.0 }
 0x9fa   : > { %2752 = vadd.xlane.f32.xlu1 %v2751_v21 }
 0xa0b   : > { %2851 = vrot.lane.b32.xlu1 %v6183_v28, %s5451_s20  ;;  %s5457_s20 = smov 16  }
 0xa83   : > { %v2756_v23 = vpop.xlane.xlu1 %2755 }
 0xa84   : > { %4888 = vrcp.f32 %v2756_v23 }
 0xa87   : > { %v2753_v24 = vpop.xlane.xlu1 %2752 }
 0xa88   : > { %4890 = vrcp.f32 %v2753_v24 }
 0xa8b   : > { %v2852_v33 = vpop.permute.xlu1 %2851 }
 0xa8e   : > { %v4889_v25 = vpop.eup %4888 }
 0xa8f   : > { %v2760_v32 = vmul.f32 %v4889_v25, %v4885_v19 }
 0xa92   : > { %v4891_v26 = vpop.eup %4890 }
 0xa93   : > { %v2759_v29 = vmul.f32 %v4891_v26, %v4887_v27 }
 0xa95   : > { %4434 = vmatprep.mubr.msk.f32.mxu1 %vm1990_vm4, %v2759_v29 }
 0xa96   : > { %4435 = vmatmul.mubr.msk.f32.vlgmr.msra.gmra.mrb[4].mxu1 %vm1990_vm4, %v2760_v32 }
 0xa97   : > { %4575 = vmatpush3.bf16.xpose.msk.msra.mxu1 %vm6196_vm8, %v4570_v4  ;;  %4441 = vmatprep.mubr.msk.f32.mxu1 %vm2444_vm2, %v2850_v22 }
 0xa9e   : > { %4442 = vmatmul.mubr.msk.f32.vlgmr.msra.gmra.mrb[6].mxu1 %vm2444_vm2, %v2852_v33 }
 0xb69   : > { %v6274_v38 = vpop.f32.mrb[4].mxu1 }
 0xb6a   : > { %v6276_v39 = vpop.f32.mrb[5].mxu1 }
 0xb71   : > { %v4443_v40 = vpop.f32.mrb[6].mxu1 }
 0xb72   : > { %v2941_v41 = vmul.f32 0.35355338, %v4443_v40  ;;  %v2931_v42 = vpop.f32.mrb[7].mxu1 }
 0xb73   : > { %v2940_v43 = vmul.f32 0.35355338, %v2931_v42 }
 0xb74   : > { %v2943_v44 = vadd.f32 %v2941_v41, %v6218_v15 }
 0xb75   : > { %v2942_v45 = vadd.f32 %v2940_v43, %v6220_v3 }
 0xb76   : > { %v2947_v46 = vsel %vm2535_vm10, %v2943_v44, -inf }
 0xb77   : > { %2948 = vmax.xlane.f32.xlu0 %v2947_v46  ;;  %v2944_v47 = vsel %vm1990_vm4, %v2942_v45, -inf }
 0xb78   : > { %2945 = vmax.xlane.f32.xlu1 %v2944_v47  ;;  %v3291_v47 = vld [vmem:[%s6058_s2] sm:$0xff] }
 0xc04   : > { %v2949_v48 = vpop.xlane.xlu0 %2948 }
 0xc05   : > { %v2951_v49 = vsub.f32 %v2943_v44, %v2949_v48  ;;  %v2946_v50 = vpop.xlane.xlu1 %2945  ;;  %v3292_v48 = vld [vmem:[%s6058_s2 + $0x8] sm:$0xff] }
 0xc06   : > { %v2950_v51 = vsub.f32 %v2942_v45, %v2946_v50  ;;  %v4594_v50 = vpack.c.bf16 %v3292_v48, %v3291_v47 }
 0xc07   : > { %v2954_v52 = vmul.f32 1.442695, %v2951_v49  ;;  %v3293_v49 = vld [vmem:[%s6058_s2 + $0x10] sm:$0xff] }
 0xc08   : > { %v2952_v53 = vmul.f32 1.442695, %v2950_v51  ;;  %v3294_v51 = vld [vmem:[%s6058_s2 + $0x18] sm:$0xff]  ;;  %s6520_s2 = scalar_lea.vmem [#allocation15], %s5996_s11 }
 0xc09   : > { %4892 = vpow2.f32 %v2954_v52  ;;  %v4598_v52 = vpack.c.bf16 %v3294_v51, %v3293_v49 }
 0xc0a   : > { %4894 = vpow2.f32 %v2952_v53 }
 0xc13   : > { %v4893_v54 = vpop.eup %4892 }
 0xc14   : > { %v4895_v57 = vpop.eup %4894  ;;  %v2959_v58 = vsel %vm2535_vm10, %v4893_v54, 0.0 }
 0xc15   : > { %2960 = vadd.xlane.f32.xlu1 %v2959_v58  ;;  %v2956_v59 = vsel %vm1990_vm4, %v4895_v57, 0.0 }
 0xc16   : > { %2957 = vadd.xlane.f32.xlu0 %v2956_v59 }
 0xc26   : > { %4862 = vrot.lane.b32.xlu1 %v6191_v31, %s5452_s8  ;;  %s5458_s8 = smov 24  }
 0xc2a   : > { %3054 = vrot.lane.b32.xlu1 %v6185_v30, %s5453_s9 }
 0xc2c   : > { %4857 = vrot.lane.b32.xlu0 %v6191_v31, %s5454_s7  ;;  %s6523_s7 = scalar_lea.vmem [#allocation18], %s5996_s11 }
 0xc30   : > { %3056 = vrot.lane.b32.xlu0 %v6183_v28, %s5453_s9  ;;  %s6522_s9 = scalar_lea.vmem [#allocation19], %s5996_s11 }
 0xca2   : > { %v2961_v60 = vpop.xlane.xlu1 %2960 }
 0xca3   : > { %4896 = vrcp.f32 %v2961_v60  ;;  %v2958_v61 = vpop.xlane.xlu0 %2957 }
 0xca4   : > { %4898 = vrcp.f32 %v2958_v61 }
 0xca6   : > { %v4863_v62 = vpop.permute.xlu1 %4862 }
 0xca7   : > { %v4858_v63 = vpop.permute.xlu0 %4857  ;;  %v4865_v0 = vunpack.i.h.bf16 %v4863_v62  ;;  %v4864_v1 = vunpack.i.l.bf16 %v4863_v62 }
 0xca8   : > { %v4860_v2 = vunpack.i.h.bf16 %v4858_v63  ;;  %v4859_v5 = vunpack.i.l.bf16 %v4858_v63 }
 0xca9   : > { %v4582_v7 = vpack.c.bf16 %v4865_v0, %v4864_v1 }
 0xcaa   : > { %v4576_v6 = vpack.c.bf16 %v4860_v2, %v4859_v5  ;;  %v3055_v10 = vpop.permute.xlu1 %3054 }
 0xcab   : > { %v3057_v11 = vpop.permute.xlu0 %3056 }
 0xcac   : > { %4578 = vmatprep.subr.msk.bf16.mxu0 %vm6229_vm13, %v4576_v6 }
 0xcad   : > { %v4897_v30 = vpop.eup %4896  ;;  %4581 = vmatpush3.bf16.msk.msra.mxu0 %vm6229_vm13, %v4576_v6  ;;  %v3435_v6 = vld [vmem:[%s6033_s16] sm:$0xff] }
 0xcae   : > { %v4899_v28 = vpop.eup %4898  ;;  %4584 = vmatprep.subr.msk.bf16.mxu0 %vm6196_vm8, %v4582_v7  ;;  %v2965_v9 = vmul.f32 %v4897_v30, %v4893_v54  ;;  %v3438_v30 = vld [vmem:[%s6033_s16 + $0x18] sm:$0xff] }
 0xcaf   : > { %v2964_v8 = vmul.f32 %v4899_v28, %v4895_v57 }
 0xcb1   : > { %4448 = vmatprep.mubr.msk.f32.mxu0 %vm1990_vm4, %v2964_v8  ;;  %v3529_v8 = vld [vmem:[%s6062_s0] sm:$0xff] }
 0xcb2   : > { %4449 = vmatmul.mubr.msk.f32.vlgmr.msra.gmra.mrb[16].mxu0 %vm1990_vm4, %v2965_v9  ;;  %v3530_v9 = vld [vmem:[%s6062_s0 + $0x8] sm:$0xff] }
 0xcb3   : > { %4455 = vmatprep.mubr.msk.f32.mxu0 %vm2444_vm2, %v3055_v10  ;;  %v3531_v10 = vld [vmem:[%s6062_s0 + $0x10] sm:$0xff] }
 0xcb6   : > { %4587 = vmatpush3.bf16.xpose.msk.msra.mxu0 %vm6196_vm8, %v4582_v7 }
 0xcbd   : > { %4456 = vmatmul.mubr.msk.f32.vlgmr.msra.gmra.mrb[18].mxu0 %vm2444_vm2, %v3057_v11  ;;  %v4610_v11 = vpack.c.bf16 %v3530_v9, %v3529_v8 }
 0xd85   : > { %v4450_v14 = vpop.f32.mrb[16].mxu0 }
 0xd86   : > { %v3045_v16 = vpop.f32.mrb[17].mxu0 }
 0xd90   : > { %v4457_v17 = vpop.f32.mrb[18].mxu0 }
 0xd91   : > { %v3146_v18 = vmul.f32 0.35355338, %v4457_v17  ;;  %v3136_v4 = vpop.f32.mrb[19].mxu0  ;;  %v3533_v17 = vld [vmem:[%s6062_s0 + $0x20] sm:$0xff] }
 0xd92   : > { %v3145_v19 = vmul.f32 0.35355338, %v3136_v4 }
 0xd93   : > { %v3148_v20 = vadd.f32 %v3146_v18, %v6218_v15  ;;  %v3534_v18 = vld [vmem:[%s6062_s0 + $0x28] sm:$0xff] }
 0xd94   : > { %v3147_v27 = vadd.f32 %v3145_v19, %v6220_v3  ;;  %v4618_v4 = vpack.c.bf16 %v3534_v18, %v3533_v17  ;;  %v4225_v19 = vld [vmem:[%s6520_s2] ss:$0 sm:$0xff] }
 0xd95   : > { %v3152_v21 = vsel %vm2535_vm10, %v3148_v20, -inf  ;;  %v4233_v17 = vld [vmem:[%s1300_s28] ss:$0 sm:$0xff]  ;;  %s6527_s28 = scalar_lea.vmem [#allocation22], %s5996_s11 }
 0xd96   : > { %3153 = vmax.xlane.f32.xlu0 %v3152_v21  ;;  %v3149_v22 = vsel %vm1990_vm4, %v3147_v27, -inf }
 0xd97   : > { %3150 = vmax.xlane.f32.xlu1 %v3149_v22 }
 0xe23   : > { %v3154_v37 = vpop.xlane.xlu0 %3153 }
 0xe24   : > { %v3156_v23 = vsub.f32 %v3148_v20, %v3154_v37  ;;  %v3151_v24 = vpop.xlane.xlu1 %3150 }
 0xe25   : > { %v3155_v25 = vsub.f32 %v3147_v27, %v3151_v24 }
 0xe26   : > { %v3159_v26 = vmul.f32 1.442695, %v3156_v23 }
 0xe27   : > { %v3157_v29 = vmul.f32 1.442695, %v3155_v25 }
 0xe28   : > { %4900 = vpow2.f32 %v3159_v26 }
 0xe29   : > { %4902 = vpow2.f32 %v3157_v29 }
 0xe32   : > { %v4901_v32 = vpop.eup %4900 }
 0xe33   : > { %v4903_v33 = vpop.eup %4902  ;;  %v3164_v15 = vsel %vm2535_vm10, %v4901_v32, 0.0 }
 0xe34   : > { %3165 = vadd.xlane.f32.xlu1 %v3164_v15  ;;  %v3161_v3 = vsel %vm1990_vm4, %v4903_v33, 0.0 }
 0xe35   : > { %3162 = vadd.xlane.f32.xlu0 %v3161_v3 }
 0xe45   : > { %3261 = vrot.lane.b32.xlu1 %v6276_v39, %s5455_s27 }
 0xe49   : > { %3263 = vrot.lane.b32.xlu1 %v6274_v38, %s5455_s27  ;;  %s6524_s27 = scalar_lea.vmem [#allocation21], %s5996_s11 }
 0xe4b   : > { %4867 = vrot.lane.b32.xlu0 %v6191_v31, %s5456_s14  ;;  %s6525_s14 = scalar_lea.vmem [#allocation25], %s5996_s11 }
 0xe4d   : > { %3271 = vrot.lane.b32.xlu1 %v4450_v14, %s5457_s20  ;;  %v3532_v14 = vld [vmem:[%s6062_s0 + $0x18] sm:$0xff] }
 0xe4f   : > { %3269 = vrot.lane.b32.xlu0 %v3045_v16, %s5457_s20  ;;  %v4614_v16 = vpack.c.bf16 %v3532_v14, %v3531_v10  ;;  %s6528_s20 = sld [smem:[#allocation40_spill]] (!%p4238_p6) }
 0xec1   : > { %v3166_v40 = vpop.xlane.xlu1 %3165 }
 0xec2   : > { %4904 = vrcp.f32 %v3166_v40  ;;  %v3163_v41 = vpop.xlane.xlu0 %3162 }
 0xec3   : > { %4906 = vrcp.f32 %v3163_v41 }
 0xec5   : > { %v3262_v54 = vpop.permute.xlu1 %3261 }
 0xec6   : > { %v4868_v42 = vpop.permute.xlu0 %4867  ;;  %v3283_v60 = vsel %vm2444_vm2, %v6250_v56, %v3262_v54  ;;  %v3436_v56 = vld [vmem:[%s6033_s16 + $0x8] sm:$0xff] }
 0xec7   : > { %v4870_v43 = vunpack.i.h.bf16 %v4868_v42  ;;  %v4869_v44 = vunpack.i.l.bf16 %v4868_v42  ;;  %v4602_v7 = vpack.c.bf16 %v3436_v56, %v3435_v6 }
 0xec9   : > { %v4588_v39 = vpack.c.bf16 %v4870_v43, %v4869_v44  ;;  %v3264_v57 = vpop.permute.xlu1 %3263  ;;  %4603 = vmatprep.subr.bf16.mxu0 %v4602_v7 }
 0xeca   : > { %v3270_v59 = vpop.permute.xlu0 %3269  ;;  %v3284_v62 = vsel %vm2444_vm2, %v6248_v55, %v3264_v57  ;;  %4605 = vmatpush3.bf16.msra.mxu0 %v4602_v7  ;;  %v3437_v55 = vld [vmem:[%s6033_s16 + $0x10] sm:$0xff]  ;;  %s6521_s16 = scalar_lea.vmem [#allocation16], %s5996_s11  ;;  %v4228_v57 = vld [vmem:[%s6522_s9] ss:$0 sm:$0xff] }
 0xecb   : > { %4590 = vmatprep.subr.msk.bf16.mxu1 %vm6229_vm13, %v4588_v39  ;;  %v3286_v63 = vsel %vm3285_vm14, %v3283_v60, %v3270_v59  ;;  %v4606_v28 = vpack.c.bf16 %v3438_v30, %v3437_v55 }
 0xecc   : > { %v4905_v38 = vpop.eup %4904  ;;  %4593 = vmatpush3.bf16.msk.msra.mxu1 %vm6229_vm13, %v4588_v39 }
 0xecd   : > { %v4907_v31 = vpop.eup %4906  ;;  %v3170_v46 = vmul.f32 %v4905_v38, %v4901_v32  ;;  %4595 = vmatprep.subr.bf16.mxu1 %v4594_v50  ;;  %v3272_v58 = vpop.permute.xlu1 %3271  ;;  %4607 = vmatprep.subr.bf16.mxu0 %v4606_v28 }
 0xece   : > { %v3169_v45 = vmul.f32 %v4907_v31, %v4903_v33  ;;  %v3287_v1 = vsel %vm3285_vm14, %v3284_v62, %v3272_v58  ;;  %4609 = vmatpush3.bf16.msra.mxu0 %v4606_v28  ;;  %v4193_v62 = vld [vmem:[%s6523_s7] ss:$0 sm:$0xff] }
 0xecf   : > { %v4230_v28 = vld [vmem:[%s6525_s14] ss:$0 sm:$0xff] }
 0xed0   : > { %4462 = vmatprep.mubr.msk.f32.mxu1 %vm1990_vm4, %v3169_v45 }
 0xed1   : > { %4463 = vmatmul.mubr.msk.f32.vlgmr.msra.gmra.mrb[8].mxu1 %vm1990_vm4, %v3170_v46 }
 0xed2   : > { %4597 = vmatpush3.bf16.msra.mxu1 %v4594_v50 }
 0xed3   : > { %4599 = vmatprep.subr.bf16.mxu1 %v4598_v52 }
 0xed6   : > { %4601 = vmatpush3.bf16.msra.mxu1 %v4598_v52 }
 0xed7   : > { %4611 = vmatprep.subr.bf16.mxu1 %v4610_v11 }
 0xfa4   : > { %v4464_v53 = vpop.f32.mrb[8].mxu1 }
 0xfa5   : > { %3279 = vrot.lane.b32.xlu1 %v4464_v53, %s5458_s8  ;;  %v3250_v34 = vpop.f32.mrb[9].mxu1 }
 0xfa6   : > { %3277 = vrot.lane.b32.xlu0 %v3250_v34, %s5458_s8  ;;  %v4192_v34 = vld [vmem:[%s6521_s16] ss:$0 sm:$0xff] }
 0xfa7   : > { %v2336_v58 = vmul.f32 %v4192_v34, %v6214_v12  ;;  %v2337_v59 = vmul.f32 %v4192_v34, %v6216_v13  ;;  %v3535_v12 = vld [vmem:[%s6062_s0 + $0x30] sm:$0xff]  ;;  %v3536_v13 = vld [vmem:[%s6062_s0 + $0x38] sm:$0xff]  ;;  %s6526_s0 = scalar_lea.vmem %s5600_s29, %s6043_s22 }
 0xfa8   : > { %v4622_v30 = vpack.c.bf16 %v3536_v13, %v3535_v12 }
0x1017   : > { %v3280_v61 = vpop.permute.xlu1 %3279 }
0x1018   : > { %v3278_v0 = vpop.permute.xlu0 %3277  ;;  %v3290_v5 = vsel %vm3288_vm15, %v3287_v1, %v3280_v61 }
0x1019   : > { %v3289_v2 = vsel %vm3288_vm15, %v3286_v63, %v3278_v0  ;;  %v4229_v63 = vld [vmem:[%s6524_s27] ss:$0 sm:$0xff] }
0x101a   : > { %4473 = vmatprep.mubr.msk.f32.mxu1 %vm2119_vm0, %v3289_v2  ;;  %v2344_v2 = vadd.f32 %v4193_v62, %v2336_v58 }
0x101b   : > { %4474 = vmatmul.mubr.msk.f32.vlgmr.msra.gmra.mrb[10].mxu1 %vm2119_vm0, %v3290_v5  ;;  %v2345_v5 = vadd.f32 %v4193_v62, %v2337_v59 }
0x101c   : > { %4613 = vmatpush3.bf16.msra.mxu1 %v4610_v11 }
0x101d   : > { %4615 = vmatprep.subr.bf16.mxu1 %v4614_v16 }
0x1020   : > { %4617 = vmatpush3.bf16.msra.mxu1 %v4614_v16 }
0x1021   : > { %4619 = vmatprep.subr.bf16.mxu1 %v4618_v4 }
0x1024   : > { %4621 = vmatpush3.bf16.msra.mxu1 %v4618_v4 }
0x1025   : > { %4623 = vmatprep.subr.bf16.mxu1 %v4622_v30 }
0x1028   : > { %4625 = vmatpush3.bf16.msra.mxu1 %v4622_v30 }
0x10ee   : > { %v4475_v20 = vpop.f32.mrb[10].mxu1 }
0x10ef   : > { %v3380_v27 = vadd.f32 %v4475_v20, %v4225_v19  ;;  %v3374_v21 = vpop.f32.mrb[11].mxu1 }
0x10f0   : > { %v3375_v22 = vadd.f32 %v4225_v19, %v3374_v21 }
0x10f1   : > { %v3384_v37 = vadd.f32 %v3380_v27, %v6149_v36 }
0x10f2   : > { %v3383_v23 = vadd.f32 %v3375_v22, %v6147_v35 }
0x10f3   : > { %v3388_v24 = vsel %vm2300_vm9, %v3384_v37, 0.0  ;;  %v3397_v25 = vmul.f32 %v3384_v37, %v3384_v37 }
0x10f4   : > { %v3387_v26 = vsel %vm2119_vm0, %v3383_v23, 0.0  ;;  %v3396_v29 = vmul.f32 %v3383_v23, %v3383_v23 }
0x10f5   : > { %v3399_v32 = vsel %vm2300_vm9, %v3397_v25, 0.0  ;;  %v3389_v33 = vadd.f32 %v3388_v24, %v3387_v26 }
0x10f6   : > { %v3398_v15 = vsel %vm2119_vm0, %v3396_v29, 0.0 }
0x10f7   : > { %v3390_v3 = vrot.slane %v3389_v33, 4  ;;  %v3400_v40 = vadd.f32 %v3399_v32, %v3398_v15 }
0x10f9   : > { %v3391_v41 = vadd.f32 %v3390_v3, %v3389_v33  ;;  %v3401_v42 = vrot.slane %v3400_v40, 4 }
0x10fb   : > { %v3392_v43 = vrot.slane %v3391_v41, 2  ;;  %v3402_v44 = vadd.f32 %v3401_v42, %v3400_v40 }
0x10fd   : > { %v3393_v36 = vadd.f32 %v3392_v43, %v3391_v41  ;;  %v3403_v35 = vrot.slane %v3402_v44, 2 }
0x10ff   : > { %v3394_v39 = vrot.slane %v3393_v36, 1  ;;  %v3404_v38 = vadd.f32 %v3403_v35, %v3402_v44 }
0x1101   : > { %v3395_v31 = vadd.f32 %v3394_v39, %v3393_v36  ;;  %v3405_v45 = vrot.slane %v3404_v38, 1 }
0x1103   : > { %v3406_v46 = vadd.f32 %v3405_v45, %v3404_v38  ;;  %v3407_v47 = vmul.f32 0.083333336, %v3395_v31 }
0x1105   : > { %v3408_v48 = vmul.f32 0.083333336, %v3406_v46  ;;  %v3409_v49 = vmul.f32 %v3407_v47, %v3407_v47  ;;  %v3411_v50 = vsub.f32 %v3383_v23, %v3407_v47  ;;  %v3412_v51 = vsub.f32 %v3384_v37, %v3407_v47 }
0x1107   : > { %v3410_v52 = vsub.f32 %v3408_v48, %v3409_v49 }
0x1109   : > { %v3413_v53 = vadd.f32 1e-05, %v3410_v52  ;;  %v4236_v52 = vld [vmem:[%s6526_s0] ss:$0 sm:$0xff] }
0x110b   : > { %4908 = vrsqrt.f32 %v3413_v53 }
0x1115   : > { %v4909_v54 = vpop.eup %4908 }
0x1116   : > { %v3415_v60 = vmul.f32 %v4909_v54, %v3411_v50  ;;  %v3416_v61 = vmul.f32 %v4909_v54, %v3412_v51  ;;  %v4237_v54 = vld [vmem:[%s6527_s28] ss:$0 sm:$0xff] }
0x1118   : > { %v3423_v0 = vmul.f32 %v4228_v57, %v3415_v60  ;;  %v3424_v1 = vmul.f32 %v4228_v57, %v3416_v61  ;;  %v3682_v61 = vlaneseq (!%p4238_p6) }
0x111a   : > { %v3431_v6 = vadd.f32 %v4229_v63, %v3423_v0  ;;  %v3432_v56 = vadd.f32 %v4229_v63, %v3424_v1  ;;  %v4239_v63 = vld [vmem:[%s6528_s20] ss:$0 sm:$0xff] (!%p4238_p6)  ;;  %v5459_v0 = vmov (!%p4238_p6), 0.0   ;;  %v3683_v1 = vshrl.u32 (!%p4238_p6), %v3682_v61, 7 }
0x111b   : > { %4506 = vmatprep.subr.bf16.mxu0 (!%p4238_p6), %v5459_v0 }
0x111c   : > { %v3433_v7 = vadd.f32 %v3431_v6, %v2344_v2  ;;  %v3434_v55 = vadd.f32 %v3432_v56, %v2345_v5  ;;  %vm3689_vm6 = vcmp.eq.s32.totalorder (!%p4238_p6), %v3683_v1, %v4239_v63 }
0x111d   : > { %v4240_v5 = vsel (!%p4238_p6), %vm3689_vm6, 1.0, %v5459_v0 }
0x111e   : > { %4484 = vmatprep.mubr.msk.f32.mxu0 %vm2119_vm0, %v3433_v7  ;;  %v3692_v6 = vpack.c.bf16 (!%p4238_p6), %v4240_v5, %v4240_v5 }
0x111f   : > { %4485 = vmatmul.mubr.msk.f32.vlgmr.msra.gmra.mrb[20].mxu0 %vm2119_vm0, %v3434_v55 }
0x1120   : > { %4508 = vmatprep.mubr.msk.bf16.mxu0 (!%p4238_p6), %vm5460_vm5, %v5459_v0 }
0x11f2   : > { %v4486_v8 = vpop.f32.mrb[20].mxu0 }
0x11f3   : > { %v3524_v9 = vadd.f32 %v4486_v8, %v4230_v28  ;;  %v3518_v10 = vpop.f32.mrb[21].mxu0 }
0x11f4   : > { %v3519_v11 = vadd.f32 %v4230_v28, %v3518_v10 }
0x11f5   : > { %v3528_v16 = vmax.f32 %v3524_v9, 0.0 }
0x11f6   : > { %v3527_v14 = vmax.f32 %v3519_v11, 0.0 }
0x11f8   : > { %4503 = vmatprep.mubr.msk.f32.mxu1 %vm3544_vm1, %v3527_v14 }
0x11f9   : > { %4504 = vmatmul.mubr.msk.f32.vlgmr.msra.gmra.mrb[12].mxu1 %vm3544_vm1, %v3528_v16 }
0x12cc   : > { %v4505_v18 = vpop.f32.mrb[12].mxu1 }
0x12cd   : > { %v3623_v4 = vadd.f32 %v4505_v18, %v4233_v17  ;;  %v3617_v19 = vpop.f32.mrb[13].mxu1 }
0x12ce   : > { %v3618_v20 = vadd.f32 %v4233_v17, %v3617_v19 }
0x12cf   : > { %v3627_v27 = vadd.f32 %v3623_v4, %v3434_v55 }
0x12d0   : > { %v3626_v21 = vadd.f32 %v3618_v20, %v3433_v7 }
0x12d1   : > { %v3631_v22 = vsel %vm2300_vm9, %v3627_v27, 0.0  ;;  %v3640_v37 = vmul.f32 %v3627_v27, %v3627_v27 }
0x12d2   : > { %v3630_v23 = vsel %vm2119_vm0, %v3626_v21, 0.0  ;;  %v3639_v24 = vmul.f32 %v3626_v21, %v3626_v21 }
0x12d3   : > { %v3642_v25 = vsel %vm2300_vm9, %v3640_v37, 0.0  ;;  %v3632_v26 = vadd.f32 %v3631_v22, %v3630_v23 }
0x12d4   : > { %v3641_v29 = vsel %vm2119_vm0, %v3639_v24, 0.0 }
0x12d5   : > { %v3633_v32 = vrot.slane %v3632_v26, 4  ;;  %v3643_v33 = vadd.f32 %v3642_v25, %v3641_v29 }
0x12d7   : > { %v3634_v15 = vadd.f32 %v3633_v32, %v3632_v26  ;;  %v3644_v3 = vrot.slane %v3643_v33, 4 }
0x12d9   : > { %v3635_v40 = vrot.slane %v3634_v15, 2  ;;  %v3645_v41 = vadd.f32 %v3644_v3, %v3643_v33 }
0x12db   : > { %v3636_v42 = vadd.f32 %v3635_v40, %v3634_v15  ;;  %v3646_v43 = vrot.slane %v3645_v41, 2 }
0x12dd   : > { %v3637_v44 = vrot.slane %v3636_v42, 1  ;;  %v3647_v36 = vadd.f32 %v3646_v43, %v3645_v41 }
0x12df   : > { %v3638_v35 = vadd.f32 %v3637_v44, %v3636_v42  ;;  %v3648_v39 = vrot.slane %v3647_v36, 1 }
0x12e1   : > { %v3649_v38 = vadd.f32 %v3648_v39, %v3647_v36  ;;  %v3650_v31 = vmul.f32 0.083333336, %v3638_v35 }
0x12e3   : > { %v3651_v45 = vmul.f32 0.083333336, %v3649_v38  ;;  %v3652_v46 = vmul.f32 %v3650_v31, %v3650_v31  ;;  %v3654_v47 = vsub.f32 %v3626_v21, %v3650_v31  ;;  %v3655_v48 = vsub.f32 %v3627_v27, %v3650_v31 }
0x12e5   : > { %v3653_v49 = vsub.f32 %v3651_v45, %v3652_v46 }
0x12e7   : > { %v3656_v50 = vadd.f32 1e-05, %v3653_v49 }
0x12e9   : > { %4910 = vrsqrt.f32 %v3656_v50 }
0x12f3   : > { %v4911_v51 = vpop.eup %4910 }
0x12f4   : > { %v3658_v53 = vmul.f32 %v4911_v51, %v3654_v47  ;;  %v3659_v34 = vmul.f32 %v4911_v51, %v3655_v48 }
0x12f5   : > { %3681 = sbr.rel (%p4238_p6) target bundleno = 5079 (0x13d7), region = 208 }
0x12f6   : > { %v3666_v57 = vmul.f32 %v4236_v52, %v3658_v53  ;;  %v3667_v58 = vmul.f32 %v4236_v52, %v3659_v34 }
0x12f8   : > { %v3674_v59 = vadd.f32 %v4237_v54, %v3666_v57  ;;  %v3675_v60 = vadd.f32 %v4237_v54, %v3667_v58 }
0x12fa   : > { %3676 = vst.msk [vmem:[#allocation2] sm:$0xff] %vm2119_vm0, %v3674_v59  ;;  %v3693_v62 = vpack.c.bf16 (!%p4238_p6), %v3675_v60, %v3674_v59 }
0x12fb   : > { %3677 = vst.msk [vmem:[#allocation2 + $0x8] sm:$0xf] %vm2300_vm9, %v3675_v60 }
0x12fc   : > { %v3698_v2 = vsel %vm1997_vm3, %v3693_v62, 0 }
0x12fd   : > { %4507 = vmatpush3.bf16.msra.mxu0 %v3698_v2 }
0x1300   : > { %4509 = vmatmul.mubr.msk.bf16.vlgmr.msra.gmra.mrb[0].mxu0 %vm1990_vm4, %v3692_v6 }
0x13d3   : > { %v3734_v56 = vpop.f32.mrb[0].mxu0 }
0x13d4   : > { %3741 = vst.msk [vmem:[#allocation28] sm:$0x3] %vm3740_vm7, %v3734_v56  ;;  %v4510_v7 = vpop.f32.mrb[1].mxu0 }
0x13d5   : > { %v3737_v55 = vpop.f32.mrb[2].mxu0 }
0x13d6   : > { %v4511_v12 = vpop.f32.mrb[3].mxu0 }
0x13d7 PF: > { %p4703_p2 = scmp.eq.s32.totalorder %s5817_s15, 1  ;;  %s5461_s11 = smov [#allocation28]  }
0x13d8   : > { %s3749_s22 = sshll.u32 %s5461_s11, 4  ;;  %s3750_s22 = int_to_ptr.vmem [resolvable:$true] %s3749_s22 }
0x13d9   : > { %s5300_s8 = scalar_lea.vmem %s3750_s22, 32  ;;  %p5307_p4 = scmp.lt.s32.totalorder %s3750_s22, %s3750_s22 }
0x13da   : > { %p5301_p7 = scmp.ne.s32.totalorder %s3750_s22, %s5300_s8  ;;  %p5308_p1 = scmp.lt.s32.totalorder %s5300_s8, %s5300_s8 }
0x13dc   : > { %p5302_p0 = pnand %p5301_p7, %p4703_p2  ;;  %p5309_p9 = por %p5308_p1, %p5307_p4 }
0x13de   : > { %p5303_p3 = pneg %p5302_p0 }
0x13e0   : > { %p5310_p8 = pnand %p5309_p9, %p5303_p3 }
0x13e2   : > { %5313 = shalt.err (!%p5310_p8)
}
0x13e3   : > { %s6529_s2 = sld [smem:[#allocation59_spill]] }
0x13e9   : > { %s6530_s16 = smov %s6529_s2  ;;  %s5314_s9 = scalar_lea.hbm %s6529_s2, 32 }
0x13ea   : > { %p5315_p12 = scmp.ne.s32.totalorder %s6530_s16, %s5314_s9  ;;  %p5320_p5 = scmp.lt.u32.totalorder %s5314_s9, %s6530_s16 }
0x13ec   : > { %p5316_p13 = pnand %p5315_p12, %p4703_p2 }
0x13ee   : > { %p5317_p11 = pneg %p5316_p13 }
0x13f0   : > { %p5322_p10 = pnand %p5320_p5, %p5317_p11 }
0x13f2   : > { %5325 = shalt.err (!%p5322_p10)
}
0x13f3   : > { %4656 = dma.vmem_to_hbm [thread:$0]  (%p4703_p2), %s3750_s22, 32, %s6530_s16, [#allocation9]  }
0x13f4   : > { %5371 = dma.done.wait (%p4703_p2), [#allocation9], 32  }
0x13f5   : > { %5373 = vsyncadd (%p4703_p2), [#allocation9], 4294967264 }
0x13f6 PF: > { %s6531_s2 = sld [smem:[#allocation61_spill]]  ;;  %s6532_s7 = sld [smem:[#allocation60_spill]] }
0x13f7   : > { %s6533_s0 = sld [smem:[#allocation62_spill]]  ;;  %s6534_s28 = smov %s5380_s1 }
0x13fc   : > { %p92_p6 = scmp.ge.s32.totalorder %s6531_s2, 4   ;;  %s6535_s1 = smov %s6532_s7 }
0x13fe   :  { %94 = sbr.rel (!%p92_p6) target bundleno = 73 (0x49), region = 379 }
0x1405   :  { %3762 = vsyncpa [#allocation8], 1 }
0x1406   :  { %3764 = vsyncpa [#allocation8 + $0x1], 1 }
0x1407   :  { %3765 = vsyncpa [#allocation11], 1 }
0x1408   :  { %3767 = vsyncpa [#allocation11 + $0x1], 1 }
0x1409   :  { %3768 = vsyncpa [#allocation14], 1 }
0x140a   :  { %3770 = vsyncpa [#allocation14 + $0x1], 1 }
0x140b   :  { %3771 = vsyncpa [#allocation17], 1 }
0x140c   :  { %3773 = vsyncpa [#allocation17 + $0x1], 1 }
0x140d   :  { %3774 = vsyncpa [#allocation20], 1 }
0x140e   :  { %3776 = vsyncpa [#allocation20 + $0x1], 1 }
0x140f   :  { %3777 = vsyncpa [#allocation23], 1 }
0x1410   :  { %3779 = vsyncpa [#allocation23 + $0x1], 1 }
0x1411   :  { %3780 = vsyncpa [#allocation26], 1 }
0x1412   :  { %3782 = vsyncpa [#allocation26 + $0x1], 1 }
0x1413   :  { %3783 = vsyncpa [#allocation9], 1 }
0x1414   :  { %3785 = vsyncpa [#allocation9 + $0x1], 1 }

</bundles_post_ra>
